<compile_context>
chip_gen: v5e
topology: v5e:2x2
jax: 0.10.0
libtpu: 0.0.40
codegen_flags: <defaults>
</compile_context>

<pallas_src>
import math
import functools

import jax
import jax.numpy as jnp
from jax.experimental import pallas as pl
from jax.experimental.pallas import tpu as pltpu

# ---------------- config (small stand-in for bert-base) ----------------
HIDDEN = 128            # BERT_HIDDEN_SIZE (768 in reference) -> 128 for small shapes
NUM_HEADS = 2
HEAD_DIM = HIDDEN // NUM_HEADS
NUM_LAYERS = 2
INTERMEDIATE = 4 * HIDDEN
VOCAB = 64
MAX_POS = 16
N_SENTIMENT_CLASSES = 5
LN_EPS = 1e-12
LANE = 128              # lane-dense padding width for scalar heads


# ---------------- in-kernel helpers ----------------
def _ln(x, g, b):
    mu = jnp.mean(x, axis=-1, keepdims=True)
    var = jnp.mean((x - mu) ** 2, axis=-1, keepdims=True)
    return (x - mu) * jax.lax.rsqrt(var + LN_EPS) * g + b


def _gelu_exact(y):
    # exact (erf) GELU, matching torch.nn.functional.gelu default
    return 0.5 * y * (1.0 + jax.lax.erf(y * 0.7071067811865476))


# ---------------- Pallas kernels ----------------
def _layer_kernel(x_ref, m_ref, wqkv_ref, bqkv_ref, wo_ref, bo_ref,
                  ln1g_ref, ln1b_ref, wi_ref, bi_ref, wo2_ref, bo2_ref,
                  ln2g_ref, ln2b_ref, o_ref, *, num_heads, head_dim):
    """One full BERT encoder layer for one batch element (grid over batch)."""
    x = x_ref[...].astype(jnp.float32)                     # (S, H)
    S, H = x.shape
    mask_add = (1.0 - m_ref[...]) * -10000.0               # (1, S) additive mask

    # fused QKV projection: (S, H) @ (H, 3H)
    qkv = jnp.dot(x, wqkv_ref[...], preferred_element_type=jnp.float32) + bqkv_ref[...]
    q = qkv[:, 0 * H:1 * H]
    k = qkv[:, 1 * H:2 * H]
    v = qkv[:, 2 * H:3 * H]

    scale = 1.0 / math.sqrt(head_dim)
    wo = wo_ref[...]                                       # (H, H)
    attn = None
    for h in range(num_heads):                             # static unroll
        sl = slice(h * head_dim, (h + 1) * head_dim)
        qh, kh, vh = q[:, sl], k[:, sl], v[:, sl]          # (S, hd)
        # q @ k^T without an explicit transpose (contract on last axes)
        s = jax.lax.dot_general(qh, kh, (((1,), (1,)), ((), ())),
                                preferred_element_type=jnp.float32)
        s = s * scale + mask_add                           # (S, S)
        s = s - jnp.max(s, axis=-1, keepdims=True)
        p = jnp.exp(s)
        p = p * pl.reciprocal(jnp.sum(p, axis=-1, keepdims=True), approx=True)
        ctx = jnp.dot(p, vh, preferred_element_type=jnp.float32)          # (S, hd)
        # fold head context straight into the (lane-dense) output projection
        part = jnp.dot(ctx, wo[sl, :], preferred_element_type=jnp.float32)  # (S, H)
        attn = part if attn is None else attn + part
    attn = attn + bo_ref[...]

    # residual + LayerNorm (fused)
    x1 = _ln(x + attn, ln1g_ref[...], ln1b_ref[...])

    # fused FFN: gelu(x1 @ wi + bi) @ wo2 + bo2, intermediate stays on-chip
    inter = jnp.dot(x1, wi_ref[...], preferred_element_type=jnp.float32) + bi_ref[...]
    inter = _gelu_exact(inter)
    ffn = jnp.dot(inter, wo2_ref[...], preferred_element_type=jnp.float32) + bo2_ref[...]

    # residual + LayerNorm (fused)
    x2 = _ln(x1 + ffn, ln2g_ref[...], ln2b_ref[...])
    o_ref[...] = x2.astype(o_ref.dtype)


def _emb_ln_kernel(x_ref, g_ref, b_ref, o_ref):
    o_ref[...] = _ln(x_ref[...].astype(jnp.float32), g_ref[...], b_ref[...]).astype(o_ref.dtype)


def _linear_kernel(x_ref, w_ref, b_ref, o_ref, *, act):
    """y = x @ w + b, optional activation (small head kernels)."""
    y = jnp.dot(x_ref[...], w_ref[...], preferred_element_type=jnp.float32) + b_ref[...]
    if act == "tanh":
        y = jnp.tanh(y)
    o_ref[...] = y.astype(o_ref.dtype)


def _pair_head_kernel(x1_ref, x2_ref, w1_ref, b1_ref, w2_ref, b2_ref, wi_ref, bi_ref, o_ref):
    """Fused: logit = ((x1@W1+b1) * (x2@W2+b2)) @ Wi + bi  (paraphrase / STS head).

    Wi/bi are zero-padded to 128 output lanes so stores stay unmasked/lane-dense;
    the wrapper slices column 0.
    """
    y1 = jnp.dot(x1_ref[...], w1_ref[...], preferred_element_type=jnp.float32) + b1_ref[...]
    y2 = jnp.dot(x2_ref[...], w2_ref[...], preferred_element_type=jnp.float32) + b2_ref[...]
    y = y1 * y2
    o_ref[...] = (
        jnp.dot(y, wi_ref[...], preferred_element_type=jnp.float32) + bi_ref[...]
    ).astype(o_ref.dtype)


# ---------------- Pallas wrappers ----------------
def bert_layer(x, maskf, lp):
    """One fused encoder layer. x: (B, S, H); maskf: (B, 1, S) float mask."""
    B, S, H = x.shape
    io_spec = pl.BlockSpec((None, S, H), lambda b: (b, 0, 0))

    def full(arr):
        nd = arr.ndim
        return pl.BlockSpec(arr.shape, lambda b, _nd=nd: (0,) * _nd)

    return pl.pallas_call(
        functools.partial(_layer_kernel, num_heads=NUM_HEADS, head_dim=HEAD_DIM),
        out_shape=jax.ShapeDtypeStruct((B, S, H), x.dtype),
        grid=(B,),
        in_specs=[
            io_spec,
            pl.BlockSpec((None, 1, S), lambda b: (b, 0, 0)),
            full(lp["wqkv"]), full(lp["bqkv"]),
            full(lp["wo"]), full(lp["bo"]),
            full(lp["ln1_g"]), full(lp["ln1_b"]),
            full(lp["wi"]), full(lp["bi"]),
            full(lp["wo2"]), full(lp["bo2"]),
            full(lp["ln2_g"]), full(lp["ln2_b"]),
        ],
        out_specs=io_spec,
        compiler_params=pltpu.CompilerParams(dimension_semantics=("parallel",)),
    )(x, maskf, lp["wqkv"], lp["bqkv"], lp["wo"], lp["bo"],
      lp["ln1_g"], lp["ln1_b"], lp["wi"], lp["bi"], lp["wo2"], lp["bo2"],
      lp["ln2_g"], lp["ln2_b"])


def pallas_layernorm_bsd(x, g, b):
    """LayerNorm over last dim of a (B, S, H) tensor, gridded over batch."""
    B, S, H = x.shape
    io_spec = pl.BlockSpec((None, S, H), lambda bi: (bi, 0, 0))
    return pl.pallas_call(
        _emb_ln_kernel,
        out_shape=jax.ShapeDtypeStruct((B, S, H), x.dtype),
        grid=(B,),
        in_specs=[io_spec,
                  pl.BlockSpec((1, H), lambda bi: (0, 0)),
                  pl.BlockSpec((1, H), lambda bi: (0, 0))],
        out_specs=io_spec,
        compiler_params=pltpu.CompilerParams(dimension_semantics=("parallel",)),
    )(x, g, b)


def pallas_linear(x, w, b, act=None):
    """Small-head linear.  x:(M,K) w:(K,N) b:(1,N).  Whole-array block (tiny M)."""
    M, K = x.shape
    N = w.shape[1]
    return pl.pallas_call(
        functools.partial(_linear_kernel, act=act),
        out_shape=jax.ShapeDtypeStruct((M, N), x.dtype),
        in_specs=[
            pl.BlockSpec((M, K), lambda: (0, 0)),
            pl.BlockSpec((K, N), lambda: (0, 0)),
            pl.BlockSpec((1, N), lambda: (0, 0)),
        ],
        out_specs=pl.BlockSpec((M, N), lambda: (0, 0)),
    )(x, w, b)


def pallas_pair_head(x1, x2, w1, b1, w2, b2, wi_p, bi_p):
    B, H = x1.shape
    N = wi_p.shape[1]   # 128 (lane-dense padded logit column)
    out = pl.pallas_call(
        _pair_head_kernel,
        out_shape=jax.ShapeDtypeStruct((B, N), x1.dtype),
        in_specs=[
            pl.BlockSpec((B, H), lambda: (0, 0)),
            pl.BlockSpec((B, H), lambda: (0, 0)),
            pl.BlockSpec((H, H), lambda: (0, 0)),
            pl.BlockSpec((1, H), lambda: (0, 0)),
            pl.BlockSpec((H, H), lambda: (0, 0)),
            pl.BlockSpec((1, H), lambda: (0, 0)),
            pl.BlockSpec((H, N), lambda: (0, 0)),
            pl.BlockSpec((1, N), lambda: (0, 0)),
        ],
        out_specs=pl.BlockSpec((B, N), lambda: (0, 0)),
    )(x1, x2, w1, b1, w2, b2, wi_p, bi_p)
    return out[:, :1]


# ---------------- model (BERT encoder + task heads) ----------------
def bert_forward(params, input_ids, attention_mask):
    """MultitaskBERT.forward: returns the pooler output (B, HIDDEN)."""
    B, S = input_ids.shape
    # embedding gather stays in plain JAX (glue); everything else is Pallas
    emb = (
        params["word_emb"][input_ids]
        + params["pos_emb"][:S][None, :, :]
        + params["type_emb"][0][None, None, :]
    )
    x = pallas_layernorm_bsd(emb, params["emb_ln_g"], params["emb_ln_b"])
    # raw (B, 1, S) float mask; the additive -1e4 mask is built inside the kernel
    maskf = attention_mask.astype(jnp.float32).reshape(B, 1, S)
    for lp in params["layers"]:
        x = bert_layer(x, maskf, lp)
    cls = x[:, 0, :]
    pooled = pallas_linear(cls, params["pool_w"], params["pool_b"], act="tanh")
    return pooled


def predict_sentiment(params, input_ids, attention_mask):
    pooled = bert_forward(params, input_ids, attention_mask)
    # sentiment_dropout is identity at inference; head padded to 128 lanes
    logits = pallas_linear(pooled, params["sent_w_p"], params["sent_b_p"])
    return logits[:, :N_SENTIMENT_CLASSES]


def predict_paraphrase(params, ids1, mask1, ids2, mask2):
    p1 = bert_forward(params, ids1, mask1)
    p2 = bert_forward(params, ids2, mask2)
    return pallas_pair_head(
        p1, p2,
        params["para_w1"], params["para_b1"],
        params["para_w2"], params["para_b2"],
        params["para_wi_p"], params["para_bi_p"],
    )


def predict_similarity(params, ids1, mask1, ids2, mask2):
    # default (non --share_layers) branch: use the similarity_* weights
    p1 = bert_forward(params, ids1, mask1)
    p2 = bert_forward(params, ids2, mask2)
    return pallas_pair_head(
        p1, p2,
        params["sim_w1"], params["sim_b1"],
        params["sim_w2"], params["sim_b2"],
        params["sim_wi_p"], params["sim_bi_p"],
    )


# ---------------- deterministic parameter init ----------------
def _dense(key, fan_in, fan_out):
    w = jax.random.normal(key, (fan_in, fan_out), jnp.float32) * 0.02
    b = jnp.zeros((1, fan_out), jnp.float32)
    return w, b


def _pad_cols(w, b, n_pad):
    n = w.shape[1]
    w_p = jnp.zeros((w.shape[0], n_pad), jnp.float32).at[:, :n].set(w)
    b_p = jnp.zeros((1, n_pad), jnp.float32).at[:, :n].set(b)
    return w_p, b_p


def init_params(key):
    keys = iter(jax.random.split(key, 64))
    params = {
        "word_emb": jax.random.normal(next(keys), (VOCAB, HIDDEN), jnp.float32) * 0.02,
        "pos_emb": jax.random.normal(next(keys), (MAX_POS, HIDDEN), jnp.float32) * 0.02,
        "type_emb": jax.random.normal(next(keys), (2, HIDDEN), jnp.float32) * 0.02,
        "emb_ln_g": jnp.ones((1, HIDDEN), jnp.float32),
        "emb_ln_b": jnp.zeros((1, HIDDEN), jnp.float32),
        "layers": [],
    }
    for _ in range(NUM_LAYERS):
        lp = {}
        wq, bq = _dense(next(keys), HIDDEN, HIDDEN)
        wk, bk = _dense(next(keys), HIDDEN, HIDDEN)
        wv, bv = _dense(next(keys), HIDDEN, HIDDEN)
        lp["wqkv"] = jnp.concatenate([wq, wk, wv], axis=1)      # (H, 3H) fused QKV
        lp["bqkv"] = jnp.concatenate([bq, bk, bv], axis=1)      # (1, 3H)
        lp["wo"], lp["bo"] = _dense(next(keys), HIDDEN, HIDDEN)
        lp["ln1_g"] = jnp.ones((1, HIDDEN), jnp.float32)
        lp["ln1_b"] = jnp.zeros((1, HIDDEN), jnp.float32)
        lp["wi"], lp["bi"] = _dense(next(keys), HIDDEN, INTERMEDIATE)
        lp["wo2"], lp["bo2"] = _dense(next(keys), INTERMEDIATE, HIDDEN)
        lp["ln2_g"] = jnp.ones((1, HIDDEN), jnp.float32)
        lp["ln2_b"] = jnp.zeros((1, HIDDEN), jnp.float32)
        params["layers"].append(lp)

    params["pool_w"], params["pool_b"] = _dense(next(keys), HIDDEN, HIDDEN)

    sw, sb = _dense(next(keys), HIDDEN, N_SENTIMENT_CLASSES)
    params["sent_w_p"], params["sent_b_p"] = _pad_cols(sw, sb, LANE)

    params["para_w1"], params["para_b1"] = _dense(next(keys), HIDDEN, HIDDEN)
    params["para_w2"], params["para_b2"] = _dense(next(keys), HIDDEN, HIDDEN)
    pwi, pbi = _dense(next(keys), HIDDEN, 1)
    params["para_wi_p"], params["para_bi_p"] = _pad_cols(pwi, pbi, LANE)

    params["sim_w1"], params["sim_b1"] = _dense(next(keys), HIDDEN, HIDDEN)
    params["sim_w2"], params["sim_b2"] = _dense(next(keys), HIDDEN, HIDDEN)
    swi, sbi = _dense(next(keys), HIDDEN, 1)
    params["sim_wi_p"], params["sim_bi_p"] = _pad_cols(swi, sbi, LANE)
    return params


# TODO(synk): real `bert-base-uncased` pretrained weights cannot be loaded here;
# a deterministically initialized small encoder with identical structure is used.

if __name__ == "__main__":
    key = jax.random.PRNGKey(0)
    pkey, k1, k2 = jax.random.split(key, 3)
    params = init_params(pkey)

    B, S = 2, 8
    input_ids_1 = jax.random.randint(k1, (B, S), 0, VOCAB, dtype=jnp.int32)
    input_ids_2 = jax.random.randint(k2, (B, S), 0, VOCAB, dtype=jnp.int32)
    attention_mask_1 = jnp.ones((B, S), jnp.int32)
    attention_mask_2 = jnp.ones((B, S), jnp.int32).at[:, S - 2:].set(0)  # some padding

    sent_fn = jax.jit(predict_sentiment)
    para_fn = jax.jit(predict_paraphrase)
    sim_fn = jax.jit(predict_similarity)

    pooled = jax.block_until_ready(
        jax.jit(bert_forward)(params, input_ids_1, attention_mask_1)
    )
    sent_logits = jax.block_until_ready(sent_fn(params, input_ids_1, attention_mask_1))
    para_logit = jax.block_until_ready(
        para_fn(params, input_ids_1, attention_mask_1, input_ids_2, attention_mask_2)
    )
    sim_logit = jax.block_until_ready(
        sim_fn(params, input_ids_1, attention_mask_1, input_ids_2, attention_mask_2)
    )

    assert pooled.shape == (B, HIDDEN)
    assert sent_logits.shape == (B, N_SENTIMENT_CLASSES)
    assert para_logit.shape == (B, 1)
    assert sim_logit.shape == (B, 1)
    assert all(
        bool(jnp.all(jnp.isfinite(a))) for a in (pooled, sent_logits, para_logit, sim_logit)
    )
    print("KERNEL_OK")
</pallas_src>

<mosaic_0001>
module attributes {stable_mosaic.version = 11 : i64} {
  func.func @_linear_kernel(%arg0: memref<2x128xf32, #tpu.memory_space<vmem>>, %arg1: memref<128x128xf32, #tpu.memory_space<vmem>>, %arg2: memref<1x128xf32, #tpu.memory_space<vmem>>, %arg3: memref<2x128xf32, #tpu.memory_space<vmem>>) attributes {dimension_semantics = [], scalar_prefetch = 0 : i64, scratch_operands = 0 : i64, tpu.core_type = #tpu.core_type<tc>} {
    %c0 = arith.constant 0 : index
    %c0_0 = arith.constant 0 : index
    %0 = vector.load %arg0[%c0, %c0_0] : memref<2x128xf32, #tpu.memory_space<vmem>>, vector<2x128xf32>
    %c0_1 = arith.constant 0 : index
    %c0_2 = arith.constant 0 : index
    %1 = vector.load %arg1[%c0_1, %c0_2] : memref<128x128xf32, #tpu.memory_space<vmem>>, vector<128x128xf32>
    %cst = arith.constant dense<0.000000e+00> : vector<2x128xf32>
    %2 = tpu.matmul %0, %1, %cst {dimension_numbers = #tpu.dot_dimension_numbers<[1], [0], [0], [1], [0, 0, 1, 1], [], []>} : vector<2x128xf32>, vector<128x128xf32>, vector<2x128xf32> -> vector<2x128xf32>
    %c0_3 = arith.constant 0 : index
    %c0_4 = arith.constant 0 : index
    %3 = vector.load %arg2[%c0_3, %c0_4] : memref<1x128xf32, #tpu.memory_space<vmem>>, vector<1x128xf32>
    %4 = vector.broadcast %3 : vector<1x128xf32> to vector<2x128xf32>
    %5 = arith.addf %2, %4 : vector<2x128xf32>
    %6 = math.tanh %5 : vector<2x128xf32>
    %c0_5 = arith.constant 0 : index
    %c0_6 = arith.constant 0 : index
    %7 = vector.load %arg3[%c0_5, %c0_6] : memref<2x128xf32, #tpu.memory_space<vmem>>, vector<2x128xf32>
    tpu.vector_store %arg3[%c0_5, %c0_6], %6 {strides = array<i32>} : memref<2x128xf32, #tpu.memory_space<vmem>>, vector<2x128xf32>,
    return
  }
}

module attributes {stable_mosaic.version = 11 : i64} {
  func.func @_emb_ln_kernel(%arg0: i32, %arg1: memref<1x8x128xf32, #tpu.memory_space<vmem>>, %arg2: memref<1x128xf32, #tpu.memory_space<vmem>>, %arg3: memref<1x128xf32, #tpu.memory_space<vmem>>, %arg4: memref<1x8x128xf32, #tpu.memory_space<vmem>>) attributes {dimension_semantics = [#tpu.dimension_semantics<parallel>], iteration_bounds = array<i64: 2>, scalar_prefetch = 0 : i64, scratch_operands = 0 : i64, tpu.core_type = #tpu.core_type<tc>, window_params = [{transform_indices = @transform_0, window_bounds = array<i64: 1, 8, 128>}, {pipeline_mode = #tpu.pipeline_mode<synchronous>, transform_indices = @transform_1, window_bounds = array<i64: 1, 128>}, {pipeline_mode = #tpu.pipeline_mode<synchronous>, transform_indices = @transform_2, window_bounds = array<i64: 1, 128>}, {transform_indices = @transform_3, window_bounds = array<i64: 1, 8, 128>}]} {
    %c0 = arith.constant 0 : index
    %c0_0 = arith.constant 0 : index
    %c0_1 = arith.constant 0 : index
    %0 = vector.load %arg1[%c0, %c0_0, %c0_1] : memref<1x8x128xf32, #tpu.memory_space<vmem>>, vector<1x8x128xf32>
    %1 = vector.shape_cast %0 : vector<1x8x128xf32> to vector<8x128xf32>
    %c0_2 = arith.constant 0 : index
    %c0_3 = arith.constant 0 : index
    %2 = vector.load %arg2[%c0_2, %c0_3] : memref<1x128xf32, #tpu.memory_space<vmem>>, vector<1x128xf32>
    %c0_4 = arith.constant 0 : index
    %c0_5 = arith.constant 0 : index
    %3 = vector.load %arg3[%c0_4, %c0_5] : memref<1x128xf32, #tpu.memory_space<vmem>>, vector<1x128xf32>
    %cst = arith.constant dense<0.000000e+00> : vector<8xf32>
    %4 = vector.multi_reduction <add>, %1, %cst [1] : vector<8x128xf32> to vector<8xf32>
    %5 = vector.shape_cast %4 : vector<8xf32> to vector<8x1xf32>
    %cst_6 = arith.constant 1.280000e+02 : f32
    %6 = vector.broadcast %cst_6 : f32 to vector<8x1xf32>
    %7 = arith.divf %5, %6 : vector<8x1xf32>
    %8 = vector.broadcast %7 : vector<8x1xf32> to vector<8x128xf32>
    %9 = arith.subf %1, %8 : vector<8x128xf32>
    %10 = arith.mulf %9, %9 : vector<8x128xf32>
    %cst_7 = arith.constant dense<0.000000e+00> : vector<8xf32>
    %11 = vector.multi_reduction <add>, %10, %cst_7 [1] : vector<8x128xf32> to vector<8xf32>
    %12 = vector.shape_cast %11 : vector<8xf32> to vector<8x1xf32>
    %cst_8 = arith.constant 1.280000e+02 : f32
    %13 = vector.broadcast %cst_8 : f32 to vector<8x1xf32>
    %14 = arith.divf %12, %13 : vector<8x1xf32>
    %15 = vector.broadcast %7 : vector<8x1xf32> to vector<8x128xf32>
    %16 = arith.subf %1, %15 : vector<8x128xf32>
    %cst_9 = arith.constant 9.99999996E-13 : f32
    %17 = vector.broadcast %cst_9 : f32 to vector<8x1xf32>
    %18 = arith.addf %14, %17 : vector<8x1xf32>
    %19 = math.rsqrt %18 : vector<8x1xf32>
    %20 = vector.broadcast %19 : vector<8x1xf32> to vector<8x128xf32>
    %21 = arith.mulf %16, %20 : vector<8x128xf32>
    %22 = vector.broadcast %2 : vector<1x128xf32> to vector<8x128xf32>
    %23 = arith.mulf %21, %22 : vector<8x128xf32>
    %24 = vector.broadcast %3 : vector<1x128xf32> to vector<8x128xf32>
    %25 = arith.addf %23, %24 : vector<8x128xf32>
    %c0_10 = arith.constant 0 : index
    %c0_11 = arith.constant 0 : index
    %c0_12 = arith.constant 0 : index
    %26 = vector.load %arg4[%c0_10, %c0_11, %c0_12] : memref<1x8x128xf32, #tpu.memory_space<vmem>>, vector<1x8x128xf32>
    %27 = vector.shape_cast %26 : vector<1x8x128xf32> to vector<8x128xf32>
    %28 = vector.shape_cast %25 : vector<8x128xf32> to vector<1x8x128xf32>
    tpu.vector_store %arg4[%c0_10, %c0_11, %c0_12], %28 {strides = array<i32>} : memref<1x8x128xf32, #tpu.memory_space<vmem>>, vector<1x8x128xf32>,
    return
  }
  func.func @transform_0(%arg0: i32) -> (i32, i32, i32) {
    %c0_i32 = arith.constant 0 : i32
    %c0_i32_0 = arith.constant 0 : i32
    %c0_i32_1 = arith.constant 0 : i32
    return %arg0, %c0_i32, %c0_i32_0 : i32, i32, i32
  }
  func.func @transform_1(%arg0: i32) -> (i32, i32) {
    %c0_i32 = arith.constant 0 : i32
    %c0_i32_0 = arith.constant 0 : i32
    %c0_i32_1 = arith.constant 0 : i32
    return %c0_i32, %c0_i32_0 : i32, i32
  }
  func.func @transform_2(%arg0: i32) -> (i32, i32) {
    %c0_i32 = arith.constant 0 : i32
    %c0_i32_0 = arith.constant 0 : i32
    %c0_i32_1 = arith.constant 0 : i32
    return %c0_i32, %c0_i32_0 : i32, i32
  }
  func.func @transform_3(%arg0: i32) -> (i32, i32, i32) {
    %c0_i32 = arith.constant 0 : i32
    %c0_i32_0 = arith.constant 0 : i32
    %c0_i32_1 = arith.constant 0 : i32
    return %arg0, %c0_i32, %c0_i32_0 : i32, i32, i32
  }
}

module attributes {stable_mosaic.version = 11 : i64} {
  func.func @_layer_kernel(%arg0: i32, %arg1: memref<1x8x128xf32, #tpu.memory_space<vmem>>, %arg2: memref<1x1x8xf32, #tpu.memory_space<vmem>>, %arg3: memref<128x384xf32, #tpu.memory_space<vmem>>, %arg4: memref<1x384xf32, #tpu.memory_space<vmem>>, %arg5: memref<128x128xf32, #tpu.memory_space<vmem>>, %arg6: memref<1x128xf32, #tpu.memory_space<vmem>>, %arg7: memref<1x128xf32, #tpu.memory_space<vmem>>, %arg8: memref<1x128xf32, #tpu.memory_space<vmem>>, %arg9: memref<128x512xf32, #tpu.memory_space<vmem>>, %arg10: memref<1x512xf32, #tpu.memory_space<vmem>>, %arg11: memref<512x128xf32, #tpu.memory_space<vmem>>, %arg12: memref<1x128xf32, #tpu.memory_space<vmem>>, %arg13: memref<1x128xf32, #tpu.memory_space<vmem>>, %arg14: memref<1x128xf32, #tpu.memory_space<vmem>>, %arg15: memref<1x8x128xf32, #tpu.memory_space<vmem>>) attributes {dimension_semantics = [#tpu.dimension_semantics<parallel>], iteration_bounds = array<i64: 2>, scalar_prefetch = 0 : i64, scratch_operands = 0 : i64, tpu.core_type = #tpu.core_type<tc>, window_params = [{transform_indices = @transform_0, window_bounds = array<i64: 1, 8, 128>}, {transform_indices = @transform_1, window_bounds = array<i64: 1, 1, 8>}, {pipeline_mode = #tpu.pipeline_mode<synchronous>, transform_indices = @transform_2, window_bounds = array<i64: 128, 384>}, {pipeline_mode = #tpu.pipeline_mode<synchronous>, transform_indices = @transform_3, window_bounds = array<i64: 1, 384>}, {pipeline_mode = #tpu.pipeline_mode<synchronous>, transform_indices = @transform_4, window_bounds = array<i64: 128, 128>}, {pipeline_mode = #tpu.pipeline_mode<synchronous>, transform_indices = @transform_5, window_bounds = array<i64: 1, 128>}, {pipeline_mode = #tpu.pipeline_mode<synchronous>, transform_indices = @transform_6, window_bounds = array<i64: 1, 128>}, {pipeline_mode = #tpu.pipeline_mode<synchronous>, transform_indices = @transform_7, window_bounds = array<i64: 1, 128>}, {pipeline_mode = #tpu.pipeline_mode<synchronous>, transform_indices = @transform_8, window_bounds = array<i64: 128, 512>}, {pipeline_mode = #tpu.pipeline_mode<synchronous>, transform_indices = @transform_9, window_bounds = array<i64: 1, 512>}, {pipeline_mode = #tpu.pipeline_mode<synchronous>, transform_indices = @transform_10, window_bounds = array<i64: 512, 128>}, {pipeline_mode = #tpu.pipeline_mode<synchronous>, transform_indices = @transform_11, window_bounds = array<i64: 1, 128>}, {pipeline_mode = #tpu.pipeline_mode<synchronous>, transform_indices = @transform_12, window_bounds = array<i64: 1, 128>}, {pipeline_mode = #tpu.pipeline_mode<synchronous>, transform_indices = @transform_13, window_bounds = array<i64: 1, 128>}, {transform_indices = @transform_14, window_bounds = array<i64: 1, 8, 128>}]} {
    %c0 = arith.constant 0 : index
    %c0_0 = arith.constant 0 : index
    %c0_1 = arith.constant 0 : index
    %0 = vector.load %arg1[%c0, %c0_0, %c0_1] : memref<1x8x128xf32, #tpu.memory_space<vmem>>, vector<1x8x128xf32>
    %1 = vector.shape_cast %0 : vector<1x8x128xf32> to vector<8x128xf32>
    %c0_2 = arith.constant 0 : index
    %c0_3 = arith.constant 0 : index
    %c0_4 = arith.constant 0 : index
    %2 = vector.load %arg2[%c0_2, %c0_3, %c0_4] : memref<1x1x8xf32, #tpu.memory_space<vmem>>, vector<1x1x8xf32>
    %3 = vector.shape_cast %2 : vector<1x1x8xf32> to vector<1x8xf32>
    %cst = arith.constant 1.000000e+00 : f32
    %4 = vector.broadcast %cst : f32 to vector<1x8xf32>
    %5 = arith.subf %4, %3 : vector<1x8xf32>
    %cst_5 = arith.constant -1.000000e+04 : f32
    %6 = vector.broadcast %cst_5 : f32 to vector<1x8xf32>
    %7 = arith.mulf %5, %6 : vector<1x8xf32>
    %c0_6 = arith.constant 0 : index
    %c0_7 = arith.constant 0 : index
    %8 = vector.load %arg3[%c0_6, %c0_7] : memref<128x384xf32, #tpu.memory_space<vmem>>, vector<128x384xf32>
    %cst_8 = arith.constant dense<0.000000e+00> : vector<8x384xf32>
    %9 = tpu.matmul %1, %8, %cst_8 {dimension_numbers = #tpu.dot_dimension_numbers<[1], [0], [0], [1], [0, 0, 1, 1], [], []>} : vector<8x128xf32>, vector<128x384xf32>, vector<8x384xf32> -> vector<8x384xf32>
    %c0_9 = arith.constant 0 : index
    %c0_10 = arith.constant 0 : index
    %10 = vector.load %arg4[%c0_9, %c0_10] : memref<1x384xf32, #tpu.memory_space<vmem>>, vector<1x384xf32>
    %11 = vector.broadcast %10 : vector<1x384xf32> to vector<8x384xf32>
    %12 = arith.addf %9, %11 : vector<8x384xf32>
    %13 = vector.extract_strided_slice %12 {offsets = [0, 0], sizes = [8, 128], strides = [1, 1]} : vector<8x384xf32> to vector<8x128xf32>
    %14 = vector.extract_strided_slice %12 {offsets = [0, 128], sizes = [8, 128], strides = [1, 1]} : vector<8x384xf32> to vector<8x128xf32>
    %15 = vector.extract_strided_slice %12 {offsets = [0, 256], sizes = [8, 128], strides = [1, 1]} : vector<8x384xf32> to vector<8x128xf32>
    %c0_11 = arith.constant 0 : index
    %c0_12 = arith.constant 0 : index
    %16 = vector.load %arg5[%c0_11, %c0_12] : memref<128x128xf32, #tpu.memory_space<vmem>>, vector<128x128xf32>
    %17 = vector.extract_strided_slice %13 {offsets = [0, 0], sizes = [8, 64], strides = [1, 1]} : vector<8x128xf32> to vector<8x64xf32>
    %18 = vector.extract_strided_slice %14 {offsets = [0, 0], sizes = [8, 64], strides = [1, 1]} : vector<8x128xf32> to vector<8x64xf32>
    %19 = vector.extract_strided_slice %15 {offsets = [0, 0], sizes = [8, 64], strides = [1, 1]} : vector<8x128xf32> to vector<8x64xf32>
    %cst_13 = arith.constant dense<0.000000e+00> : vector<8x8xf32>
    %20 = tpu.matmul %17, %18, %cst_13 {dimension_numbers = #tpu.dot_dimension_numbers<[1], [1], [0], [0], [0, 0, 1, 0], [], []>} : vector<8x64xf32>, vector<8x64xf32>, vector<8x8xf32> -> vector<8x8xf32>
    %cst_14 = arith.constant 1.250000e-01 : f32
    %21 = vector.broadcast %cst_14 : f32 to vector<8x8xf32>
    %22 = arith.mulf %20, %21 : vector<8x8xf32>
    %23 = vector.broadcast %7 : vector<1x8xf32> to vector<8x8xf32>
    %24 = arith.addf %22, %23 : vector<8x8xf32>
    %cst_15 = arith.constant dense<0xFF800000> : vector<8xf32>
    %25 = vector.multi_reduction <maximumf>, %24, %cst_15 [1] : vector<8x8xf32> to vector<8xf32>
    %26 = vector.shape_cast %25 : vector<8xf32> to vector<8x1xf32>
    %27 = vector.broadcast %26 : vector<8x1xf32> to vector<8x8xf32>
    %28 = arith.subf %24, %27 : vector<8x8xf32>
    %29 = math.exp %28 : vector<8x8xf32>
    %cst_16 = arith.constant dense<0.000000e+00> : vector<8xf32>
    %30 = vector.multi_reduction <add>, %29, %cst_16 [1] : vector<8x8xf32> to vector<8xf32>
    %31 = vector.shape_cast %30 : vector<8xf32> to vector<8x1xf32>
    %32 = tpu.reciprocal %31 {approx = true} : vector<8x1xf32> -> vector<8x1xf32>
    %33 = vector.broadcast %32 : vector<8x1xf32> to vector<8x8xf32>
    %34 = arith.mulf %29, %33 : vector<8x8xf32>
    %cst_17 = arith.constant dense<0.000000e+00> : vector<8x64xf32>
    %35 = tpu.matmul %34, %19, %cst_17 {dimension_numbers = #tpu.dot_dimension_numbers<[1], [0], [0], [1], [0, 0, 1, 1], [], []>} : vector<8x8xf32>, vector<8x64xf32>, vector<8x64xf32> -> vector<8x64xf32>
    %36 = vector.extract_strided_slice %16 {offsets = [0, 0], sizes = [64, 128], strides = [1, 1]} : vector<128x128xf32> to vector<64x128xf32>
    %cst_18 = arith.constant dense<0.000000e+00> : vector<8x128xf32>
    %37 = tpu.matmul %35, %36, %cst_18 {dimension_numbers = #tpu.dot_dimension_numbers<[1], [0], [0], [1], [0, 0, 1, 1], [], []>} : vector<8x64xf32>, vector<64x128xf32>, vector<8x128xf32> -> vector<8x128xf32>
    %38 = vector.extract_strided_slice %13 {offsets = [0, 64], sizes = [8, 64], strides = [1, 1]} : vector<8x128xf32> to vector<8x64xf32>
    %39 = vector.extract_strided_slice %14 {offsets = [0, 64], sizes = [8, 64], strides = [1, 1]} : vector<8x128xf32> to vector<8x64xf32>
    %40 = vector.extract_strided_slice %15 {offsets = [0, 64], sizes = [8, 64], strides = [1, 1]} : vector<8x128xf32> to vector<8x64xf32>
    %cst_19 = arith.constant dense<0.000000e+00> : vector<8x8xf32>
    %41 = tpu.matmul %38, %39, %cst_19 {dimension_numbers = #tpu.dot_dimension_numbers<[1], [1], [0], [0], [0, 0, 1, 0], [], []>} : vector<8x64xf32>, vector<8x64xf32>, vector<8x8xf32> -> vector<8x8xf32>
    %cst_20 = arith.constant 1.250000e-01 : f32
    %42 = vector.broadcast %cst_20 : f32 to vector<8x8xf32>
    %43 = arith.mulf %41, %42 : vector<8x8xf32>
    %44 = vector.broadcast %7 : vector<1x8xf32> to vector<8x8xf32>
    %45 = arith.addf %43, %44 : vector<8x8xf32>
    %cst_21 = arith.constant dense<0xFF800000> : vector<8xf32>
    %46 = vector.multi_reduction <maximumf>, %45, %cst_21 [1] : vector<8x8xf32> to vector<8xf32>
    %47 = vector.shape_cast %46 : vector<8xf32> to vector<8x1xf32>
    %48 = vector.broadcast %47 : vector<8x1xf32> to vector<8x8xf32>
    %49 = arith.subf %45, %48 : vector<8x8xf32>
    %50 = math.exp %49 : vector<8x8xf32>
    %cst_22 = arith.constant dense<0.000000e+00> : vector<8xf32>
    %51 = vector.multi_reduction <add>, %50, %cst_22 [1] : vector<8x8xf32> to vector<8xf32>
    %52 = vector.shape_cast %51 : vector<8xf32> to vector<8x1xf32>
    %53 = tpu.reciprocal %52 {approx = true} : vector<8x1xf32> -> vector<8x1xf32>
    %54 = vector.broadcast %53 : vector<8x1xf32> to vector<8x8xf32>
    %55 = arith.mulf %50, %54 : vector<8x8xf32>
    %cst_23 = arith.constant dense<0.000000e+00> : vector<8x64xf32>
    %56 = tpu.matmul %55, %40, %cst_23 {dimension_numbers = #tpu.dot_dimension_numbers<[1], [0], [0], [1], [0, 0, 1, 1], [], []>} : vector<8x8xf32>, vector<8x64xf32>, vector<8x64xf32> -> vector<8x64xf32>
    %57 = vector.extract_strided_slice %16 {offsets = [64, 0], sizes = [64, 128], strides = [1, 1]} : vector<128x128xf32> to vector<64x128xf32>
    %cst_24 = arith.constant dense<0.000000e+00> : vector<8x128xf32>
    %58 = tpu.matmul %56, %57, %cst_24 {dimension_numbers = #tpu.dot_dimension_numbers<[1], [0], [0], [1], [0, 0, 1, 1], [], []>} : vector<8x64xf32>, vector<64x128xf32>, vector<8x128xf32> -> vector<8x128xf32>
    %59 = arith.addf %37, %58 : vector<8x128xf32>
    %c0_25 = arith.constant 0 : index
    %c0_26 = arith.constant 0 : index
    %60 = vector.load %arg6[%c0_25, %c0_26] : memref<1x128xf32, #tpu.memory_space<vmem>>, vector<1x128xf32>
    %61 = vector.broadcast %60 : vector<1x128xf32> to vector<8x128xf32>
    %62 = arith.addf %59, %61 : vector<8x128xf32>
    %63 = arith.addf %1, %62 : vector<8x128xf32>
    %c0_27 = arith.constant 0 : index
    %c0_28 = arith.constant 0 : index
    %64 = vector.load %arg7[%c0_27, %c0_28] : memref<1x128xf32, #tpu.memory_space<vmem>>, vector<1x128xf32>
    %c0_29 = arith.constant 0 : index
    %c0_30 = arith.constant 0 : index
    %65 = vector.load %arg8[%c0_29, %c0_30] : memref<1x128xf32, #tpu.memory_space<vmem>>, vector<1x128xf32>
    %cst_31 = arith.constant dense<0.000000e+00> : vector<8xf32>
    %66 = vector.multi_reduction <add>, %63, %cst_31 [1] : vector<8x128xf32> to vector<8xf32>
    %67 = vector.shape_cast %66 : vector<8xf32> to vector<8x1xf32>
    %cst_32 = arith.constant 1.280000e+02 : f32
    %68 = vector.broadcast %cst_32 : f32 to vector<8x1xf32>
    %69 = arith.divf %67, %68 : vector<8x1xf32>
    %70 = vector.broadcast %69 : vector<8x1xf32> to vector<8x128xf32>
    %71 = arith.subf %63, %70 : vector<8x128xf32>
    %72 = arith.mulf %71, %71 : vector<8x128xf32>
    %cst_33 = arith.constant dense<0.000000e+00> : vector<8xf32>
    %73 = vector.multi_reduction <add>, %72, %cst_33 [1] : vector<8x128xf32> to vector<8xf32>
    %74 = vector.shape_cast %73 : vector<8xf32> to vector<8x1xf32>
    %cst_34 = arith.constant 1.280000e+02 : f32
    %75 = vector.broadcast %cst_34 : f32 to vector<8x1xf32>
    %76 = arith.divf %74, %75 : vector<8x1xf32>
    %77 = vector.broadcast %69 : vector<8x1xf32> to vector<8x128xf32>
    %78 = arith.subf %63, %77 : vector<8x128xf32>
    %cst_35 = arith.constant 9.99999996E-13 : f32
    %79 = vector.broadcast %cst_35 : f32 to vector<8x1xf32>
    %80 = arith.addf %76, %79 : vector<8x1xf32>
    %81 = math.rsqrt %80 : vector<8x1xf32>
    %82 = vector.broadcast %81 : vector<8x1xf32> to vector<8x128xf32>
    %83 = arith.mulf %78, %82 : vector<8x128xf32>
    %84 = vector.broadcast %64 : vector<1x128xf32> to vector<8x128xf32>
    %85 = arith.mulf %83, %84 : vector<8x128xf32>
    %86 = vector.broadcast %65 : vector<1x128xf32> to vector<8x128xf32>
    %87 = arith.addf %85, %86 : vector<8x128xf32>
    %c0_36 = arith.constant 0 : index
    %c0_37 = arith.constant 0 : index
    %88 = vector.load %arg9[%c0_36, %c0_37] : memref<128x512xf32, #tpu.memory_space<vmem>>, vector<128x512xf32>
    %cst_38 = arith.constant dense<0.000000e+00> : vector<8x512xf32>
    %89 = tpu.matmul %87, %88, %cst_38 {dimension_numbers = #tpu.dot_dimension_numbers<[1], [0], [0], [1], [0, 0, 1, 1], [], []>} : vector<8x128xf32>, vector<128x512xf32>, vector<8x512xf32> -> vector<8x512xf32>
    %c0_39 = arith.constant 0 : index
    %c0_40 = arith.constant 0 : index
    %90 = vector.load %arg10[%c0_39, %c0_40] : memref<1x512xf32, #tpu.memory_space<vmem>>, vector<1x512xf32>
    %91 = vector.broadcast %90 : vector<1x512xf32> to vector<8x512xf32>
    %92 = arith.addf %89, %91 : vector<8x512xf32>
    %cst_41 = arith.constant 5.000000e-01 : f32
    %93 = vector.broadcast %cst_41 : f32 to vector<8x512xf32>
    %94 = arith.mulf %93, %92 : vector<8x512xf32>
    %cst_42 = arith.constant 0.707106769 : f32
    %95 = vector.broadcast %cst_42 : f32 to vector<8x512xf32>
    %96 = arith.mulf %92, %95 : vector<8x512xf32>
    %97 = math.erf %96 : vector<8x512xf32>
    %cst_43 = arith.constant 1.000000e+00 : f32
    %98 = vector.broadcast %cst_43 : f32 to vector<8x512xf32>
    %99 = arith.addf %98, %97 : vector<8x512xf32>
    %100 = arith.mulf %94, %99 : vector<8x512xf32>
    %c0_44 = arith.constant 0 : index
    %c0_45 = arith.constant 0 : index
    %101 = vector.load %arg11[%c0_44, %c0_45] : memref<512x128xf32, #tpu.memory_space<vmem>>, vector<512x128xf32>
    %cst_46 = arith.constant dense<0.000000e+00> : vector<8x128xf32>
    %102 = tpu.matmul %100, %101, %cst_46 {dimension_numbers = #tpu.dot_dimension_numbers<[1], [0], [0], [1], [0, 0, 1, 1], [], []>} : vector<8x512xf32>, vector<512x128xf32>, vector<8x128xf32> -> vector<8x128xf32>
    %c0_47 = arith.constant 0 : index
    %c0_48 = arith.constant 0 : index
    %103 = vector.load %arg12[%c0_47, %c0_48] : memref<1x128xf32, #tpu.memory_space<vmem>>, vector<1x128xf32>
    %104 = vector.broadcast %103 : vector<1x128xf32> to vector<8x128xf32>
    %105 = arith.addf %102, %104 : vector<8x128xf32>
    %106 = arith.addf %87, %105 : vector<8x128xf32>
    %c0_49 = arith.constant 0 : index
    %c0_50 = arith.constant 0 : index
    %107 = vector.load %arg13[%c0_49, %c0_50] : memref<1x128xf32, #tpu.memory_space<vmem>>, vector<1x128xf32>
    %c0_51 = arith.constant 0 : index
    %c0_52 = arith.constant 0 : index
    %108 = vector.load %arg14[%c0_51, %c0_52] : memref<1x128xf32, #tpu.memory_space<vmem>>, vector<1x128xf32>
    %cst_53 = arith.constant dense<0.000000e+00> : vector<8xf32>
    %109 = vector.multi_reduction <add>, %106, %cst_53 [1] : vector<8x128xf32> to vector<8xf32>
    %110 = vector.shape_cast %109 : vector<8xf32> to vector<8x1xf32>
    %cst_54 = arith.constant 1.280000e+02 : f32
    %111 = vector.broadcast %cst_54 : f32 to vector<8x1xf32>
    %112 = arith.divf %110, %111 : vector<8x1xf32>
    %113 = vector.broadcast %112 : vector<8x1xf32> to vector<8x128xf32>
    %114 = arith.subf %106, %113 : vector<8x128xf32>
    %115 = arith.mulf %114, %114 : vector<8x128xf32>
    %cst_55 = arith.constant dense<0.000000e+00> : vector<8xf32>
    %116 = vector.multi_reduction <add>, %115, %cst_55 [1] : vector<8x128xf32> to vector<8xf32>
    %117 = vector.shape_cast %116 : vector<8xf32> to vector<8x1xf32>
    %cst_56 = arith.constant 1.280000e+02 : f32
    %118 = vector.broadcast %cst_56 : f32 to vector<8x1xf32>
    %119 = arith.divf %117, %118 : vector<8x1xf32>
    %120 = vector.broadcast %112 : vector<8x1xf32> to vector<8x128xf32>
    %121 = arith.subf %106, %120 : vector<8x128xf32>
    %cst_57 = arith.constant 9.99999996E-13 : f32
    %122 = vector.broadcast %cst_57 : f32 to vector<8x1xf32>
    %123 = arith.addf %119, %122 : vector<8x1xf32>
    %124 = math.rsqrt %123 : vector<8x1xf32>
    %125 = vector.broadcast %124 : vector<8x1xf32> to vector<8x128xf32>
    %126 = arith.mulf %121, %125 : vector<8x128xf32>
    %127 = vector.broadcast %107 : vector<1x128xf32> to vector<8x128xf32>
    %128 = arith.mulf %126, %127 : vector<8x128xf32>
    %129 = vector.broadcast %108 : vector<1x128xf32> to vector<8x128xf32>
    %130 = arith.addf %128, %129 : vector<8x128xf32>
    %c0_58 = arith.constant 0 : index
    %c0_59 = arith.constant 0 : index
    %c0_60 = arith.constant 0 : index
    %131 = vector.load %arg15[%c0_58, %c0_59, %c0_60] : memref<1x8x128xf32, #tpu.memory_space<vmem>>, vector<1x8x128xf32>
    %132 = vector.shape_cast %131 : vector<1x8x128xf32> to vector<8x128xf32>
    %133 = vector.shape_cast %130 : vector<8x128xf32> to vector<1x8x128xf32>
    tpu.vector_store %arg15[%c0_58, %c0_59, %c0_60], %133 {strides = array<i32>} : memref<1x8x128xf32, #tpu.memory_space<vmem>>, vector<1x8x128xf32>,
    return
  }
  func.func @transform_0(%arg0: i32) -> (i32, i32, i32) {
    %c0_i32 = arith.constant 0 : i32
    %c0_i32_0 = arith.constant 0 : i32
    %c0_i32_1 = arith.constant 0 : i32
    return %arg0, %c0_i32, %c0_i32_0 : i32, i32, i32
  }
  func.func @transform_1(%arg0: i32) -> (i32, i32, i32) {
    %c0_i32 = arith.constant 0 : i32
    %c0_i32_0 = arith.constant 0 : i32
    %c0_i32_1 = arith.constant 0 : i32
    return %arg0, %c0_i32, %c0_i32_0 : i32, i32, i32
  }
  func.func @transform_2(%arg0: i32) -> (i32, i32) {
    %c0_i32 = arith.constant 0 : i32
    %c0_i32_0 = arith.constant 0 : i32
    %c0_i32_1 = arith.constant 0 : i32
    return %c0_i32, %c0_i32_0 : i32, i32
  }
  func.func @transform_3(%arg0: i32) -> (i32, i32) {
    %c0_i32 = arith.constant 0 : i32
    %c0_i32_0 = arith.constant 0 : i32
    %c0_i32_1 = arith.constant 0 : i32
    return %c0_i32, %c0_i32_0 : i32, i32
  }
  func.func @transform_4(%arg0: i32) -> (i32, i32) {
    %c0_i32 = arith.constant 0 : i32
    %c0_i32_0 = arith.constant 0 : i32
    %c0_i32_1 = arith.constant 0 : i32
    return %c0_i32, %c0_i32_0 : i32, i32
  }
  func.func @transform_5(%arg0: i32) -> (i32, i32) {
    %c0_i32 = arith.constant 0 : i32
    %c0_i32_0 = arith.constant 0 : i32
    %c0_i32_1 = arith.constant 0 : i32
    return %c0_i32, %c0_i32_0 : i32, i32
  }
  func.func @transform_6(%arg0: i32) -> (i32, i32) {
    %c0_i32 = arith.constant 0 : i32
    %c0_i32_0 = arith.constant 0 : i32
    %c0_i32_1 = arith.constant 0 : i32
    return %c0_i32, %c0_i32_0 : i32, i32
  }
  func.func @transform_7(%arg0: i32) -> (i32, i32) {
    %c0_i32 = arith.constant 0 : i32
    %c0_i32_0 = arith.constant 0 : i32
    %c0_i32_1 = arith.constant 0 : i32
    return %c0_i32, %c0_i32_0 : i32, i32
  }
  func.func @transform_8(%arg0: i32) -> (i32, i32) {
    %c0_i32 = arith.constant 0 : i32
    %c0_i32_0 = arith.constant 0 : i32
    %c0_i32_1 = arith.constant 0 : i32
    return %c0_i32, %c0_i32_0 : i32, i32
  }
  func.func @transform_9(%arg0: i32) -> (i32, i32) {
    %c0_i32 = arith.constant 0 : i32
    %c0_i32_0 = arith.constant 0 : i32
    %c0_i32_1 = arith.constant 0 : i32
    return %c0_i32, %c0_i32_0 : i32, i32
  }
  func.func @transform_10(%arg0: i32) -> (i32, i32) {
    %c0_i32 = arith.constant 0 : i32
    %c0_i32_0 = arith.constant 0 : i32
    %c0_i32_1 = arith.constant 0 : i32
    return %c0_i32, %c0_i32_0 : i32, i32
  }
  func.func @transform_11(%arg0: i32) -> (i32, i32) {
    %c0_i32 = arith.constant 0 : i32
    %c0_i32_0 = arith.constant 0 : i32
    %c0_i32_1 = arith.constant 0 : i32
    return %c0_i32, %c0_i32_0 : i32, i32
  }
  func.func @transform_12(%arg0: i32) -> (i32, i32) {
    %c0_i32 = arith.constant 0 : i32
    %c0_i32_0 = arith.constant 0 : i32
    %c0_i32_1 = arith.constant 0 : i32
    return %c0_i32, %c0_i32_0 : i32, i32
  }
  func.func @transform_13(%arg0: i32) -> (i32, i32) {
    %c0_i32 = arith.constant 0 : i32
    %c0_i32_0 = arith.constant 0 : i32
    %c0_i32_1 = arith.constant 0 : i32
    return %c0_i32, %c0_i32_0 : i32, i32
  }
  func.func @transform_14(%arg0: i32) -> (i32, i32, i32) {
    %c0_i32 = arith.constant 0 : i32
    %c0_i32_0 = arith.constant 0 : i32
    %c0_i32_1 = arith.constant 0 : i32
    return %arg0, %c0_i32, %c0_i32_0 : i32, i32, i32
  }
}

module attributes {stable_mosaic.version = 11 : i64} {
  func.func @_layer_kernel(%arg0: i32, %arg1: memref<1x8x128xf32, #tpu.memory_space<vmem>>, %arg2: memref<1x1x8xf32, #tpu.memory_space<vmem>>, %arg3: memref<128x384xf32, #tpu.memory_space<vmem>>, %arg4: memref<1x384xf32, #tpu.memory_space<vmem>>, %arg5: memref<128x128xf32, #tpu.memory_space<vmem>>, %arg6: memref<1x128xf32, #tpu.memory_space<vmem>>, %arg7: memref<1x128xf32, #tpu.memory_space<vmem>>, %arg8: memref<1x128xf32, #tpu.memory_space<vmem>>, %arg9: memref<128x512xf32, #tpu.memory_space<vmem>>, %arg10: memref<1x512xf32, #tpu.memory_space<vmem>>, %arg11: memref<512x128xf32, #tpu.memory_space<vmem>>, %arg12: memref<1x128xf32, #tpu.memory_space<vmem>>, %arg13: memref<1x128xf32, #tpu.memory_space<vmem>>, %arg14: memref<1x128xf32, #tpu.memory_space<vmem>>, %arg15: memref<1x8x128xf32, #tpu.memory_space<vmem>>) attributes {dimension_semantics = [#tpu.dimension_semantics<parallel>], iteration_bounds = array<i64: 2>, scalar_prefetch = 0 : i64, scratch_operands = 0 : i64, tpu.core_type = #tpu.core_type<tc>, window_params = [{transform_indices = @transform_0, window_bounds = array<i64: 1, 8, 128>}, {transform_indices = @transform_1, window_bounds = array<i64: 1, 1, 8>}, {pipeline_mode = #tpu.pipeline_mode<synchronous>, transform_indices = @transform_2, window_bounds = array<i64: 128, 384>}, {pipeline_mode = #tpu.pipeline_mode<synchronous>, transform_indices = @transform_3, window_bounds = array<i64: 1, 384>}, {pipeline_mode = #tpu.pipeline_mode<synchronous>, transform_indices = @transform_4, window_bounds = array<i64: 128, 128>}, {pipeline_mode = #tpu.pipeline_mode<synchronous>, transform_indices = @transform_5, window_bounds = array<i64: 1, 128>}, {pipeline_mode = #tpu.pipeline_mode<synchronous>, transform_indices = @transform_6, window_bounds = array<i64: 1, 128>}, {pipeline_mode = #tpu.pipeline_mode<synchronous>, transform_indices = @transform_7, window_bounds = array<i64: 1, 128>}, {pipeline_mode = #tpu.pipeline_mode<synchronous>, transform_indices = @transform_8, window_bounds = array<i64: 128, 512>}, {pipeline_mode = #tpu.pipeline_mode<synchronous>, transform_indices = @transform_9, window_bounds = array<i64: 1, 512>}, {pipeline_mode = #tpu.pipeline_mode<synchronous>, transform_indices = @transform_10, window_bounds = array<i64: 512, 128>}, {pipeline_mode = #tpu.pipeline_mode<synchronous>, transform_indices = @transform_11, window_bounds = array<i64: 1, 128>}, {pipeline_mode = #tpu.pipeline_mode<synchronous>, transform_indices = @transform_12, window_bounds = array<i64: 1, 128>}, {pipeline_mode = #tpu.pipeline_mode<synchronous>, transform_indices = @transform_13, window_bounds = array<i64: 1, 128>}, {transform_indices = @transform_14, window_bounds = array<i64: 1, 8, 128>}]} {
    %c0 = arith.constant 0 : index
    %c0_0 = arith.constant 0 : index
    %c0_1 = arith.constant 0 : index
    %0 = vector.load %arg1[%c0, %c0_0, %c0_1] : memref<1x8x128xf32, #tpu.memory_space<vmem>>, vector<1x8x128xf32>
    %1 = vector.shape_cast %0 : vector<1x8x128xf32> to vector<8x128xf32>
    %c0_2 = arith.constant 0 : index
    %c0_3 = arith.constant 0 : index
    %c0_4 = arith.constant 0 : index
    %2 = vector.load %arg2[%c0_2, %c0_3, %c0_4] : memref<1x1x8xf32, #tpu.memory_space<vmem>>, vector<1x1x8xf32>
    %3 = vector.shape_cast %2 : vector<1x1x8xf32> to vector<1x8xf32>
    %cst = arith.constant 1.000000e+00 : f32
    %4 = vector.broadcast %cst : f32 to vector<1x8xf32>
    %5 = arith.subf %4, %3 : vector<1x8xf32>
    %cst_5 = arith.constant -1.000000e+04 : f32
    %6 = vector.broadcast %cst_5 : f32 to vector<1x8xf32>
    %7 = arith.mulf %5, %6 : vector<1x8xf32>
    %c0_6 = arith.constant 0 : index
    %c0_7 = arith.constant 0 : index
    %8 = vector.load %arg3[%c0_6, %c0_7] : memref<128x384xf32, #tpu.memory_space<vmem>>, vector<128x384xf32>
    %cst_8 = arith.constant dense<0.000000e+00> : vector<8x384xf32>
    %9 = tpu.matmul %1, %8, %cst_8 {dimension_numbers = #tpu.dot_dimension_numbers<[1], [0], [0], [1], [0, 0, 1, 1], [], []>} : vector<8x128xf32>, vector<128x384xf32>, vector<8x384xf32> -> vector<8x384xf32>
    %c0_9 = arith.constant 0 : index
    %c0_10 = arith.constant 0 : index
    %10 = vector.load %arg4[%c0_9, %c0_10] : memref<1x384xf32, #tpu.memory_space<vmem>>, vector<1x384xf32>
    %11 = vector.broadcast %10 : vector<1x384xf32> to vector<8x384xf32>
    %12 = arith.addf %9, %11 : vector<8x384xf32>
    %13 = vector.extract_strided_slice %12 {offsets = [0, 0], sizes = [8, 128], strides = [1, 1]} : vector<8x384xf32> to vector<8x128xf32>
    %14 = vector.extract_strided_slice %12 {offsets = [0, 128], sizes = [8, 128], strides = [1, 1]} : vector<8x384xf32> to vector<8x128xf32>
    %15 = vector.extract_strided_slice %12 {offsets = [0, 256], sizes = [8, 128], strides = [1, 1]} : vector<8x384xf32> to vector<8x128xf32>
    %c0_11 = arith.constant 0 : index
    %c0_12 = arith.constant 0 : index
    %16 = vector.load %arg5[%c0_11, %c0_12] : memref<128x128xf32, #tpu.memory_space<vmem>>, vector<128x128xf32>
    %17 = vector.extract_strided_slice %13 {offsets = [0, 0], sizes = [8, 64], strides = [1, 1]} : vector<8x128xf32> to vector<8x64xf32>
    %18 = vector.extract_strided_slice %14 {offsets = [0, 0], sizes = [8, 64], strides = [1, 1]} : vector<8x128xf32> to vector<8x64xf32>
    %19 = vector.extract_strided_slice %15 {offsets = [0, 0], sizes = [8, 64], strides = [1, 1]} : vector<8x128xf32> to vector<8x64xf32>
    %cst_13 = arith.constant dense<0.000000e+00> : vector<8x8xf32>
    %20 = tpu.matmul %17, %18, %cst_13 {dimension_numbers = #tpu.dot_dimension_numbers<[1], [1], [0], [0], [0, 0, 1, 0], [], []>} : vector<8x64xf32>, vector<8x64xf32>, vector<8x8xf32> -> vector<8x8xf32>
    %cst_14 = arith.constant 1.250000e-01 : f32
    %21 = vector.broadcast %cst_14 : f32 to vector<8x8xf32>
    %22 = arith.mulf %20, %21 : vector<8x8xf32>
    %23 = vector.broadcast %7 : vector<1x8xf32> to vector<8x8xf32>
    %24 = arith.addf %22, %23 : vector<8x8xf32>
    %cst_15 = arith.constant dense<0xFF800000> : vector<8xf32>
    %25 = vector.multi_reduction <maximumf>, %24, %cst_15 [1] : vector<8x8xf32> to vector<8xf32>
    %26 = vector.shape_cast %25 : vector<8xf32> to vector<8x1xf32>
    %27 = vector.broadcast %26 : vector<8x1xf32> to vector<8x8xf32>
    %28 = arith.subf %24, %27 : vector<8x8xf32>
    %29 = math.exp %28 : vector<8x8xf32>
    %cst_16 = arith.constant dense<0.000000e+00> : vector<8xf32>
    %30 = vector.multi_reduction <add>, %29, %cst_16 [1] : vector<8x8xf32> to vector<8xf32>
    %31 = vector.shape_cast %30 : vector<8xf32> to vector<8x1xf32>
    %32 = tpu.reciprocal %31 {approx = true} : vector<8x1xf32> -> vector<8x1xf32>
    %33 = vector.broadcast %32 : vector<8x1xf32> to vector<8x8xf32>
    %34 = arith.mulf %29, %33 : vector<8x8xf32>
    %cst_17 = arith.constant dense<0.000000e+00> : vector<8x64xf32>
    %35 = tpu.matmul %34, %19, %cst_17 {dimension_numbers = #tpu.dot_dimension_numbers<[1], [0], [0], [1], [0, 0, 1, 1], [], []>} : vector<8x8xf32>, vector<8x64xf32>, vector<8x64xf32> -> vector<8x64xf32>
    %36 = vector.extract_strided_slice %16 {offsets = [0, 0], sizes = [64, 128], strides = [1, 1]} : vector<128x128xf32> to vector<64x128xf32>
    %cst_18 = arith.constant dense<0.000000e+00> : vector<8x128xf32>
    %37 = tpu.matmul %35, %36, %cst_18 {dimension_numbers = #tpu.dot_dimension_numbers<[1], [0], [0], [1], [0, 0, 1, 1], [], []>} : vector<8x64xf32>, vector<64x128xf32>, vector<8x128xf32> -> vector<8x128xf32>
    %38 = vector.extract_strided_slice %13 {offsets = [0, 64], sizes = [8, 64], strides = [1, 1]} : vector<8x128xf32> to vector<8x64xf32>
    %39 = vector.extract_strided_slice %14 {offsets = [0, 64], sizes = [8, 64], strides = [1, 1]} : vector<8x128xf32> to vector<8x64xf32>
    %40 = vector.extract_strided_slice %15 {offsets = [0, 64], sizes = [8, 64], strides = [1, 1]} : vector<8x128xf32> to vector<8x64xf32>
    %cst_19 = arith.constant dense<0.000000e+00> : vector<8x8xf32>
    %41 = tpu.matmul %38, %39, %cst_19 {dimension_numbers = #tpu.dot_dimension_numbers<[1], [1], [0], [0], [0, 0, 1, 0], [], []>} : vector<8x64xf32>, vector<8x64xf32>, vector<8x8xf32> -> vector<8x8xf32>
    %cst_20 = arith.constant 1.250000e-01 : f32
    %42 = vector.broadcast %cst_20 : f32 to vector<8x8xf32>
    %43 = arith.mulf %41, %42 : vector<8x8xf32>
    %44 = vector.broadcast %7 : vector<1x8xf32> to vector<8x8xf32>
    %45 = arith.addf %43, %44 : vector<8x8xf32>
    %cst_21 = arith.constant dense<0xFF800000> : vector<8xf32>
    %46 = vector.multi_reduction <maximumf>, %45, %cst_21 [1] : vector<8x8xf32> to vector<8xf32>
    %47 = vector.shape_cast %46 : vector<8xf32> to vector<8x1xf32>
    %48 = vector.broadcast %47 : vector<8x1xf32> to vector<8x8xf32>
    %49 = arith.subf %45, %48 : vector<8x8xf32>
    %50 = math.exp %49 : vector<8x8xf32>
    %cst_22 = arith.constant dense<0.000000e+00> : vector<8xf32>
    %51 = vector.multi_reduction <add>, %50, %cst_22 [1] : vector<8x8xf32> to vector<8xf32>
    %52 = vector.shape_cast %51 : vector<8xf32> to vector<8x1xf32>
    %53 = tpu.reciprocal %52 {approx = true} : vector<8x1xf32> -> vector<8x1xf32>
    %54 = vector.broadcast %53 : vector<8x1xf32> to vector<8x8xf32>
    %55 = arith.mulf %50, %54 : vector<8x8xf32>
    %cst_23 = arith.constant dense<0.000000e+00> : vector<8x64xf32>
    %56 = tpu.matmul %55, %40, %cst_23 {dimension_numbers = #tpu.dot_dimension_numbers<[1], [0], [0], [1], [0, 0, 1, 1], [], []>} : vector<8x8xf32>, vector<8x64xf32>, vector<8x64xf32> -> vector<8x64xf32>
    %57 = vector.extract_strided_slice %16 {offsets = [64, 0], sizes = [64, 128], strides = [1, 1]} : vector<128x128xf32> to vector<64x128xf32>
    %cst_24 = arith.constant dense<0.000000e+00> : vector<8x128xf32>
    %58 = tpu.matmul %56, %57, %cst_24 {dimension_numbers = #tpu.dot_dimension_numbers<[1], [0], [0], [1], [0, 0, 1, 1], [], []>} : vector<8x64xf32>, vector<64x128xf32>, vector<8x128xf32> -> vector<8x128xf32>
    %59 = arith.addf %37, %58 : vector<8x128xf32>
    %c0_25 = arith.constant 0 : index
    %c0_26 = arith.constant 0 : index
    %60 = vector.load %arg6[%c0_25, %c0_26] : memref<1x128xf32, #tpu.memory_space<vmem>>, vector<1x128xf32>
    %61 = vector.broadcast %60 : vector<1x128xf32> to vector<8x128xf32>
    %62 = arith.addf %59, %61 : vector<8x128xf32>
    %63 = arith.addf %1, %62 : vector<8x128xf32>
    %c0_27 = arith.constant 0 : index
    %c0_28 = arith.constant 0 : index
    %64 = vector.load %arg7[%c0_27, %c0_28] : memref<1x128xf32, #tpu.memory_space<vmem>>, vector<1x128xf32>
    %c0_29 = arith.constant 0 : index
    %c0_30 = arith.constant 0 : index
    %65 = vector.load %arg8[%c0_29, %c0_30] : memref<1x128xf32, #tpu.memory_space<vmem>>, vector<1x128xf32>
    %cst_31 = arith.constant dense<0.000000e+00> : vector<8xf32>
    %66 = vector.multi_reduction <add>, %63, %cst_31 [1] : vector<8x128xf32> to vector<8xf32>
    %67 = vector.shape_cast %66 : vector<8xf32> to vector<8x1xf32>
    %cst_32 = arith.constant 1.280000e+02 : f32
    %68 = vector.broadcast %cst_32 : f32 to vector<8x1xf32>
    %69 = arith.divf %67, %68 : vector<8x1xf32>
    %70 = vector.broadcast %69 : vector<8x1xf32> to vector<8x128xf32>
    %71 = arith.subf %63, %70 : vector<8x128xf32>
    %72 = arith.mulf %71, %71 : vector<8x128xf32>
    %cst_33 = arith.constant dense<0.000000e+00> : vector<8xf32>
    %73 = vector.multi_reduction <add>, %72, %cst_33 [1] : vector<8x128xf32> to vector<8xf32>
    %74 = vector.shape_cast %73 : vector<8xf32> to vector<8x1xf32>
    %cst_34 = arith.constant 1.280000e+02 : f32
    %75 = vector.broadcast %cst_34 : f32 to vector<8x1xf32>
    %76 = arith.divf %74, %75 : vector<8x1xf32>
    %77 = vector.broadcast %69 : vector<8x1xf32> to vector<8x128xf32>
    %78 = arith.subf %63, %77 : vector<8x128xf32>
    %cst_35 = arith.constant 9.99999996E-13 : f32
    %79 = vector.broadcast %cst_35 : f32 to vector<8x1xf32>
    %80 = arith.addf %76, %79 : vector<8x1xf32>
    %81 = math.rsqrt %80 : vector<8x1xf32>
    %82 = vector.broadcast %81 : vector<8x1xf32> to vector<8x128xf32>
    %83 = arith.mulf %78, %82 : vector<8x128xf32>
    %84 = vector.broadcast %64 : vector<1x128xf32> to vector<8x128xf32>
    %85 = arith.mulf %83, %84 : vector<8x128xf32>
    %86 = vector.broadcast %65 : vector<1x128xf32> to vector<8x128xf32>
    %87 = arith.addf %85, %86 : vector<8x128xf32>
    %c0_36 = arith.constant 0 : index
    %c0_37 = arith.constant 0 : index
    %88 = vector.load %arg9[%c0_36, %c0_37] : memref<128x512xf32, #tpu.memory_space<vmem>>, vector<128x512xf32>
    %cst_38 = arith.constant dense<0.000000e+00> : vector<8x512xf32>
    %89 = tpu.matmul %87, %88, %cst_38 {dimension_numbers = #tpu.dot_dimension_numbers<[1], [0], [0], [1], [0, 0, 1, 1], [], []>} : vector<8x128xf32>, vector<128x512xf32>, vector<8x512xf32> -> vector<8x512xf32>
    %c0_39 = arith.constant 0 : index
    %c0_40 = arith.constant 0 : index
    %90 = vector.load %arg10[%c0_39, %c0_40] : memref<1x512xf32, #tpu.memory_space<vmem>>, vector<1x512xf32>
    %91 = vector.broadcast %90 : vector<1x512xf32> to vector<8x512xf32>
    %92 = arith.addf %89, %91 : vector<8x512xf32>
    %cst_41 = arith.constant 5.000000e-01 : f32
    %93 = vector.broadcast %cst_41 : f32 to vector<8x512xf32>
    %94 = arith.mulf %93, %92 : vector<8x512xf32>
    %cst_42 = arith.constant 0.707106769 : f32
    %95 = vector.broadcast %cst_42 : f32 to vector<8x512xf32>
    %96 = arith.mulf %92, %95 : vector<8x512xf32>
    %97 = math.erf %96 : vector<8x512xf32>
    %cst_43 = arith.constant 1.000000e+00 : f32
    %98 = vector.broadcast %cst_43 : f32 to vector<8x512xf32>
    %99 = arith.addf %98, %97 : vector<8x512xf32>
    %100 = arith.mulf %94, %99 : vector<8x512xf32>
    %c0_44 = arith.constant 0 : index
    %c0_45 = arith.constant 0 : index
    %101 = vector.load %arg11[%c0_44, %c0_45] : memref<512x128xf32, #tpu.memory_space<vmem>>, vector<512x128xf32>
    %cst_46 = arith.constant dense<0.000000e+00> : vector<8x128xf32>
    %102 = tpu.matmul %100, %101, %cst_46 {dimension_numbers = #tpu.dot_dimension_numbers<[1], [0], [0], [1], [0, 0, 1, 1], [], []>} : vector<8x512xf32>, vector<512x128xf32>, vector<8x128xf32> -> vector<8x128xf32>
    %c0_47 = arith.constant 0 : index
    %c0_48 = arith.constant 0 : index
    %103 = vector.load %arg12[%c0_47, %c0_48] : memref<1x128xf32, #tpu.memory_space<vmem>>, vector<1x128xf32>
    %104 = vector.broadcast %103 : vector<1x128xf32> to vector<8x128xf32>
    %105 = arith.addf %102, %104 : vector<8x128xf32>
    %106 = arith.addf %87, %105 : vector<8x128xf32>
    %c0_49 = arith.constant 0 : index
    %c0_50 = arith.constant 0 : index
    %107 = vector.load %arg13[%c0_49, %c0_50] : memref<1x128xf32, #tpu.memory_space<vmem>>, vector<1x128xf32>
    %c0_51 = arith.constant 0 : index
    %c0_52 = arith.constant 0 : index
    %108 = vector.load %arg14[%c0_51, %c0_52] : memref<1x128xf32, #tpu.memory_space<vmem>>, vector<1x128xf32>
    %cst_53 = arith.constant dense<0.000000e+00> : vector<8xf32>
    %109 = vector.multi_reduction <add>, %106, %cst_53 [1] : vector<8x128xf32> to vector<8xf32>
    %110 = vector.shape_cast %109 : vector<8xf32> to vector<8x1xf32>
    %cst_54 = arith.constant 1.280000e+02 : f32
    %111 = vector.broadcast %cst_54 : f32 to vector<8x1xf32>
    %112 = arith.divf %110, %111 : vector<8x1xf32>
    %113 = vector.broadcast %112 : vector<8x1xf32> to vector<8x128xf32>
    %114 = arith.subf %106, %113 : vector<8x128xf32>
    %115 = arith.mulf %114, %114 : vector<8x128xf32>
    %cst_55 = arith.constant dense<0.000000e+00> : vector<8xf32>
    %116 = vector.multi_reduction <add>, %115, %cst_55 [1] : vector<8x128xf32> to vector<8xf32>
    %117 = vector.shape_cast %116 : vector<8xf32> to vector<8x1xf32>
    %cst_56 = arith.constant 1.280000e+02 : f32
    %118 = vector.broadcast %cst_56 : f32 to vector<8x1xf32>
    %119 = arith.divf %117, %118 : vector<8x1xf32>
    %120 = vector.broadcast %112 : vector<8x1xf32> to vector<8x128xf32>
    %121 = arith.subf %106, %120 : vector<8x128xf32>
    %cst_57 = arith.constant 9.99999996E-13 : f32
    %122 = vector.broadcast %cst_57 : f32 to vector<8x1xf32>
    %123 = arith.addf %119, %122 : vector<8x1xf32>
    %124 = math.rsqrt %123 : vector<8x1xf32>
    %125 = vector.broadcast %124 : vector<8x1xf32> to vector<8x128xf32>
    %126 = arith.mulf %121, %125 : vector<8x128xf32>
    %127 = vector.broadcast %107 : vector<1x128xf32> to vector<8x128xf32>
    %128 = arith.mulf %126, %127 : vector<8x128xf32>
    %129 = vector.broadcast %108 : vector<1x128xf32> to vector<8x128xf32>
    %130 = arith.addf %128, %129 : vector<8x128xf32>
    %c0_58 = arith.constant 0 : index
    %c0_59 = arith.constant 0 : index
    %c0_60 = arith.constant 0 : index
    %131 = vector.load %arg15[%c0_58, %c0_59, %c0_60] : memref<1x8x128xf32, #tpu.memory_space<vmem>>, vector<1x8x128xf32>
    %132 = vector.shape_cast %131 : vector<1x8x128xf32> to vector<8x128xf32>
    %133 = vector.shape_cast %130 : vector<8x128xf32> to vector<1x8x128xf32>
    tpu.vector_store %arg15[%c0_58, %c0_59, %c0_60], %133 {strides = array<i32>} : memref<1x8x128xf32, #tpu.memory_space<vmem>>, vector<1x8x128xf32>,
    return
  }
  func.func @transform_0(%arg0: i32) -> (i32, i32, i32) {
    %c0_i32 = arith.constant 0 : i32
    %c0_i32_0 = arith.constant 0 : i32
    %c0_i32_1 = arith.constant 0 : i32
    return %arg0, %c0_i32, %c0_i32_0 : i32, i32, i32
  }
  func.func @transform_1(%arg0: i32) -> (i32, i32, i32) {
    %c0_i32 = arith.constant 0 : i32
    %c0_i32_0 = arith.constant 0 : i32
    %c0_i32_1 = arith.constant 0 : i32
    return %arg0, %c0_i32, %c0_i32_0 : i32, i32, i32
  }
  func.func @transform_2(%arg0: i32) -> (i32, i32) {
    %c0_i32 = arith.constant 0 : i32
    %c0_i32_0 = arith.constant 0 : i32
    %c0_i32_1 = arith.constant 0 : i32
    return %c0_i32, %c0_i32_0 : i32, i32
  }
  func.func @transform_3(%arg0: i32) -> (i32, i32) {
    %c0_i32 = arith.constant 0 : i32
    %c0_i32_0 = arith.constant 0 : i32
    %c0_i32_1 = arith.constant 0 : i32
    return %c0_i32, %c0_i32_0 : i32, i32
  }
  func.func @transform_4(%arg0: i32) -> (i32, i32) {
    %c0_i32 = arith.constant 0 : i32
    %c0_i32_0 = arith.constant 0 : i32
    %c0_i32_1 = arith.constant 0 : i32
    return %c0_i32, %c0_i32_0 : i32, i32
  }
  func.func @transform_5(%arg0: i32) -> (i32, i32) {
    %c0_i32 = arith.constant 0 : i32
    %c0_i32_0 = arith.constant 0 : i32
    %c0_i32_1 = arith.constant 0 : i32
    return %c0_i32, %c0_i32_0 : i32, i32
  }
  func.func @transform_6(%arg0: i32) -> (i32, i32) {
    %c0_i32 = arith.constant 0 : i32
    %c0_i32_0 = arith.constant 0 : i32
    %c0_i32_1 = arith.constant 0 : i32
    return %c0_i32, %c0_i32_0 : i32, i32
  }
  func.func @transform_7(%arg0: i32) -> (i32, i32) {
    %c0_i32 = arith.constant 0 : i32
    %c0_i32_0 = arith.constant 0 : i32
    %c0_i32_1 = arith.constant 0 : i32
    return %c0_i32, %c0_i32_0 : i32, i32
  }
  func.func @transform_8(%arg0: i32) -> (i32, i32) {
    %c0_i32 = arith.constant 0 : i32
    %c0_i32_0 = arith.constant 0 : i32
    %c0_i32_1 = arith.constant 0 : i32
    return %c0_i32, %c0_i32_0 : i32, i32
  }
  func.func @transform_9(%arg0: i32) -> (i32, i32) {
    %c0_i32 = arith.constant 0 : i32
    %c0_i32_0 = arith.constant 0 : i32
    %c0_i32_1 = arith.constant 0 : i32
    return %c0_i32, %c0_i32_0 : i32, i32
  }
  func.func @transform_10(%arg0: i32) -> (i32, i32) {
    %c0_i32 = arith.constant 0 : i32
    %c0_i32_0 = arith.constant 0 : i32
    %c0_i32_1 = arith.constant 0 : i32
    return %c0_i32, %c0_i32_0 : i32, i32
  }
  func.func @transform_11(%arg0: i32) -> (i32, i32) {
    %c0_i32 = arith.constant 0 : i32
    %c0_i32_0 = arith.constant 0 : i32
    %c0_i32_1 = arith.constant 0 : i32
    return %c0_i32, %c0_i32_0 : i32, i32
  }
  func.func @transform_12(%arg0: i32) -> (i32, i32) {
    %c0_i32 = arith.constant 0 : i32
    %c0_i32_0 = arith.constant 0 : i32
    %c0_i32_1 = arith.constant 0 : i32
    return %c0_i32, %c0_i32_0 : i32, i32
  }
  func.func @transform_13(%arg0: i32) -> (i32, i32) {
    %c0_i32 = arith.constant 0 : i32
    %c0_i32_0 = arith.constant 0 : i32
    %c0_i32_1 = arith.constant 0 : i32
    return %c0_i32, %c0_i32_0 : i32, i32
  }
  func.func @transform_14(%arg0: i32) -> (i32, i32, i32) {
    %c0_i32 = arith.constant 0 : i32
    %c0_i32_0 = arith.constant 0 : i32
    %c0_i32_1 = arith.constant 0 : i32
    return %arg0, %c0_i32, %c0_i32_0 : i32, i32, i32
  }
}

</mosaic_0001>

<bundles_post_ra>
// kernel: bert_forward.7
= control target key start
LH: loop header
LB: loop body
LE: loop exit
PB: predicated region body
PF: predicated region fallthrough
CT: control target
= control target key end

     0   :  { %8 = vsyncpa [#allocation3], 0  ;;  %s186_s0 = inlined_call_operand.vmem [shape: f32[2,128], index: 0, kind: input, shape index: {}]   ;;  %s187_s1 = inlined_call_operand.hbm [shape: f32[128,128], index: 1, kind: input, shape index: {}]   ;;  %s188_s2 = inlined_call_operand.vmem [shape: f32[1,128], index: 2, kind: input, shape index: {}]   ;;  %s189_s3 = inlined_call_operand.hbm [shape: f32[2,128], index: 3, kind: output, shape index: {}]  }
   0x1   :  { %9 = vsyncpa [#allocation4], 0  ;;  %s16_s14 = sshll.u32 %s187_s1, 4  ;;  %s150_s15 = smov [#allocation2]   ;;  %s17_s14 = int_to_ptr.hbm [resolvable:$true] %s16_s14 }
   0x2   :  { %s18_s16 = sshll.u32 %s150_s15, 4  ;;  %s151_s17 = smov 128   ;;  %s19_s16 = int_to_ptr.vmem [resolvable:$true] %s18_s16 }
   0x3   :  { %s152_s18 = smov 8  }
   0x4   :  { %24 = dma.hbm_to_vmem [thread:$0]  %s17_s14, 2048, %s19_s16, [#allocation3], %s151_s17, %s151_s17, %s152_s18  }
   0x5   :  { %146 = dma.done.wait [#allocation3], 2048  }
   0x6   :  { %147 = vsyncadd [#allocation3], 4294965248  ;;  %v47_v0 = vld [vmem:[#allocation2 + $0x78] sm:$0xff]  ;;  %v46_v1 = vld [vmem:[#allocation2 + $0x70] sm:$0xff]  ;;  %s153_s22 = smov [#allocation5]   ;;  %s81_s26 = sshll.u32 %s189_s3, 4  ;;  %s82_s26 = int_to_ptr.hbm [resolvable:$true] %s81_s26 }
   0x7   :  { %52 = vmatpush.msra.mxu0 %v47_v0  ;;  %v45_v2 = vld [vmem:[#allocation2 + $0x68] sm:$0xff]  ;;  %v44_v3 = vld [vmem:[#allocation2 + $0x60] sm:$0xff]  ;;  %v43_v4 = vld [vmem:[#allocation2 + $0x58] sm:$0xff]  ;;  %s79_s23 = sshll.u32 %s153_s22, 4  ;;  %s80_s23 = int_to_ptr.vmem [resolvable:$true] %s79_s23 }
   0x8   :  { %v42_v5 = vld [vmem:[#allocation2 + $0x50] sm:$0xff]  ;;  %v41_v6 = vld [vmem:[#allocation2 + $0x48] sm:$0xff]  ;;  %v40_v7 = vld [vmem:[#allocation2 + $0x40] sm:$0xff] }
   0x9   :  { %53 = vmatpush.msra.mxu0 %v46_v1  ;;  %v39_v8 = vld [vmem:[#allocation2 + $0x38] sm:$0xff]  ;;  %v38_v9 = vld [vmem:[#allocation2 + $0x30] sm:$0xff]  ;;  %v37_v10 = vld [vmem:[#allocation2 + $0x28] sm:$0xff] }
   0xa   :  { %v36_v11 = vld [vmem:[#allocation2 + $0x20] sm:$0xff]  ;;  %v35_v12 = vld [vmem:[#allocation2 + $0x18] sm:$0xff]  ;;  %v34_v13 = vld [vmem:[#allocation2 + $0x10] sm:$0xff] }
   0xb   :  { %54 = vmatpush.msra.mxu0 %v45_v2  ;;  %v33_v14 = vld [vmem:[#allocation2 + $0x8] sm:$0xff]  ;;  %v32_v15 = vld [vmem:[#allocation2] sm:$0xff] }
   0xc   :  { %v31_v16 = vld [vmem:[%s186_s0] sm:$0x3] }
   0xd   :  { %55 = vmatpush.msra.mxu0 %v44_v3  ;;  %v95_v17 = vld [vmem:[%s188_s2] ss:$0 sm:$0xff] }
   0xf   :  { %56 = vmatpush.msra.mxu0 %v43_v4 }
  0x11   :  { %57 = vmatpush.msra.mxu0 %v42_v5 }
  0x13   :  { %58 = vmatpush.msra.mxu0 %v41_v6 }
  0x15   :  { %59 = vmatpush.msra.mxu0 %v40_v7 }
  0x17   :  { %60 = vmatpush.msra.mxu0 %v39_v8 }
  0x19   :  { %61 = vmatpush.msra.mxu0 %v38_v9 }
  0x1b   :  { %62 = vmatpush.msra.mxu0 %v37_v10 }
  0x1d   :  { %63 = vmatpush.msra.mxu0 %v36_v11 }
  0x1f   :  { %64 = vmatpush.msra.mxu0 %v35_v12 }
  0x21   :  { %65 = vmatpush.msra.mxu0 %v34_v13 }
  0x23   :  { %66 = vmatpush.msra.mxu0 %v33_v14 }
  0x25   :  { %67 = vmatpush.msra.mxu0 %v32_v15 }
  0x26   :  { %68 = vmatmul.f32.vlgmr.msra.gmra.mxu0 %v31_v16 }
  0xa3   :  { %v69_v18 = vpop.f32.mrf.mxu0 }
  0xa4   :  { %v70_v19 = vadd.f32 %v95_v17, %v69_v18 }
  0xa6   :  { %96 = vtanh.f32 %v70_v19 }
  0xac   :  { %v97_v20 = vpop.eup %96 }
  0xad   :  { %73 = vst [vmem:[#allocation5] sm:$0x3] %v97_v20 }
  0xae   :  { %84 = dma.vmem_to_hbm [thread:$0]  %s80_s23, 32, %s82_s26, [#allocation4]  }
  0xaf   :  { %148 = dma.done.wait [#allocation4], 32  }
  0xb0   :  { %149 = vsyncadd [#allocation4], 4294967264 }
  0xb1   :  { %89 = vsyncpa [#allocation3], 1 }
  0xb2   :  { %90 = vsyncpa [#allocation4], 1 }

// kernel: bert_forward.4
= control target key start
LH: loop header
LB: loop body
LE: loop exit
PB: predicated region body
PF: predicated region fallthrough
CT: control target
= control target key end

     0   :  { %s311_s12 = smov 0   ;;  %s341_s0 = inlined_call_operand.vmem [shape: f32[2,8,128], index: 0, kind: input, shape index: {}]   ;;  %s342_s1 = inlined_call_operand.vmem [shape: f32[1,128], index: 1, kind: input, shape index: {}]   ;;  %s343_s2 = inlined_call_operand.vmem [shape: f32[1,128], index: 2, kind: input, shape index: {}]   ;;  %s344_s3 = inlined_call_operand.vmem [shape: f32[2,8,128], index: 3, kind: output, shape index: {}]  }
   0x1 LB: > { %s258_s13 = sadd.s32 4294967295, %s288_s12   ;;  %p262_p0 = scmp.ge.s32.totalorder %s288_s12, 1  ;;  %s288_s12 = sphi %s311_s12, %s13_s12  }
   0x2   : > { %p136_p1 = scmp.lt.s32.totalorder %s288_s12, 3 }
   0x4   : > { %p137_p2 = pnand %p262_p0, %p136_p1 }
   0x5   : > { %p158_p3 = scmp.lt.s32.totalorder (!%p137_p2), %s258_s13, 1 }
   0x6   : > { %140 = sbr.rel (%p137_p2) target bundleno = 282 (0x11a), region = 32 }
   0xb   : > { %s346_s13 = smov (!%p158_p3, %s258_s13), 1  ;;  %v290_v1 = vmov 128.0   ;;  %v276_v21 = vld [vmem:[%s342_s1] ss:$0 sm:$0xff] }
   0xc   : > { %s263_s14 = sshll.u32 %s346_s13, 3  ;;  %278 = vrcp.f32 %v290_v1  ;;  %v277_v23 = vld [vmem:[%s343_s2] ss:$0 sm:$0xff] }
   0xd   : > { %s161_s17 = scalar_lea.vmem %s341_s0, %s263_s14  ;;  %s165_s24 = scalar_lea.vmem %s344_s3, %s263_s14 }
   0xe   : > { %v166_v0 = vld [vmem:[%s161_s17] sm:$0xff] }
   0xf   : > { %169 = vadd.xlane.f32.xlu0 %v166_v0 }
  0x12   : > { %v279_v2 = vpop.eup %278 }
  0x13   : > { %v172_v3 = vmul.f32 128.0, %v279_v2  ;;  %vm176_vm0 = vweird.f32 %v279_v2 }
  0x15   : > { %v173_v4 = vsub.f32 1.0, %v172_v3 }
  0x17   : > { %v174_v5 = vmul.f32 %v279_v2, %v173_v4 }
  0x19   : > { %v175_v6 = vadd.f32 %v279_v2, %v174_v5 }
  0x1b   : > { %v177_v7 = vsel %vm176_vm0, %v279_v2, %v175_v6 }
  0x82   : > { %v170_v8 = vpop.xlane.xlu0 %169 }
  0x83   : > { %v178_v9 = vmul.f32 %v177_v7, %v170_v8 }
  0x85   : > { %v179_v10 = vsub.f32 %v166_v0, %v178_v9 }
  0x87   : > { %v180_v11 = vmul.f32 %v179_v10, %v179_v10 }
  0x89   : > { %181 = vadd.xlane.f32.xlu0 %v180_v11 }
  0xfc   : > { %v182_v12 = vpop.xlane.xlu0 %181 }
  0xfd   : > { %v183_v13 = vmul.f32 %v182_v12, %v177_v7 }
  0xff   : > { %v184_v14 = vadd.f32 1e-12, %v183_v13 }
 0x101   : > { %280 = vrsqrt.f32 %v184_v14  ;;  %vm191_vm2 = vweird.f32 %v184_v14 }
 0x107   : > { %v281_v15 = vpop.eup %280 }
 0x108   : > { %v186_v16 = vmul.f32 %v281_v15, %v184_v14  ;;  %vm192_vm1 = vweird.f32 %v281_v15 }
 0x109   : > { %vm193_vm3 = vmor %vm191_vm2, %vm192_vm1 }
 0x10a   : > { %v187_v17 = vmul.f32 %v281_v15, %v186_v16 }
 0x10c   : > { %v188_v18 = vmul.f32 0.5, %v187_v17 }
 0x10e   : > { %v189_v19 = vsub.f32 1.5, %v188_v18 }
 0x110   : > { %v190_v20 = vmul.f32 %v281_v15, %v189_v19 }
 0x112   : > { %v194_v22 = vsel %vm193_vm3, %v281_v15, %v190_v20 }
 0x113   : > { %v195_v24 = vmul.f32 %v194_v22, %v179_v10 }
 0x115   : > { %v199_v25 = vmul.f32 %v276_v21, %v195_v24 }
 0x117   : > { %v203_v26 = vadd.f32 %v277_v23, %v199_v25 }
 0x119   : > { %204 = vst [vmem:[%s165_s24] sm:$0xff] %v203_v26 }
 0x11a PF: > { %s13_s12 = sadd.s32 1, %s288_s12  }
 0x11b   : > { %p10_p4 = scmp.ge.s32.totalorder %s13_s12, 4  }
 0x11d   :  { %12 = sbr.rel (!%p10_p4) target bundleno = 1 (0x1), region = 62 }

// kernel: bert_forward.6
= control target key start
LH: loop header
LB: loop body
LE: loop exit
PB: predicated region body
PF: predicated region fallthrough
CT: control target
= control target key end

     0   :  { %s2120_s0 = inlined_call_operand.vmem [shape: f32[2,8,128], index: 0, kind: input, shape index: {}]   ;;  %s2121_s1 = inlined_call_operand.vmem [shape: f32[2,1,8], index: 1, kind: input, shape index: {}]   ;;  %s2122_s2 = inlined_call_operand.hbm [shape: f32[128,384], index: 2, kind: input, shape index: {}]   ;;  %s2123_s3 = inlined_call_operand.vmem [shape: f32[1,384], index: 3, kind: input, shape index: {}]   ;;  %s2124_s4 = inlined_call_operand.hbm [shape: f32[128,128], index: 4, kind: input, shape index: {}]   ;;  %s2125_s5 = inlined_call_operand.vmem [shape: f32[1,128], index: 5, kind: input, shape index: {}]   ;;  %s2126_s6 = inlined_call_operand.vmem [shape: f32[1,128], index: 6, kind: input, shape index: {}]   ;;  %s2127_s7 = inlined_call_operand.vmem [shape: f32[1,128], index: 7, kind: input, shape index: {}]   ;;  %s2128_s8 = inlined_call_operand.hbm [shape: f32[128,512], index: 8, kind: input, shape index: {}]   ;;  %s2129_s9 = inlined_call_operand.vmem [shape: f32[1,512], index: 9, kind: input, shape index: {}]   ;;  %s2130_s10 = inlined_call_operand.hbm [shape: f32[512,128], index: 10, kind: input, shape index: {}]   ;;  %s2131_s11 = inlined_call_operand.vmem [shape: f32[1,128], index: 11, kind: input, shape index: {}]   ;;  %s2132_s12 = inlined_call_operand.vmem [shape: f32[1,128], index: 12, kind: input, shape index: {}]   ;;  %s2133_s13 = inlined_call_operand.vmem [shape: f32[1,128], index: 13, kind: input, shape index: {}]   ;;  %s2134_s14 = inlined_call_operand.vmem [shape: f32[2,8,128], index: 14, kind: output, shape index: {}]  }
   0x1   :  { %2136 = sst [smem:[#allocation13_spill]] %s2122_s2 }
   0x2   :  { %2137 = sst [smem:[#allocation14_spill]] %s2124_s4 }
   0x3   :  { %2138 = sst [smem:[#allocation15_spill]] %s2133_s13 }
   0x4   :  { %2139 = sst [smem:[#allocation16_spill]] %s2134_s14 }
   0x5   :  { %19 = vsyncpa [#allocation3], 0 }
   0x6   :  { %20 = vsyncpa [#allocation5], 0 }
   0x7   :  { %21 = vsyncpa [#allocation8], 0  ;;  %s1858_s29 = smov 0  }
   0x8 LB: > { %2140 = sst [smem:[#allocation12_spill]] %s1769_s29  ;;  %s1867_s17 = sadd.s32 4294967295, %s1769_s29   ;;  %s1769_s29 = sphi %s1858_s29, %s27_s29  }
   0x9   : > { %s2141_s4 = sld [smem:[#allocation14_spill]]  ;;  %p1519_p0 = scmp.ge.s32.totalorder %s1769_s29, 1 }
   0xa   : > { %p362_p1 = scmp.lt.s32.totalorder %s1769_s29, 3  ;;  %p1575_p2 = scmp.eq.s32.totalorder %s1867_s17, 0 }
   0xb   : > { %s1771_s19 = smov [#allocation4]   ;;  %s2143_s2 = sld [smem:[#allocation13_spill]] }
   0xc   : > { %p1872_p3 = pnand %p1519_p0, %p362_p1  ;;  %s392_s20 = sshll.u32 %s1771_s19, 4  ;;  %s393_s20 = int_to_ptr.vmem [resolvable:$true] %s392_s20 }
   0xd   : > { %s1772_s25 = smov [#allocation2]   ;;  %s1773_s27 = smov 128  }
   0xe   : > { %p1562_p4 = pneg %p1872_p3  ;;  %s375_s26 = sshll.u32 %s1772_s25, 4  ;;  %s376_s26 = int_to_ptr.vmem [resolvable:$true] %s375_s26 }
   0xf   : > { %s390_s16 = sshll.u32 %s2141_s4, 4  ;;  %s1774_s28 = smov 8   ;;  %s391_s16 = int_to_ptr.hbm [resolvable:$true] %s390_s16 }
  0x10   : > { %p1883_p5 = pnand %p1575_p2, %p1562_p4  ;;  %s413_s19 = sshll.u32 %s2128_s8, 4  ;;  %s414_s19 = int_to_ptr.hbm [resolvable:$true] %s413_s19 }
  0x11   : > { %s373_s23 = sshll.u32 %s2143_s2, 4  ;;  %s1775_s21 = smov 384   ;;  %s374_s23 = int_to_ptr.hbm [resolvable:$true] %s373_s23 }
  0x12   : > { %1568 = dma.hbm_to_vmem [thread:$0]  (!%p1883_p5), %s391_s16, 2048, %s393_s20, [#allocation5], %s1773_s27, %s1773_s27, %s1774_s28  }
  0x13   : > { %s1776_s22 = smov 24   ;;  %s1777_s2 = smov [#allocation6]  }
  0x14   : > { %1565 = dma.hbm_to_vmem [thread:$0]  (!%p1883_p5), %s374_s23, 6144, %s376_s26, [#allocation3], %s1775_s21, %s1775_s21, %s1776_s22  }
  0x15   : > { %s415_s4 = sshll.u32 %s1777_s2, 4  ;;  %s1778_s29 = smov 512   ;;  %s416_s4 = int_to_ptr.vmem [resolvable:$true] %s415_s4 }
  0x16   : > { %s1779_s25 = smov 32   ;;  %s430_s16 = sshll.u32 %s2130_s10, 4  ;;  %s431_s16 = int_to_ptr.hbm [resolvable:$true] %s430_s16 }
  0x17   : > { %1571 = dma.hbm_to_vmem [thread:$0]  (!%p1883_p5), %s414_s19, 8192, %s416_s4, [#allocation5], %s1778_s29, %s1778_s29, %s1779_s25  }
  0x18   : > { %s1780_s20 = smov [#allocation7]   ;;  %470 = sbr.rel (%p1872_p3) target bundleno = 2115 (0x843), region = 76 }
  0x19   : > { %s432_s30 = sshll.u32 %s1780_s20, 4  ;;  %s433_s30 = int_to_ptr.vmem [resolvable:$true] %s432_s30 }
  0x1a   : > { %1574 = dma.hbm_to_vmem [thread:$0]  (!%p1883_p5), %s431_s16, 8192, %s433_s30, [#allocation8], %s1773_s27, %s1773_s27, %s1774_s28  }
  0x1d   : > { %1756 = dma.done.wait (%p1575_p2), [#allocation3], 6144  }
  0x1e   : > { %1758 = vsyncadd (%p1575_p2), [#allocation3], 4294961152 }
  0x1f   : > { %1760 = dma.done.wait (%p1575_p2), [#allocation5], 10240  }
  0x20   : > { %1762 = vsyncadd (%p1575_p2), [#allocation5], 4294957056 }
  0x21   : > { %1764 = dma.done.wait (%p1575_p2), [#allocation8], 8192  }
  0x22   : > { %1766 = vsyncadd (%p1575_p2), [#allocation8], 4294959104  ;;  %v594_v0 = vld [vmem:[#allocation2 + $0x170] sm:$0xff]  ;;  %v591_v1 = vld [vmem:[#allocation2 + $0x158] sm:$0xff]  ;;  %p533_p6 = scmp.lt.s32.totalorder %s1867_s17, 1  ;;  %vm680_vm0 = vcmask 523264  }
  0x23   : > { %v593_v2 = vld [vmem:[#allocation2 + $0x168] sm:$0xff]  ;;  %624 = vmatpush.msra.mxu1 %v594_v0  ;;  %v590_v3 = vld [vmem:[#allocation2 + $0x150] sm:$0xff]  ;;  %v588_v4 = vld [vmem:[#allocation2 + $0x140] sm:$0xff]  ;;  %s1781_s23 = smov 64   ;;  %vm712_vm1 = vcmask 64512  }
  0x24   : > { %604 = vmatpush.msra.mxu0 %v593_v2  ;;  %v587_v5 = vld [vmem:[#allocation2 + $0x138] sm:$0xff]  ;;  %v585_v6 = vld [vmem:[#allocation2 + $0x128] sm:$0xff]  ;;  %v584_v7 = vld [vmem:[#allocation2 + $0x120] sm:$0xff]  ;;  %s2149_s17 = smov (!%p533_p6, %s1867_s17), 1 }
  0x25   : > { %625 = vmatpush.msra.mxu1 %v591_v1  ;;  %v582_v8 = vld [vmem:[#allocation2 + $0x110] sm:$0xff]  ;;  %v581_v9 = vld [vmem:[#allocation2 + $0x108] sm:$0xff]  ;;  %v579_v10 = vld [vmem:[#allocation2 + $0xf8] sm:$0xff]  ;;  %s1530_s2 = sshll.u32 %s2149_s17, 3  ;;  %s539_s27 = scalar_lea.vmem %s2121_s1, %s2149_s17 }
  0x26   : > { %605 = vmatpush.msra.mxu0 %v590_v3  ;;  %v578_v11 = vld [vmem:[#allocation2 + $0xf0] sm:$0xff]  ;;  %v576_v12 = vld [vmem:[#allocation2 + $0xe0] sm:$0xff]  ;;  %v575_v13 = vld [vmem:[#allocation2 + $0xd8] sm:$0xff]  ;;  %s536_s14 = scalar_lea.vmem %s2120_s0, %s1530_s2 }
  0x27   : > { %626 = vmatpush.msra.mxu1 %v588_v4  ;;  %v595_v14 = vld [vmem:[#allocation2 + $0x178] sm:$0xff]  ;;  %v592_v15 = vld [vmem:[#allocation2 + $0x160] sm:$0xff]  ;;  %v573_v16 = vld [vmem:[#allocation2 + $0xc8] sm:$0xff] }
  0x28   : > { %606 = vmatpush.msra.mxu0 %v587_v5  ;;  %v572_v17 = vld [vmem:[#allocation2 + $0xc0] sm:$0xff]  ;;  %644 = vmatpush.msra.mxu2 %v595_v14  ;;  %v589_v18 = vld [vmem:[#allocation2 + $0x148] sm:$0xff]  ;;  %v570_v19 = vld [vmem:[#allocation2 + $0xb0] sm:$0xff] }
  0x29   : > { %627 = vmatpush.msra.mxu1 %v585_v6  ;;  %v569_v20 = vld [vmem:[#allocation2 + $0xa8] sm:$0xff]  ;;  %v567_v21 = vld [vmem:[#allocation2 + $0x98] sm:$0xff]  ;;  %v586_v22 = vld [vmem:[#allocation2 + $0x130] sm:$0xff] }
  0x2a   : > { %607 = vmatpush.msra.mxu0 %v584_v7  ;;  %645 = vmatpush.msra.mxu2 %v592_v15  ;;  %v564_v23 = vld [vmem:[#allocation2 + $0x80] sm:$0xff]  ;;  %v566_v24 = vld [vmem:[#allocation2 + $0x90] sm:$0xff]  ;;  %v563_v25 = vld [vmem:[#allocation2 + $0x78] sm:$0xff] }
  0x2b   : > { %628 = vmatpush.msra.mxu1 %v582_v8  ;;  %v583_v26 = vld [vmem:[#allocation2 + $0x118] sm:$0xff]  ;;  %v580_v27 = vld [vmem:[#allocation2 + $0x100] sm:$0xff]  ;;  %v561_v28 = vld [vmem:[#allocation2 + $0x68] sm:$0xff] }
  0x2c   : > { %608 = vmatpush.msra.mxu0 %v581_v9  ;;  %646 = vmatpush.msra.mxu2 %v589_v18  ;;  %v560_v29 = vld [vmem:[#allocation2 + $0x60] sm:$0xff]  ;;  %v577_v30 = vld [vmem:[#allocation2 + $0xe8] sm:$0xff]  ;;  %v558_v31 = vld [vmem:[#allocation2 + $0x50] sm:$0xff] }
  0x2d   : > { %629 = vmatpush.msra.mxu1 %v579_v10  ;;  %v557_v32 = vld [vmem:[#allocation2 + $0x48] sm:$0xff]  ;;  %v574_v33 = vld [vmem:[#allocation2 + $0xd0] sm:$0xff]  ;;  %v555_v34 = vld [vmem:[#allocation2 + $0x38] sm:$0xff] }
  0x2e   : > { %609 = vmatpush.msra.mxu0 %v578_v11  ;;  %647 = vmatpush.msra.mxu2 %v586_v22  ;;  %v554_v35 = vld [vmem:[#allocation2 + $0x30] sm:$0xff]  ;;  %v571_v36 = vld [vmem:[#allocation2 + $0xb8] sm:$0xff]  ;;  %v552_v37 = vld [vmem:[#allocation2 + $0x20] sm:$0xff] }
  0x2f   : > { %630 = vmatpush.msra.mxu1 %v576_v12  ;;  %v551_v38 = vld [vmem:[#allocation2 + $0x18] sm:$0xff]  ;;  %v568_v39 = vld [vmem:[#allocation2 + $0xa0] sm:$0xff]  ;;  %v549_v40 = vld [vmem:[#allocation2 + $0x8] sm:$0xff] }
  0x30   : > { %610 = vmatpush.msra.mxu0 %v575_v13  ;;  %648 = vmatpush.msra.mxu2 %v583_v26  ;;  %v548_v41 = vld [vmem:[#allocation2] sm:$0xff]  ;;  %v565_v43 = vld [vmem:[#allocation2 + $0x88] sm:$0xff]  ;;  %v562_v44 = vld [vmem:[#allocation2 + $0x70] sm:$0xff] }
  0x31   : > { %631 = vmatpush.msra.mxu1 %v573_v16  ;;  %v1925_v42 = vld [vmem:[%s536_s14] sm:$0xff]  ;;  %v559_v45 = vld [vmem:[#allocation2 + $0x58] sm:$0xff]  ;;  %v553_v47 = vld [vmem:[#allocation2 + $0x28] sm:$0xff] }
  0x32   : > { %611 = vmatpush.msra.mxu0 %v572_v17  ;;  %649 = vmatpush.msra.mxu2 %v580_v27  ;;  %v556_v46 = vld [vmem:[#allocation2 + $0x40] sm:$0xff]  ;;  %v550_v48 = vld [vmem:[#allocation2 + $0x10] sm:$0xff]  ;;  %v671_v9 = vld [vmem:[#allocation4 + $0x38] sm:$0xff] }
  0x33   : > { %632 = vmatpush.msra.mxu1 %v570_v19  ;;  %v596_v49 = vld [vmem:[%s2123_s3] sm:$0x7]  ;;  %v670_v10 = vld [vmem:[#allocation4 + $0x30] sm:$0xff]  ;;  %v669_v11 = vld [vmem:[#allocation4 + $0x28] sm:$0xff] }
  0x34   : > { %612 = vmatpush.msra.mxu0 %v569_v20  ;;  %650 = vmatpush.msra.mxu2 %v577_v30  ;;  %v599_v50 = vperm.slane %v596_v49, 1  ;;  %v598_v51 = vperm.slane %v596_v49, 0  ;;  %v600_v56 = vperm.slane %v596_v49, 2  ;;  %v545_v60 = vld [vmem:[%s539_s27] sm:$0x1]  ;;  %v667_v13 = vld [vmem:[#allocation4 + $0x18] sm:$0xff] }
  0x35   : > { %633 = vmatpush.msra.mxu1 %v567_v21  ;;  %v546_v61 = vsub.f32 1.0, %v545_v60  ;;  %v668_v12 = vld [vmem:[#allocation4 + $0x20] sm:$0xff]  ;;  %v666_v14 = vld [vmem:[#allocation4 + $0x10] sm:$0xff]  ;;  %v665_v15 = vld [vmem:[#allocation4 + $0x8] sm:$0xff]  ;;  %s2146_s27 = sld [smem:[#allocation16_spill]] }
  0x36   : > { %613 = vmatpush.msra.mxu0 %v566_v24  ;;  %651 = vmatpush.msra.mxu2 %v574_v33  ;;  %v664_v21 = vld [vmem:[#allocation4] sm:$0xff]  ;;  %v678_v33 = vld [vmem:[#allocation4 + $0x70] sm:$0xff] }
  0x37   : > { %634 = vmatpush.msra.mxu1 %v564_v23  ;;  %v547_v62 = vmul.f32 -10000.0, %v546_v61 }
  0x38   : > { %614 = vmatpush.msra.mxu0 %v563_v25  ;;  %652 = vmatpush.msra.mxu2 %v571_v36  ;;  %v675_v36 = vld [vmem:[#allocation4 + $0x58] sm:$0xff] }
  0x39   : > { %635 = vmatpush.msra.mxu1 %v561_v28  ;;  %v709_v63 = vperm.slane %v547_v62, 0 }
  0x3a   : > { %615 = vmatpush.msra.mxu0 %v560_v29  ;;  %653 = vmatpush.msra.mxu2 %v568_v39 }
  0x3b   : > { %636 = vmatpush.msra.mxu1 %v558_v31  ;;  %s543_s28 = scalar_lea.vmem %s2146_s27, %s1530_s2 }
  0x3c   : > { %616 = vmatpush.msra.mxu0 %v557_v32  ;;  %654 = vmatpush.msra.mxu2 %v565_v43  ;;  %v679_v32 = vld [vmem:[#allocation4 + $0x78] sm:$0xff]  ;;  %v672_v43 = vld [vmem:[#allocation4 + $0x40] sm:$0xff] }
  0x3d   : > { %637 = vmatpush.msra.mxu1 %v555_v34  ;;  %v677_v34 = vld [vmem:[#allocation4 + $0x68] sm:$0xff] }
  0x3e   : > { %617 = vmatpush.msra.mxu0 %v554_v35  ;;  %655 = vmatpush.msra.mxu2 %v562_v44  ;;  %v676_v35 = vld [vmem:[#allocation4 + $0x60] sm:$0xff] }
  0x3f   : > { %638 = vmatpush.msra.mxu1 %v552_v37  ;;  %v674_v37 = vld [vmem:[#allocation4 + $0x50] sm:$0xff] }
  0x40   : > { %618 = vmatpush.msra.mxu0 %v551_v38  ;;  %656 = vmatpush.msra.mxu2 %v559_v45  ;;  %v673_v38 = vld [vmem:[#allocation4 + $0x48] sm:$0xff]  ;;  %v1603_v45 = vld [vmem:[%s2125_s5] ss:$0 sm:$0xff] }
  0x41   : > { %639 = vmatpush.msra.mxu1 %v549_v40 }
  0x42   : > { %619 = vmatpush.msra.mxu0 %v548_v41  ;;  %640 = vmatmul.f32.vlgmr.msra.gmra.mxu1 %v1925_v42 }
  0x43   : > { %620 = vmatmul.f32.vlgmr.msra.gmra.mxu0 %v1925_v42  ;;  %657 = vmatpush.msra.mxu2 %v556_v46 }
  0x44   : > { %849 = vmatpush.msrb.mxu0 %v671_v9  ;;  %v952_v9 = vld [vmem:[#allocation6 + $0x180] sm:$0xff] }
  0x45   : > { %658 = vmatpush.msra.mxu2 %v553_v47 }
  0x46   : > { %850 = vmatpush.msrb.mxu0 %v670_v10  ;;  %v953_v10 = vld [vmem:[#allocation6 + $0x188] sm:$0xff] }
  0x47   : > { %659 = vmatpush.msra.mxu2 %v550_v48 }
  0x48   : > { %660 = vmatmul.f32.vlgmr.msra.gmra.mxu2 %v1925_v42  ;;  %851 = vmatpush.msrb.mxu0 %v669_v11  ;;  %v954_v11 = vld [vmem:[#allocation6 + $0x190] sm:$0xff] }
  0x4a   : > { %852 = vmatpush.msrb.mxu0 %v668_v12  ;;  %v955_v12 = vld [vmem:[#allocation6 + $0x198] sm:$0xff] }
  0x4c   : > { %853 = vmatpush.msrb.mxu0 %v667_v13  ;;  %v948_v13 = vld [vmem:[#allocation6 + $0x160] sm:$0xff] }
  0x4e   : > { %854 = vmatpush.msrb.mxu0 %v666_v14  ;;  %v949_v14 = vld [vmem:[#allocation6 + $0x168] sm:$0xff] }
  0x50   : > { %855 = vmatpush.msrb.mxu0 %v665_v15  ;;  %v950_v15 = vld [vmem:[#allocation6 + $0x170] sm:$0xff] }
  0x52   : > { %856 = vmatpush.msrb.mxu0 %v664_v21  ;;  %v940_v21 = vld [vmem:[#allocation6 + $0x120] sm:$0xff] }
  0xbf   : > { %v641_v52 = vpop.f32.mrf.mxu1 }
  0xc0   : > { %v621_v53 = vpop.f32.mrf.mxu0  ;;  %v642_v54 = vadd.f32 %v641_v52, %v599_v50  ;;  %v964_v52 = vld [vmem:[#allocation6 + $0x1e0] sm:$0xff] }
  0xc1   : > { %v622_v55 = vadd.f32 %v621_v53, %v598_v51  ;;  %v1782_v51 = vmov 128.0   ;;  %v965_v53 = vld [vmem:[#allocation6 + $0x1e8] sm:$0xff]  ;;  %978 = vmatpush.msrb.mxu1 %v964_v52  ;;  %v914_v52 = vld [vmem:[#allocation6 + $0x50] sm:$0xff] }
  0xc2   : > { %749 = vrot.lane.b32.xlu1 %v642_v54, %s1781_s23  ;;  %1532 = vmatpush.xpose.msk.msra.mxu3 %vm680_vm0, %v642_v54  ;;  %v966_v54 = vld [vmem:[#allocation6 + $0x1f0] sm:$0xff] }
  0xc3   : > { %998 = vmatpush.msrb.mxu2 %v965_v53  ;;  %v915_v53 = vld [vmem:[#allocation6 + $0x58] sm:$0xff] }
  0xc5   : > { %1533 = vmatmul.msk.f32.vlgmr.msra.gmra.mxu3 %vm680_vm0, %v622_v55 }
  0xca   : > { %747 = vrot.lane.b32.xlu1 %v622_v55, %s1781_s23  ;;  %v967_v55 = vld [vmem:[#allocation6 + $0x1f8] sm:$0xff] }
  0xcb   : > { %v661_v57 = vpop.f32.mrf.mxu2  ;;  %1038 = vmatpush.msra.mxu0 %v967_v55  ;;  %v909_v55 = vld [vmem:[#allocation6 + $0x28] sm:$0xff] }
  0xcc   : > { %v662_v58 = vadd.f32 %v661_v57, %v600_v56  ;;  %v960_v56 = vld [vmem:[#allocation6 + $0x1c0] sm:$0xff]  ;;  %v961_v57 = vld [vmem:[#allocation6 + $0x1c8] sm:$0xff] }
  0xcd   : > { %979 = vmatpush.msrb.mxu1 %v960_v56  ;;  %999 = vmatpush.msrb.mxu2 %v961_v57  ;;  %v910_v56 = vld [vmem:[#allocation6 + $0x30] sm:$0xff]  ;;  %v911_v57 = vld [vmem:[#allocation6 + $0x38] sm:$0xff] }
  0xce   : > { %742 = vmatpush.msrb.mxu3 %v662_v58 }
 0x134   : > { %v750_v59 = vpop.permute.xlu1 %749 }
 0x135   : > { %1535 = vmatpush.xpose.msk.msra.mxu3 %vm680_vm0, %v750_v59  ;;  %v963_v59 = vld [vmem:[#allocation6 + $0x1d8] sm:$0xff] }
 0x136   : > { %1039 = vmatpush.msra.mxu0 %v963_v59  ;;  %v905_v59 = vld [vmem:[#allocation6 + $0x8] sm:$0xff] }
 0x13c   : > { %v748_v19 = vpop.permute.xlu1 %747 }
 0x148   : > { %v704_v0 = vpop.f32.mrf.mxu3 }
 0x149   : > { %v707_v1 = vmul.f32 0.125, %v704_v0 }
 0x14b   : > { %v711_v2 = vadd.f32 %v709_v63, %v707_v1 }
 0x14d   : > { %v713_v3 = vsel %vm712_vm1, %v711_v2, -inf }
 0x14e   : > { %714 = vmax.xlane.f32.xlu0 %v713_v3 }
 0x1c1   : > { %v715_v4 = vpop.xlane.xlu0 %714 }
 0x1c2   : > { %v716_v5 = vsub.f32 %v711_v2, %v715_v4 }
 0x1c4   : > { %v717_v6 = vmul.f32 1.442695, %v716_v5  ;;  %v956_v5 = vld [vmem:[#allocation6 + $0x1a0] sm:$0xff] }
 0x1c5   : > { %980 = vmatpush.msrb.mxu1 %v956_v5 }
 0x1c6   : > { %1609 = vpow2.f32 %v717_v6  ;;  %v957_v6 = vld [vmem:[#allocation6 + $0x1a8] sm:$0xff] }
 0x1c7   : > { %1000 = vmatpush.msrb.mxu2 %v957_v6  ;;  %981 = vmatpush.msrb.mxu1 %v952_v9 }
 0x1c9   : > { %1001 = vmatpush.msrb.mxu2 %v953_v10  ;;  %982 = vmatpush.msrb.mxu1 %v948_v13 }
 0x1cb   : > { %1002 = vmatpush.msrb.mxu2 %v949_v14  ;;  %v968_v14 = vld [vmem:[%s2129_s9] sm:$0xf] }
 0x1cc   : > { %v1610_v7 = vpop.eup %1609 }
 0x1cd   : > { %v719_v8 = vsel %vm712_vm1, %v1610_v7, 0.0 }
 0x1ce   : > { %720 = vadd.xlane.f32.xlu0 %v719_v8  ;;  %v959_v8 = vld [vmem:[#allocation6 + $0x1b8] sm:$0xff] }
 0x1cf   : > { %1040 = vmatpush.msra.mxu0 %v959_v8  ;;  %v1604_v8 = vld [vmem:[%s2126_s6] ss:$0 sm:$0xff] }
 0x1d1   : > { %1041 = vmatpush.msra.mxu0 %v955_v12 }
 0x1e2   : > { %789 = vrot.lane.b32.xlu0 %v662_v58, %s1781_s23  ;;  %v962_v58 = vld [vmem:[#allocation6 + $0x1d0] sm:$0xff]  ;;  %s2145_s23 = sld [smem:[#allocation15_spill]] }
 0x241   : > { %v721_v16 = vpop.xlane.xlu0 %720 }
 0x242   : > { %1611 = vrcp.f32 %v721_v16  ;;  %v951_v16 = vld [vmem:[#allocation6 + $0x178] sm:$0xff] }
 0x243   : > { %1042 = vmatpush.msra.mxu0 %v951_v16 }
 0x248   : > { %v1612_v17 = vpop.eup %1611 }
 0x249   : > { %v723_v18 = vmul.f32 %v1612_v17, %v1610_v7  ;;  %v958_v7 = vld [vmem:[#allocation6 + $0x1b0] sm:$0xff]  ;;  %v944_v17 = vld [vmem:[#allocation6 + $0x140] sm:$0xff] }
 0x24a   : > { %983 = vmatpush.msrb.mxu1 %v944_v17 }
 0x24b   : > { %1534 = vmatmul.msk.f32.vlgmr.msrb.gmra.mxu3 %vm712_vm1, %v723_v18  ;;  %v945_v18 = vld [vmem:[#allocation6 + $0x148] sm:$0xff] }
 0x24c   : > { %1003 = vmatpush.msrb.mxu2 %v945_v18  ;;  %984 = vmatpush.msrb.mxu1 %v940_v21  ;;  %v971_v21 = vperm.slane %v968_v14, 1 }
 0x253   : > { %1536 = vmatmul.msk.f32.vlgmr.msra.gmra.mxu3 %vm680_vm0, %v748_v19  ;;  %v946_v19 = vld [vmem:[#allocation6 + $0x150] sm:$0xff] }
 0x254   : > { %v790_v20 = vpop.permute.xlu0 %789 }
 0x255   : > { %810 = vmatpush.msrb.mxu3 %v790_v20  ;;  %v947_v20 = vld [vmem:[#allocation6 + $0x158] sm:$0xff] }
 0x256   : > { %1043 = vmatpush.msra.mxu0 %v947_v20 }
 0x257   : > { %826 = vmatpush.msra.mxu3 %v679_v32  ;;  %v935_v32 = vld [vmem:[#allocation6 + $0xf8] sm:$0xff] }
 0x259   : > { %827 = vmatpush.msra.mxu3 %v678_v33  ;;  %v928_v33 = vld [vmem:[#allocation6 + $0xc0] sm:$0xff] }
 0x25b   : > { %828 = vmatpush.msra.mxu3 %v677_v34  ;;  %v929_v34 = vld [vmem:[#allocation6 + $0xc8] sm:$0xff] }
 0x25d   : > { %829 = vmatpush.msra.mxu3 %v676_v35  ;;  %v930_v35 = vld [vmem:[#allocation6 + $0xd0] sm:$0xff] }
 0x25f   : > { %830 = vmatpush.msra.mxu3 %v675_v36  ;;  %v931_v36 = vld [vmem:[#allocation6 + $0xd8] sm:$0xff] }
 0x261   : > { %831 = vmatpush.msra.mxu3 %v674_v37  ;;  %v924_v37 = vld [vmem:[#allocation6 + $0xa0] sm:$0xff] }
 0x263   : > { %832 = vmatpush.msra.mxu3 %v673_v38  ;;  %v925_v38 = vld [vmem:[#allocation6 + $0xa8] sm:$0xff] }
 0x265   : > { %833 = vmatpush.msra.mxu3 %v672_v43  ;;  %v921_v43 = vld [vmem:[#allocation6 + $0x88] sm:$0xff] }
 0x2ce   : > { %v744_v22 = vpop.f32.mrf.mxu3 }
 0x2cf   : > { %1539 = vmatmul.msk.f32.vlgmr.msrb.gmra.mxu0 %vm680_vm0, %v744_v22  ;;  %v941_v22 = vld [vmem:[#allocation6 + $0x128] sm:$0xff] }
 0x2d0   : > { %1004 = vmatpush.msrb.mxu2 %v941_v22  ;;  %v1249_v22 = vld [vmem:[#allocation7 + $0x78] sm:$0xff] }
 0x2d6   : > { %v772_v23 = vpop.f32.mrf.mxu3 }
 0x2d7   : > { %v775_v24 = vmul.f32 0.125, %v772_v23  ;;  %v942_v23 = vld [vmem:[#allocation6 + $0x130] sm:$0xff] }
 0x2d9   : > { %v776_v25 = vadd.f32 %v775_v24, %v709_v63  ;;  %v943_v24 = vld [vmem:[#allocation6 + $0x138] sm:$0xff] }
 0x2da   : > { %1044 = vmatpush.msra.mxu0 %v943_v24 }
 0x2db   : > { %v777_v26 = vsel %vm712_vm1, %v776_v25, -inf }
 0x2dc   : > { %778 = vmax.xlane.f32.xlu2 %v777_v26  ;;  %v937_v26 = vld [vmem:[#allocation6 + $0x108] sm:$0xff] }
 0x2dd   : > { %1005 = vmatpush.msrb.mxu2 %v937_v26 }
 0x34c   : > { %v858_v46 = vpop.f32.mrf.mxu0 }
 0x34f   : > { %v779_v27 = vpop.xlane.xlu2 %778 }
 0x350   : > { %v780_v28 = vsub.f32 %v776_v25, %v779_v27  ;;  %v936_v25 = vld [vmem:[#allocation6 + $0x100] sm:$0xff]  ;;  %v938_v27 = vld [vmem:[#allocation6 + $0x110] sm:$0xff] }
 0x351   : > { %985 = vmatpush.msrb.mxu1 %v936_v25  ;;  %v972_v25 = vperm.slane %v968_v14, 2 }
 0x352   : > { %v781_v29 = vmul.f32 1.442695, %v780_v28  ;;  %v939_v28 = vld [vmem:[#allocation6 + $0x118] sm:$0xff] }
 0x353   : > { %1045 = vmatpush.msra.mxu0 %v939_v28  ;;  %v1296_v28 = vld [vmem:[#allocation7 + $0x1f0] sm:$0xff] }
 0x354   : > { %1613 = vpow2.f32 %v781_v29  ;;  %v932_v29 = vld [vmem:[#allocation6 + $0xe0] sm:$0xff] }
 0x355   : > { %986 = vmatpush.msrb.mxu1 %v932_v29  ;;  %1046 = vmatpush.msra.mxu0 %v935_v32 }
 0x357   : > { %987 = vmatpush.msrb.mxu1 %v928_v33  ;;  %1047 = vmatpush.msra.mxu0 %v931_v36 }
 0x359   : > { %988 = vmatpush.msrb.mxu1 %v924_v37 }
 0x35a   : > { %v1614_v30 = vpop.eup %1613 }
 0x35b   : > { %v783_v31 = vsel %vm712_vm1, %v1614_v30, 0.0 }
 0x35c   : > { %784 = vadd.xlane.f32.xlu2 %v783_v31  ;;  %v934_v31 = vld [vmem:[#allocation6 + $0xf0] sm:$0xff] }
 0x3cf   : > { %v785_v39 = vpop.xlane.xlu2 %784 }
 0x3d0   : > { %1615 = vrcp.f32 %v785_v39  ;;  %v926_v39 = vld [vmem:[#allocation6 + $0xb0] sm:$0xff] }
 0x3d1   : > { %1617 = vrcp.f32 %v1782_v51  ;;  %v913_v51 = vld [vmem:[#allocation6 + $0x48] sm:$0xff] }
 0x3d6   : > { %v1616_v40 = vpop.eup %1615 }
 0x3d7   : > { %v787_v41 = vmul.f32 %v1616_v40, %v1614_v30  ;;  %v1618_v60 = vpop.eup %1617  ;;  %v933_v30 = vld [vmem:[#allocation6 + $0xe8] sm:$0xff]  ;;  %v927_v40 = vld [vmem:[#allocation6 + $0xb8] sm:$0xff] }
 0x3d8   : > { %vm876_vm2 = vweird.f32 %v1618_v60  ;;  %1006 = vmatpush.msrb.mxu2 %v933_v30  ;;  %1048 = vmatpush.msra.mxu0 %v927_v40  ;;  %v1246_v40 = vld [vmem:[#allocation7 + $0x60] sm:$0xff] }
 0x3d9   : > { %1537 = vmatmul.msk.f32.vlgmr.msrb.gmra.mxu3 %vm712_vm1, %v787_v41  ;;  %v920_v41 = vld [vmem:[#allocation6 + $0x80] sm:$0xff] }
 0x3da   : > { %1018 = vmatpush.msrb.mxu3 %v966_v54  ;;  %1007 = vmatpush.msrb.mxu2 %v929_v34  ;;  %v908_v54 = vld [vmem:[#allocation6 + $0x20] sm:$0xff]  ;;  %v1247_v34 = vld [vmem:[#allocation7 + $0x68] sm:$0xff] }
 0x3db   : > { %989 = vmatpush.msrb.mxu1 %v920_v41 }
 0x3dc   : > { %1019 = vmatpush.msrb.mxu3 %v962_v58  ;;  %1008 = vmatpush.msrb.mxu2 %v925_v38  ;;  %v904_v58 = vld [vmem:[#allocation6] sm:$0xff] }
 0x3de   : > { %1020 = vmatpush.msrb.mxu3 %v958_v7  ;;  %1009 = vmatpush.msrb.mxu2 %v921_v43 }
 0x3e0   : > { %1021 = vmatpush.msrb.mxu3 %v954_v11  ;;  %v1605_v11 = vld [vmem:[%s2127_s7] ss:$0 sm:$0xff] }
 0x3e2   : > { %1022 = vmatpush.msrb.mxu3 %v950_v15  ;;  %v973_v15 = vperm.slane %v968_v14, 3 }
 0x3e4   : > { %1023 = vmatpush.msrb.mxu3 %v946_v19 }
 0x3e6   : > { %1024 = vmatpush.msrb.mxu3 %v942_v23  ;;  %v1297_v23 = vld [vmem:[#allocation7 + $0x1f8] sm:$0xff] }
 0x3e8   : > { %1025 = vmatpush.msrb.mxu3 %v938_v27  ;;  %v1248_v27 = vld [vmem:[#allocation7 + $0x70] sm:$0xff] }
 0x3ea   : > { %1026 = vmatpush.msrb.mxu3 %v934_v31 }
 0x3ec   : > { %1027 = vmatpush.msrb.mxu3 %v930_v35  ;;  %v1295_v35 = vld [vmem:[#allocation7 + $0x1e8] sm:$0xff] }
 0x3ee   : > { %1028 = vmatpush.msrb.mxu3 %v926_v39 }
 0x45c   : > { %v812_v44 = vpop.f32.mrf.mxu3 }
 0x45d   : > { %1538 = vmatmul.msk.f32.vlgmr.msra.gmra.mxu3 %vm680_vm0, %v812_v44  ;;  %v922_v44 = vld [vmem:[#allocation6 + $0x90] sm:$0xff] }
 0x45e   : > { %1029 = vmatpush.msrb.mxu3 %v922_v44 }
 0x4e0   : > { %v835_v47 = vpop.f32.mrf.mxu3 }
 0x4e1   : > { %v859_v48 = vadd.f32 %v858_v46, %v835_v47  ;;  %v916_v46 = vld [vmem:[#allocation6 + $0x60] sm:$0xff]  ;;  %v917_v47 = vld [vmem:[#allocation6 + $0x68] sm:$0xff] }
 0x4e2   : > { %990 = vmatpush.msrb.mxu1 %v916_v46  ;;  %1010 = vmatpush.msrb.mxu2 %v917_v47  ;;  %v1265_v47 = vld [vmem:[#allocation7 + $0xf8] sm:$0xff] }
 0x4e3   : > { %v865_v49 = vadd.f32 %v1603_v45, %v859_v48  ;;  %v923_v45 = vld [vmem:[#allocation6 + $0x98] sm:$0xff]  ;;  %v918_v48 = vld [vmem:[#allocation6 + $0x70] sm:$0xff] }
 0x4e4   : > { %1049 = vmatpush.msra.mxu0 %v923_v45  ;;  %1030 = vmatpush.msrb.mxu3 %v918_v48 }
 0x4e5   : > { %v866_v50 = vadd.f32 %v865_v49, %v1925_v42  ;;  %v872_v42 = vmul.f32 128.0, %v1618_v60  ;;  %v919_v49 = vld [vmem:[#allocation6 + $0x78] sm:$0xff]  ;;  %1011 = vmatpush.msrb.mxu2 %v913_v51 }
 0x4e6   : > { %1050 = vmatpush.msra.mxu0 %v919_v49  ;;  %1031 = vmatpush.msrb.mxu3 %v914_v52 }
 0x4e7   : > { %869 = vadd.xlane.f32.xlu1 %v866_v50  ;;  %v873_v61 = vsub.f32 1.0, %v872_v42  ;;  %1012 = vmatpush.msrb.mxu2 %v909_v55  ;;  %v907_v42 = vld [vmem:[#allocation6 + $0x18] sm:$0xff]  ;;  %v1294_v55 = vld [vmem:[#allocation7 + $0x1e0] sm:$0xff] }
 0x4e8   : > { %1051 = vmatpush.msra.mxu0 %v915_v53  ;;  %1032 = vmatpush.msrb.mxu3 %v910_v56  ;;  %v1245_v56 = vld [vmem:[#allocation7 + $0x58] sm:$0xff] }
 0x4e9   : > { %v874_v62 = vmul.f32 %v1618_v60, %v873_v61  ;;  %1013 = vmatpush.msrb.mxu2 %v905_v59 }
 0x4ea   : > { %1052 = vmatpush.msra.mxu0 %v911_v57 }
 0x4eb   : > { %v875_v63 = vadd.f32 %v1618_v60, %v874_v62  ;;  %1322 = vmatpush.msra.mxu2 %v1265_v47  ;;  %v1290_v47 = vld [vmem:[#allocation7 + $0x1c0] sm:$0xff] }
 0x4ec   : > { %1053 = vmatpush.msra.mxu0 %v907_v42  ;;  %v1264_v42 = vld [vmem:[#allocation7 + $0xf0] sm:$0xff] }
 0x4ed   : > { %v1953_v0 = vsel %vm876_vm2, %v1618_v60, %v875_v63  ;;  %v906_v60 = vld [vmem:[#allocation6 + $0x10] sm:$0xff]  ;;  %1323 = vmatpush.msra.mxu2 %v1264_v42 }
 0x4ee   : > { %1033 = vmatpush.msrb.mxu3 %v906_v60  ;;  %1362 = vmatpush.msrb.mxu0 %v1297_v23  ;;  %v1291_v23 = vld [vmem:[#allocation7 + $0x1c8] sm:$0xff] }
 0x4f0   : > { %1363 = vmatpush.msrb.mxu0 %v1296_v28 }
 0x4f2   : > { %1364 = vmatpush.msrb.mxu0 %v1295_v35 }
 0x4f4   : > { %1365 = vmatpush.msrb.mxu0 %v1294_v55  ;;  %v1260_v55 = vld [vmem:[#allocation7 + $0xd0] sm:$0xff] }
 0x55a   : > { %v870_v1 = vpop.xlane.xlu1 %869 }
 0x55b   : > { %v878_v2 = vmul.f32 %v1953_v0, %v870_v1 }
 0x55d   : > { %v1956_v3 = vsub.f32 %v866_v50, %v878_v2  ;;  %v912_v50 = vld [vmem:[#allocation6 + $0x40] sm:$0xff] }
 0x55e   : > { %991 = vmatpush.msrb.mxu1 %v912_v50 }
 0x55f   : > { %v880_v4 = vmul.f32 %v1956_v3, %v1956_v3 }
 0x560   : > { %992 = vmatpush.msrb.mxu1 %v908_v54  ;;  %v1281_v54 = vld [vmem:[#allocation7 + $0x178] sm:$0xff] }
 0x561   : > { %881 = vadd.xlane.f32.xlu2 %v880_v4  ;;  %1342 = vmatpush.msra.mxu3 %v1281_v54 }
 0x562   : > { %993 = vmatpush.msrb.mxu1 %v904_v58 }
 0x564   : > { %1302 = vmatpush.msra.mxu1 %v1249_v22  ;;  %v1278_v22 = vld [vmem:[#allocation7 + $0x160] sm:$0xff] }
 0x566   : > { %1303 = vmatpush.msra.mxu1 %v1248_v27 }
 0x568   : > { %1304 = vmatpush.msra.mxu1 %v1247_v34 }
 0x56a   : > { %1305 = vmatpush.msra.mxu1 %v1246_v40  ;;  %v1242_v40 = vld [vmem:[#allocation7 + $0x40] sm:$0xff] }
 0x56c   : > { %1306 = vmatpush.msra.mxu1 %v1245_v56  ;;  %v1276_v56 = vld [vmem:[#allocation7 + $0x150] sm:$0xff] }
 0x5d4   : > { %v882_v61 = vpop.xlane.xlu2 %881 }
 0x5d5   : > { %v883_v62 = vmul.f32 %v882_v61, %v1953_v0  ;;  %v1280_v61 = vld [vmem:[#allocation7 + $0x170] sm:$0xff] }
 0x5d6   : > { %1343 = vmatpush.msra.mxu3 %v1280_v61  ;;  %v1289_v61 = vld [vmem:[#allocation7 + $0x1b8] sm:$0xff] }
 0x5d7   : > { %v884_v63 = vadd.f32 1e-12, %v883_v62  ;;  %v1293_v62 = vld [vmem:[#allocation7 + $0x1d8] sm:$0xff] }
 0x5d8   : > { %1366 = vmatpush.msrb.mxu0 %v1293_v62  ;;  %v1240_v62 = vld [vmem:[#allocation7 + $0x30] sm:$0xff] }
 0x5d9   : > { %1619 = vrsqrt.f32 %v884_v63  ;;  %vm891_vm4 = vweird.f32 %v884_v63 }
 0x5df   : > { %v1620_v1 = vpop.eup %1619 }
 0x5e0   : > { %v886_v2 = vmul.f32 %v1620_v1, %v884_v63  ;;  %vm892_vm3 = vweird.f32 %v1620_v1 }
 0x5e1   : > { %vm893_vm5 = vmor %vm891_vm4, %vm892_vm3 }
 0x5e2   : > { %v887_v4 = vmul.f32 %v1620_v1, %v886_v2  ;;  %v1244_v2 = vld [vmem:[#allocation7 + $0x50] sm:$0xff] }
 0x5e3   : > { %1307 = vmatpush.msra.mxu1 %v1244_v2  ;;  %v1275_v2 = vld [vmem:[#allocation7 + $0x148] sm:$0xff] }
 0x5e4   : > { %v888_v5 = vmul.f32 0.5, %v887_v4  ;;  %v1263_v4 = vld [vmem:[#allocation7 + $0xe8] sm:$0xff] }
 0x5e5   : > { %1324 = vmatpush.msra.mxu2 %v1263_v4  ;;  %v1288_v4 = vld [vmem:[#allocation7 + $0x1b0] sm:$0xff] }
 0x5e6   : > { %v889_v6 = vsub.f32 1.5, %v888_v5 }
 0x5e8   : > { %v890_v7 = vmul.f32 %v1620_v1, %v889_v6 }
 0x5ea   : > { %v894_v9 = vsel %vm893_vm5, %v1620_v1, %v890_v7 }
 0x5eb   : > { %v895_v10 = vmul.f32 %v894_v9, %v1956_v3  ;;  %v970_v3 = vperm.slane %v968_v14, 0  ;;  %v1292_v14 = vld [vmem:[#allocation7 + $0x1d0] sm:$0xff] }
 0x5ec   : > { %1367 = vmatpush.msrb.mxu0 %v1292_v14  ;;  %v1258_v14 = vld [vmem:[#allocation7 + $0xc0] sm:$0xff] }
 0x5ed   : > { %v899_v12 = vmul.f32 %v1604_v8, %v895_v10 }
 0x5ee   : > { %1368 = vmatpush.msrb.mxu0 %v1291_v23  ;;  %v1273_v23 = vld [vmem:[#allocation7 + $0x138] sm:$0xff] }
 0x5ef   : > { %v1968_v13 = vadd.f32 %v1605_v11, %v899_v12  ;;  %v1279_v12 = vld [vmem:[#allocation7 + $0x168] sm:$0xff] }
 0x5f0   : > { %1344 = vmatpush.msra.mxu3 %v1279_v12  ;;  %1369 = vmatpush.msrb.mxu0 %v1290_v47  ;;  %v1235_v47 = vld [vmem:[#allocation7 + $0x8] sm:$0xff] }
 0x5f1   : > { %994 = vmatmul.f32.vlgmr.msrb.gmra.mxu1 %v1968_v13  ;;  %1014 = vmatmul.f32.vlgmr.msrb.gmra.mxu2 %v1968_v13 }
 0x5f2   : > { %1034 = vmatmul.f32.vlgmr.msrb.gmra.mxu3 %v1968_v13  ;;  %1054 = vmatmul.f32.vlgmr.msra.gmra.mxu0 %v1968_v13 }
 0x5f3   : > { %1345 = vmatpush.msra.mxu3 %v1278_v22  ;;  %1370 = vmatpush.msrb.mxu0 %v1289_v61  ;;  %v1257_v22 = vld [vmem:[#allocation7 + $0xb8] sm:$0xff] }
 0x5f5   : > { %1371 = vmatpush.msrb.mxu0 %v1288_v4 }
 0x66e   : > { %v995_v16 = vpop.f32.mrf.mxu1 }
 0x66f   : > { %v1977_v17 = vadd.f32 %v995_v16, %v970_v3  ;;  %v1055_v18 = vpop.f32.mrf.mxu0  ;;  %v1243_v3 = vld [vmem:[#allocation7 + $0x48] sm:$0xff] }
 0x670   : > { %v1979_v19 = vadd.f32 %v1055_v18, %v973_v15  ;;  %1308 = vmatpush.msra.mxu1 %v1243_v3  ;;  %v1274_v3 = vld [vmem:[#allocation7 + $0x140] sm:$0xff] }
 0x671   : > { %v1982_v20 = vmul.f32 0.70710677, %v1977_v17 }
 0x672   : > { %v1985_v24 = vmul.f32 0.70710677, %v1979_v19  ;;  %1309 = vmatpush.msra.mxu1 %v1242_v40  ;;  %v1255_v40 = vld [vmem:[#allocation7 + $0xa8] sm:$0xff] }
 0x673   : > { %v1066_v26 = vmul.f32 %v1982_v20, %v1982_v20 }
 0x674   : > { %v1186_v29 = vmul.f32 %v1985_v24, %v1985_v24  ;;  %v1015_v30 = vpop.f32.mrf.mxu2 }
 0x675   : > { %v1991_v31 = vmin.f32 %v1066_v26, 16.0  ;;  %v1993_v32 = vadd.f32 %v1015_v30, %v971_v21  ;;  %v1035_v33 = vpop.f32.mrf.mxu3  ;;  %v1262_v21 = vld [vmem:[#allocation7 + $0xe0] sm:$0xff] }
 0x676   : > { %v1995_v36 = vmin.f32 %v1186_v29, 16.0  ;;  %v1997_v37 = vadd.f32 %v1035_v33, %v972_v25  ;;  %1325 = vmatpush.msra.mxu2 %v1262_v21  ;;  %v1238_v21 = vld [vmem:[#allocation7 + $0x20] sm:$0xff] }
 0x677   : > { %v1068_v38 = vmul.f32 2.1237322e-06, %v1991_v31  ;;  %v1079_v39 = vmul.f32 3.8918573e-05, %v1991_v31  ;;  %v2004_v44 = vmul.f32 0.70710677, %v1993_v32 }
 0x678   : > { %v1188_v41 = vmul.f32 2.1237322e-06, %v1995_v36  ;;  %v1199_v43 = vmul.f32 3.8918573e-05, %v1995_v36  ;;  %v2009_v51 = vmul.f32 0.70710677, %v1997_v37 }
 0x679   : > { %v1069_v45 = vadd.f32 0.00028619796, %v1068_v38  ;;  %v1080_v46 = vadd.f32 0.001143296, %v1079_v39  ;;  %v1106_v50 = vmul.f32 %v2004_v44, %v2004_v44 }
 0x67a   : > { %v1189_v48 = vadd.f32 0.00028619796, %v1188_v41  ;;  %v1200_v49 = vadd.f32 0.001143296, %v1199_v43  ;;  %v1146_v60 = vmul.f32 %v2009_v51, %v2009_v51  ;;  %v1261_v41 = vld [vmem:[#allocation7 + $0xd8] sm:$0xff] }
 0x67b   : > { %v1070_v52 = vmul.f32 %v1069_v45, %v1991_v31  ;;  %v1081_v53 = vmul.f32 %v1080_v46, %v1991_v31  ;;  %v2015_v59 = vmin.f32 %v1106_v50, 16.0  ;;  %v1277_v43 = vld [vmem:[#allocation7 + $0x158] sm:$0xff]  ;;  %1326 = vmatpush.msra.mxu2 %v1261_v41 }
 0x67c   : > { %v1190_v57 = vmul.f32 %v1189_v48, %v1995_v36  ;;  %v1201_v58 = vmul.f32 %v1200_v49, %v1995_v36  ;;  %v2023_v11 = vmin.f32 %v1146_v60, 16.0  ;;  %v1241_v48 = vld [vmem:[#allocation7 + $0x38] sm:$0xff]  ;;  %1346 = vmatpush.msra.mxu3 %v1277_v43 }
 0x67d   : > { %v1071_v63 = vadd.f32 0.0036580483, %v1070_v52  ;;  %v1082_v1 = vadd.f32 0.014752088, %v1081_v53  ;;  %v1108_v7 = vmul.f32 2.1237322e-06, %v2015_v59  ;;  %1310 = vmatpush.msra.mxu1 %v1241_v48  ;;  %1327 = vmatpush.msra.mxu2 %v1260_v55 }
 0x67e   : > { %v1191_v5 = vadd.f32 0.0036580483, %v1190_v57  ;;  %v1202_v6 = vadd.f32 0.014752088, %v1201_v58  ;;  %v1119_v10 = vmul.f32 3.8918573e-05, %v2015_v59  ;;  %1347 = vmatpush.msra.mxu3 %v1276_v56 }
 0x67f   : > { %v1072_v8 = vmul.f32 %v1071_v63, %v1991_v31  ;;  %v1083_v9 = vmul.f32 %v1082_v1, %v1991_v31  ;;  %v1109_v18 = vadd.f32 0.00028619796, %v1108_v7  ;;  %v1148_v33 = vmul.f32 2.1237322e-06, %v2023_v11  ;;  %v1259_v63 = vld [vmem:[#allocation7 + $0xc8] sm:$0xff]  ;;  %1311 = vmatpush.msra.mxu1 %v1240_v62  ;;  %v1234_v55 = vld [vmem:[#allocation7] sm:$0xff] }
 0x680   : > { %v1192_v15 = vmul.f32 %v1191_v5, %v1995_v36  ;;  %v1203_v16 = vmul.f32 %v1202_v6, %v1995_v36  ;;  %v1120_v27 = vadd.f32 0.001143296, %v1119_v10  ;;  %v1159_v39 = vmul.f32 3.8918573e-05, %v2023_v11  ;;  %1328 = vmatpush.msra.mxu2 %v1259_v63  ;;  %1348 = vmatpush.msra.mxu3 %v1275_v2  ;;  %v1239_v7 = vld [vmem:[#allocation7 + $0x28] sm:$0xff]  ;;  %v1253_v56 = vld [vmem:[#allocation7 + $0x98] sm:$0xff] }
 0x681   : > { %v1073_v25 = vadd.f32 0.05243302, %v1072_v8  ;;  %v1084_v26 = vadd.f32 0.112945676, %v1083_v9  ;;  %v1110_v30 = vmul.f32 %v1109_v18, %v2015_v59  ;;  %v1149_v52 = vadd.f32 0.00028619796, %v1148_v33  ;;  %1312 = vmatpush.msra.mxu1 %v1239_v7 }
 0x682   : > { %v1193_v28 = vadd.f32 0.05243302, %v1192_v15  ;;  %v1204_v29 = vadd.f32 0.112945676, %v1203_v16  ;;  %v1121_v38 = vmul.f32 %v1120_v27, %v2015_v59  ;;  %v1160_v42 = vadd.f32 0.001143296, %v1159_v39  ;;  %1329 = vmatpush.msra.mxu2 %v1258_v14  ;;  %1349 = vmatpush.msra.mxu3 %v1274_v3 }
 0x683   : > { %v1074_v34 = vmul.f32 %v1073_v25, %v1991_v31  ;;  %v1085_v35 = vmul.f32 %v1084_v26, %v1991_v31  ;;  %v1111_v46 = vadd.f32 0.0036580483, %v1110_v30  ;;  %v1150_v10 = vmul.f32 %v1149_v52, %v2023_v11  ;;  %v1287_v15 = vld [vmem:[#allocation7 + $0x1a8] sm:$0xff]  ;;  %1313 = vmatpush.msra.mxu1 %v1238_v21  ;;  %v1286_v25 = vld [vmem:[#allocation7 + $0x1a0] sm:$0xff]  ;;  %v1237_v26 = vld [vmem:[#allocation7 + $0x18] sm:$0xff] }
 0x684   : > { %v1205_v45 = vmul.f32 %v1204_v29, %v1995_v36  ;;  %v1122_v50 = vadd.f32 0.014752088, %v1121_v38  ;;  %v1194_v58 = vmul.f32 %v1193_v28, %v1995_v36  ;;  %v1161_v12 = vmul.f32 %v1160_v42, %v2023_v11  ;;  %1372 = vmatpush.msrb.mxu0 %v1287_v15  ;;  %v1256_v27 = vld [vmem:[#allocation7 + $0xb0] sm:$0xff]  ;;  %1330 = vmatpush.msra.mxu2 %v1257_v22  ;;  %v1285_v38 = vld [vmem:[#allocation7 + $0x198] sm:$0xff]  ;;  %v1282_v62 = vld [vmem:[#allocation7 + $0x180] sm:$0xff] }
 0x685   : > { %v1086_v49 = vadd.f32 0.4994258, %v1085_v35  ;;  %v1075_v53 = vadd.f32 0.18741608, %v1074_v34  ;;  %v1112_v6 = vmul.f32 %v1111_v46, %v2015_v59  ;;  %1350 = vmatpush.msra.mxu3 %v1273_v23  ;;  %v1151_v29 = vadd.f32 0.0036580483, %v1150_v10  ;;  %1314 = vmatpush.msra.mxu1 %v1237_v26 }
 0x686   : > { %v1206_v54 = vadd.f32 0.4994258, %v1205_v45  ;;  %v1123_v60 = vmul.f32 %v1122_v50, %v2015_v59  ;;  %v1195_v18 = vadd.f32 0.18741608, %v1194_v58  ;;  %v1162_v30 = vadd.f32 0.014752088, %v1161_v12  ;;  %1373 = vmatpush.msrb.mxu0 %v1286_v25  ;;  %1331 = vmatpush.msra.mxu2 %v1256_v27 }
 0x687   : > { %v1087_v57 = vmul.f32 %v1086_v49, %v1991_v31  ;;  %v1076_v16 = vmul.f32 %v1075_v53, %v1991_v31  ;;  %v1113_v28 = vadd.f32 0.05243302, %v1112_v6  ;;  %v1272_v33 = vld [vmem:[#allocation7 + $0x130] sm:$0xff]  ;;  %v1271_v45 = vld [vmem:[#allocation7 + $0x128] sm:$0xff]  ;;  %v1254_v49 = vld [vmem:[#allocation7 + $0xa0] sm:$0xff]  ;;  %v1152_v4 = vmul.f32 %v1151_v29, %v2023_v11 }
 0x688   : > { %v1207_v1 = vmul.f32 %v1206_v54, %v1995_v36  ;;  %v1124_v9 = vadd.f32 0.112945676, %v1123_v60  ;;  %v1196_v35 = vmul.f32 %v1195_v18, %v1995_v36  ;;  %1351 = vmatpush.msra.mxu3 %v1272_v33  ;;  %v1236_v39 = vld [vmem:[#allocation7 + $0x10] sm:$0xff]  ;;  %v1163_v43 = vmul.f32 %v1162_v30, %v2023_v11  ;;  %1374 = vmatpush.msrb.mxu0 %v1285_v38  ;;  %v1270_v50 = vld [vmem:[#allocation7 + $0x120] sm:$0xff]  ;;  %v1283_v36 = vld [vmem:[#allocation7 + $0x188] sm:$0xff] }
 0x689   : > { %v2038_v5 = vadd.f32 1.0, %v1087_v57  ;;  %v1077_v34 = vadd.f32 1.1283791, %v1076_v16  ;;  %1315 = vmatpush.msra.mxu1 %v1236_v39  ;;  %v1284_v46 = vld [vmem:[#allocation7 + $0x190] sm:$0xff]  ;;  %1332 = vmatpush.msra.mxu2 %v1255_v40  ;;  %v1269_v57 = vld [vmem:[#allocation7 + $0x118] sm:$0xff]  ;;  %v1114_v42 = vmul.f32 %v1113_v28, %v2015_v59  ;;  %v1251_v15 = vld [vmem:[#allocation7 + $0x88] sm:$0xff] }
 0x68a   : > { %v2041_v8 = vadd.f32 1.0, %v1207_v1  ;;  %v1125_v31 = vmul.f32 %v1124_v9, %v2015_v59  ;;  %1352 = vmatpush.msra.mxu3 %v1271_v45  ;;  %1375 = vmatpush.msrb.mxu0 %v1284_v46  ;;  %v1197_v58 = vadd.f32 1.1283791, %v1196_v35  ;;  %v1164_v61 = vadd.f32 0.112945676, %v1163_v43  ;;  %v1252_v6 = vld [vmem:[#allocation7 + $0x90] sm:$0xff] }
 0x68b   : > { %1621 = vrcp.f32 %v2038_v5  ;;  %1316 = vmatpush.msra.mxu1 %v1235_v47  ;;  %1333 = vmatpush.msra.mxu2 %v1254_v49  ;;  %v1078_v63 = vmul.f32 %v1077_v34, %v1982_v20  ;;  %v1268_v7 = vld [vmem:[#allocation7 + $0x110] sm:$0xff]  ;;  %v1098_v9 = vand.u32 2147483647, %v2038_v5  ;;  %v1100_v10 = vand.u32 2147483648, %v2038_v5  ;;  %v1267_v16 = vld [vmem:[#allocation7 + $0x108] sm:$0xff]  ;;  %v1250_v27 = vld [vmem:[#allocation7 + $0x80] sm:$0xff] }
 0x68c   : > { %1623 = vrcp.f32 %v2041_v8  ;;  %v1126_v41 = vadd.f32 0.4994258, %v1125_v31  ;;  %1353 = vmatpush.msra.mxu3 %v1270_v50  ;;  %1376 = vmatpush.msrb.mxu0 %v1283_v36  ;;  %v1165_v14 = vmul.f32 %v1164_v61, %v2023_v11  ;;  %v1220_v3 = vand.u32 2147483648, %v2041_v8  ;;  %v1266_v28 = vld [vmem:[#allocation7 + $0x100] sm:$0xff] }
 0x68d   : > { %1317 = vmatpush.msra.mxu1 %v1234_v55  ;;  %1334 = vmatpush.msra.mxu2 %v1253_v56  ;;  %v1218_v21 = vand.u32 2147483647, %v2041_v8  ;;  %vm1094_vm8 = vweird.f32 %v2038_v5  ;;  %v1115_v25 = vadd.f32 0.18741608, %v1114_v42  ;;  %v1153_v26 = vadd.f32 0.05243302, %v1152_v4 }
 0x68e   : > { %v1127_v54 = vmul.f32 %v1126_v41, %v2015_v59  ;;  %1354 = vmatpush.msra.mxu3 %v1269_v57  ;;  %1377 = vmatpush.msrb.mxu0 %v1282_v62  ;;  %v1166_v22 = vadd.f32 0.4994258, %v1165_v14  ;;  %v1101_v31 = vor.u32 1.1754944e-38, %v1100_v10  ;;  %vm1214_vm10 = vweird.f32 %v2041_v8 }
 0x68f   : > { %1335 = vmatpush.msra.mxu2 %v1252_v6  ;;  %vm1099_vm11 = vcmp.eq.f32.partialorder %v1098_v9, 8.507059e+37  ;;  %v1221_v34 = vor.u32 1.1754944e-38, %v1220_v3  ;;  %vm1219_vm13 = vcmp.eq.f32.partialorder %v1218_v21, 8.507059e+37  ;;  %v1116_v43 = vmul.f32 %v1115_v25, %v2015_v59 }
 0x690   : > { %v2062_v2 = vadd.f32 1.0, %v1127_v54  ;;  %1355 = vmatpush.msra.mxu3 %v1268_v7  ;;  %v1167_v30 = vmul.f32 %v1166_v22, %v2023_v11  ;;  %v1154_v45 = vmul.f32 %v1153_v26, %v2023_v11  ;;  %v1061_v49 = vmul.f32 0.5, %v1979_v19 }
 0x691   : > { %v2051_v48 = vpop.eup %1621  ;;  %1336 = vmatpush.msra.mxu2 %v1251_v15  ;;  %v1060_v25 = vmul.f32 0.5, %v1997_v37 }
 0x692   : > { %v2053_v52 = vpop.eup %1623  ;;  %v1090_v53 = vmul.f32 %v2051_v48, %v2038_v5  ;;  %vm1095_vm6 = vweird.f32 %v2051_v48  ;;  %1625 = vrcp.f32 %v2062_v2  ;;  %1356 = vmatpush.msra.mxu3 %v1267_v16  ;;  %v1198_v5 = vmul.f32 %v1197_v58, %v1985_v24 }
 0x693   : > { %v1210_v60 = vmul.f32 %v2053_v52, %v2041_v8  ;;  %vm1215_vm7 = vweird.f32 %v2053_v52  ;;  %vm1096_vm9 = vmor %vm1094_vm8, %vm1095_vm6  ;;  %v1168_v39 = vadd.f32 1.0, %v1167_v30  ;;  %1337 = vmatpush.msra.mxu2 %v1250_v27  ;;  %v1140_v54 = vand.u32 2147483648, %v2062_v2 }
 0x694   : > { %v1091_v1 = vsub.f32 1.0, %v1090_v53  ;;  %vm1216_vm12 = vmor %vm1214_vm10, %vm1215_vm7  ;;  %1357 = vmatpush.msra.mxu3 %v1266_v28  ;;  %v1117_v53 = vadd.f32 1.1283791, %v1116_v43  ;;  %v1155_v55 = vadd.f32 0.18741608, %v1154_v45  ;;  %vm1134_vm15 = vweird.f32 %v2062_v2 }
 0x695   : > { %v1211_v12 = vsub.f32 1.0, %v1210_v60  ;;  %1627 = vrcp.f32 %v1168_v39  ;;  %v1138_v57 = vand.u32 2147483647, %v2062_v2  ;;  %v1180_v9 = vand.u32 2147483648, %v1168_v39 }
 0x696   : > { %v1092_v20 = vmul.f32 %v2051_v48, %v1091_v1  ;;  %v1156_v19 = vmul.f32 %v1155_v55, %v2023_v11  ;;  %v1178_v14 = vand.u32 2147483647, %v1168_v39  ;;  %vm1174_vm3 = vweird.f32 %v1168_v39 }
 0x697   : > { %v1212_v18 = vmul.f32 %v2053_v52, %v1211_v12  ;;  %vm1139_vm1 = vcmp.eq.f32.partialorder %v1138_v57, 8.507059e+37  ;;  %v1059_v11 = vmul.f32 0.5, %v1993_v32  ;;  %v1181_v15 = vor.u32 1.1754944e-38, %v1180_v9  ;;  %v1606_v32 = vld [vmem:[%s2131_s11] ss:$0 sm:$0xff] }
 0x698   : > { %v1093_v23 = vadd.f32 %v2051_v48, %v1092_v20  ;;  %v1626_v8 = vpop.eup %1625  ;;  %v1157_v10 = vadd.f32 1.1283791, %v1156_v19  ;;  %vm1179_vm5 = vcmp.eq.f32.partialorder %v1178_v14, 8.507059e+37 }
 0x699   : > { %v1213_v29 = vadd.f32 %v2053_v52, %v1212_v18  ;;  %v1130_v24 = vmul.f32 %v1626_v8, %v2062_v2  ;;  %vm1135_vm14 = vweird.f32 %v1626_v8 }
 0x69a   : > { %v1097_v33 = vsel %vm1096_vm9, %v2051_v48, %v1093_v23  ;;  %v1058_v48 = vmul.f32 0.5, %v1977_v17  ;;  %vm1136_vm0 = vmor %vm1134_vm15, %vm1135_vm14  ;;  %v1141_v17 = vor.u32 1.1754944e-38, %v1140_v54 }
 0x69b   : > { %v1102_v35 = vsel %vm1099_vm11, %v1101_v31, %v1097_v33  ;;  %v1217_v38 = vsel %vm1216_vm12, %v2053_v52, %v1213_v29  ;;  %v1131_v36 = vsub.f32 1.0, %v1130_v24  ;;  %v1628_v60 = vpop.eup %1627 }
 0x69c   : > { %v1103_v40 = vmul.f32 %v1102_v35, %v1078_v63  ;;  %v1222_v41 = vsel %vm1219_vm13, %v1221_v34, %v1217_v38  ;;  %v1170_v62 = vmul.f32 %v1628_v60, %v1168_v39  ;;  %v1118_v63 = vmul.f32 %v1117_v53, %v2004_v44 }
 0x69d   : > { %v1223_v46 = vmul.f32 %v1222_v41, %v1198_v5  ;;  %v1132_v59 = vmul.f32 %v1626_v8, %v1131_v36  ;;  %vm1175_vm2 = vweird.f32 %v1628_v60  ;;  %v1158_v44 = vmul.f32 %v1157_v10, %v2009_v51 }
 0x69e   : > { %v1540_v47 = vclamps-f32 %v1103_v40, 1.0  ;;  %v1171_v6 = vsub.f32 1.0, %v1170_v62  ;;  %vm1176_vm4 = vmor %vm1174_vm3, %vm1175_vm2 }
 0x69f   : > { %v1543_v50 = vclamps-f32 %v1223_v46, 1.0  ;;  %v1133_v61 = vadd.f32 %v1626_v8, %v1132_v59 }
 0x6a0   : > { %v1226_v52 = vadd.f32 1.0, %v1540_v47  ;;  %v1172_v12 = vmul.f32 %v1628_v60, %v1171_v6 }
 0x6a1   : > { %v1229_v56 = vadd.f32 1.0, %v1543_v50  ;;  %v1137_v1 = vsel %vm1136_vm0, %v1626_v8, %v1133_v61 }
 0x6a2   : > { %v1230_v58 = vmul.f32 %v1226_v52, %v1058_v48  ;;  %v1142_v4 = vsel %vm1139_vm1, %v1141_v17, %v1137_v1  ;;  %v1173_v20 = vadd.f32 %v1628_v60, %v1172_v12 }
 0x6a3   : > { %v1233_v42 = vmul.f32 %v1229_v56, %v1061_v49  ;;  %v1143_v7 = vmul.f32 %v1142_v4, %v1118_v63  ;;  %v1607_v49 = vld [vmem:[%s2132_s12] ss:$0 sm:$0xff] }
 0x6a4   : > { %1318 = vmatmul.f32.vlgmr.msra.gmra.mxu1 %v1230_v58  ;;  %v1177_v16 = vsel %vm1176_vm4, %v1628_v60, %v1173_v20 }
 0x6a5   : > { %1378 = vmatmul.f32.vlgmr.msrb.gmra.mxu0 %v1233_v42  ;;  %v1541_v2 = vclamps-f32 %v1143_v7, 1.0  ;;  %v1182_v21 = vsel %vm1179_vm5, %v1181_v15, %v1177_v16 }
 0x6a6   : > { %v1183_v22 = vmul.f32 %v1182_v21, %v1158_v44 }
 0x6a7   : > { %v1227_v3 = vadd.f32 1.0, %v1541_v2 }
 0x6a8   : > { %v1542_v23 = vclamps-f32 %v1183_v22, 1.0 }
 0x6a9   : > { %v1231_v18 = vmul.f32 %v1227_v3, %v1059_v11 }
 0x6aa   : > { %v1228_v26 = vadd.f32 1.0, %v1542_v23 }
 0x6ab   : > { %1338 = vmatmul.f32.vlgmr.msra.gmra.mxu2 %v1231_v18 }
 0x6ac   : > { %v1232_v27 = vmul.f32 %v1228_v26, %v1060_v25 }
 0x6ae   : > { %1358 = vmatmul.f32.vlgmr.msra.gmra.mxu3 %v1232_v27 }
 0x721   : > { %v1319_v28 = vpop.f32.mrf.mxu1 }
 0x722   : > { %v1320_v29 = vadd.f32 %v1606_v32, %v1319_v28  ;;  %v1379_v5 = vpop.f32.mrf.mxu0 }
 0x72e   : > { %v1339_v31 = vpop.f32.mrf.mxu2 }
 0x72f   : > { %v1340_v51 = vadd.f32 %v1339_v31, %v1320_v29 }
 0x731   : > { %v1359_v30 = vpop.f32.mrf.mxu3 }
 0x732   : > { %v1360_v33 = vadd.f32 %v1359_v30, %v1340_v51 }
 0x734   : > { %v1380_v34 = vadd.f32 %v1379_v5, %v1360_v33 }
 0x736   : > { %v1382_v35 = vadd.f32 %v1380_v34, %v1968_v13 }
 0x738   : > { %1385 = vadd.xlane.f32.xlu2 %v1382_v35 }
 0x7ab   : > { %v1386_v38 = vpop.xlane.xlu2 %1385 }
 0x7ac   : > { %v1387_v37 = vmul.f32 %v1386_v38, %v1953_v0 }
 0x7ae   : > { %v1388_v39 = vsub.f32 %v1382_v35, %v1387_v37 }
 0x7b0   : > { %v1389_v8 = vmul.f32 %v1388_v39, %v1388_v39 }
 0x7b2   : > { %1390 = vadd.xlane.f32.xlu2 %v1389_v8 }
 0x825   : > { %v1391_v40 = vpop.xlane.xlu2 %1390 }
 0x826   : > { %v1392_v41 = vmul.f32 %v1391_v40, %v1953_v0  ;;  %v1608_v0 = vld [vmem:[%s2145_s23] ss:$0 sm:$0xff] }
 0x828   : > { %v1393_v43 = vadd.f32 1e-12, %v1392_v41 }
 0x82a   : > { %1629 = vrsqrt.f32 %v1393_v43  ;;  %vm1400_vm7 = vweird.f32 %v1393_v43 }
 0x830   : > { %v1630_v45 = vpop.eup %1629 }
 0x831   : > { %v1395_v46 = vmul.f32 %v1630_v45, %v1393_v43  ;;  %vm1401_vm6 = vweird.f32 %v1630_v45 }
 0x832   : > { %vm1402_vm8 = vmor %vm1400_vm7, %vm1401_vm6 }
 0x833   : > { %v1396_v24 = vmul.f32 %v1630_v45, %v1395_v46 }
 0x835   : > { %v1397_v47 = vmul.f32 0.5, %v1396_v24 }
 0x837   : > { %v1398_v48 = vsub.f32 1.5, %v1397_v47 }
 0x839   : > { %v1399_v13 = vmul.f32 %v1630_v45, %v1398_v48 }
 0x83b   : > { %v1403_v50 = vsel %vm1402_vm8, %v1630_v45, %v1399_v13 }
 0x83c   : > { %v1404_v36 = vmul.f32 %v1403_v50, %v1388_v39 }
 0x83e   : > { %v1408_v52 = vmul.f32 %v1607_v49, %v1404_v36 }
 0x840   : > { %v1412_v53 = vadd.f32 %v1608_v0, %v1408_v52 }
 0x842   : > { %1413 = vst [vmem:[%s543_s28] sm:$0xff] %v1412_v53 }
 0x843 PF: > { %s2147_s15 = sld [smem:[#allocation12_spill]] }
 0x849   : > { %s27_s29 = sadd.s32 1, %s2147_s15  }
 0x84a   : > { %p24_p7 = scmp.ge.s32.totalorder %s27_s29, 4  }
 0x84c   :  { %26 = sbr.rel (!%p24_p7) target bundleno = 8 (0x8), region = 126 }
 0x851   :  { %1433 = vsyncpa [#allocation3], 1 }
 0x852   :  { %1435 = vsyncpa [#allocation3 + $0x1], 1 }
 0x853   :  { %1436 = vsyncpa [#allocation5], 1 }
 0x854   :  { %1437 = vsyncpa [#allocation8], 1 }

// kernel: bert_forward.5
= control target key start
LH: loop header
LB: loop body
LE: loop exit
PB: predicated region body
PF: predicated region fallthrough
CT: control target
= control target key end

     0   :  { %s2085_s0 = inlined_call_operand.vmem [shape: f32[2,8,128], index: 0, kind: input, shape index: {}]   ;;  %s2086_s1 = inlined_call_operand.vmem [shape: f32[2,1,8], index: 1, kind: input, shape index: {}]   ;;  %s2087_s2 = inlined_call_operand.hbm [shape: f32[128,384], index: 2, kind: input, shape index: {}]   ;;  %s2088_s3 = inlined_call_operand.vmem [shape: f32[1,384], index: 3, kind: input, shape index: {}]   ;;  %s2089_s4 = inlined_call_operand.vmem [shape: f32[128,128], index: 4, kind: input, shape index: {}]   ;;  %s2090_s5 = inlined_call_operand.vmem [shape: f32[1,128], index: 5, kind: input, shape index: {}]   ;;  %s2091_s6 = inlined_call_operand.vmem [shape: f32[1,128], index: 6, kind: input, shape index: {}]   ;;  %s2092_s7 = inlined_call_operand.vmem [shape: f32[1,128], index: 7, kind: input, shape index: {}]   ;;  %s2093_s8 = inlined_call_operand.hbm [shape: f32[128,512], index: 8, kind: input, shape index: {}]   ;;  %s2094_s9 = inlined_call_operand.vmem [shape: f32[1,512], index: 9, kind: input, shape index: {}]   ;;  %s2095_s10 = inlined_call_operand.hbm [shape: f32[512,128], index: 10, kind: input, shape index: {}]   ;;  %s2096_s11 = inlined_call_operand.vmem [shape: f32[1,128], index: 11, kind: input, shape index: {}]   ;;  %s2097_s12 = inlined_call_operand.vmem [shape: f32[1,128], index: 12, kind: input, shape index: {}]   ;;  %s2098_s13 = inlined_call_operand.vmem [shape: f32[1,128], index: 13, kind: input, shape index: {}]   ;;  %s2099_s14 = inlined_call_operand.vmem [shape: f32[2,8,128], index: 14, kind: output, shape index: {}]  }
   0x1   :  { %2101 = sst [smem:[#allocation10_spill]] %s2087_s2 }
   0x2   :  { %2102 = sst [smem:[#allocation11_spill]] %s2093_s8 }
   0x3   :  { %2103 = sst [smem:[#allocation12_spill]] %s2099_s14 }
   0x4   :  { %19 = vsyncpa [#allocation3], 0 }
   0x5   :  { %20 = vsyncpa [#allocation5], 0  ;;  %s1784_s29 = smov 0  }
   0x6 LB: > { %2104 = sst [smem:[#allocation9_spill]] %s1696_s29  ;;  %s1793_s17 = sadd.s32 4294967295, %s1696_s29   ;;  %s1696_s29 = sphi %s1784_s29, %s26_s29  }
   0x7   : > { %s2105_s8 = sld [smem:[#allocation11_spill]]  ;;  %p1492_p0 = scmp.ge.s32.totalorder %s1696_s29, 1 }
   0x8   : > { %p361_p1 = scmp.lt.s32.totalorder %s1696_s29, 3  ;;  %p1539_p2 = scmp.eq.s32.totalorder %s1793_s17, 0 }
   0x9   : > { %s1698_s19 = smov [#allocation4]   ;;  %s2107_s2 = sld [smem:[#allocation10_spill]] }
   0xa   : > { %p1798_p3 = pnand %p1492_p0, %p361_p1  ;;  %s403_s20 = sshll.u32 %s1698_s19, 4  ;;  %s404_s20 = int_to_ptr.vmem [resolvable:$true] %s403_s20 }
   0xb   : > { %s1699_s25 = smov [#allocation2]   ;;  %s1700_s27 = smov 512  }
   0xc   : > { %p1529_p4 = pneg %p1798_p3  ;;  %s374_s26 = sshll.u32 %s1699_s25, 4  ;;  %s375_s26 = int_to_ptr.vmem [resolvable:$true] %s374_s26 }
   0xd   : > { %s401_s16 = sshll.u32 %s2105_s8, 4  ;;  %s1701_s28 = smov 32   ;;  %s402_s16 = int_to_ptr.hbm [resolvable:$true] %s401_s16 }
   0xe   : > { %p1809_p5 = pnand %p1539_p2, %p1529_p4  ;;  %s418_s19 = sshll.u32 %s2095_s10, 4  ;;  %s419_s19 = int_to_ptr.hbm [resolvable:$true] %s418_s19 }
   0xf   : > { %s372_s23 = sshll.u32 %s2107_s2, 4  ;;  %s1702_s21 = smov 384   ;;  %s373_s23 = int_to_ptr.hbm [resolvable:$true] %s372_s23 }
  0x10   : > { %1535 = dma.hbm_to_vmem [thread:$0]  (!%p1809_p5), %s402_s16, 8192, %s404_s20, [#allocation5], %s1700_s27, %s1700_s27, %s1701_s28  }
  0x11   : > { %s1703_s22 = smov 24   ;;  %s1704_s2 = smov [#allocation6]  }
  0x12   : > { %1532 = dma.hbm_to_vmem [thread:$0]  (!%p1809_p5), %s373_s23, 6144, %s375_s26, [#allocation3], %s1702_s21, %s1702_s21, %s1703_s22  }
  0x13   : > { %s420_s8 = sshll.u32 %s1704_s2, 4  ;;  %s1705_s29 = smov 128   ;;  %s421_s8 = int_to_ptr.vmem [resolvable:$true] %s420_s8 }
  0x14   : > { %s1706_s14 = smov 8   ;;  %458 = sbr.rel (%p1798_p3) target bundleno = 2109 (0x83d), region = 76 }
  0x15   : > { %1538 = dma.hbm_to_vmem [thread:$0]  (!%p1809_p5), %s419_s19, 8192, %s421_s8, [#allocation5], %s1705_s29, %s1705_s29, %s1706_s14  }
  0x19   : > { %1687 = dma.done.wait (%p1539_p2), [#allocation3], 6144  }
  0x1a   : > { %1689 = vsyncadd (%p1539_p2), [#allocation3], 4294961152 }
  0x1b   : > { %1691 = dma.done.wait (%p1539_p2), [#allocation5], 16384  }
  0x1c   : > { %1693 = vsyncadd (%p1539_p2), [#allocation5], 4294950912  ;;  %v577_v0 = vld [vmem:[#allocation2 + $0x170] sm:$0xff]  ;;  %v574_v1 = vld [vmem:[#allocation2 + $0x158] sm:$0xff]  ;;  %p516_p6 = scmp.lt.s32.totalorder %s1793_s17, 1  ;;  %vm663_vm0 = vcmask 523264  }
  0x1d   : > { %v576_v2 = vld [vmem:[#allocation2 + $0x168] sm:$0xff]  ;;  %607 = vmatpush.msra.mxu1 %v577_v0  ;;  %v573_v3 = vld [vmem:[#allocation2 + $0x150] sm:$0xff]  ;;  %v571_v4 = vld [vmem:[#allocation2 + $0x140] sm:$0xff]  ;;  %s1707_s20 = smov 64   ;;  %vm695_vm1 = vcmask 64512   ;;  %s2109_s23 = sld [smem:[#allocation12_spill]] }
  0x1e   : > { %587 = vmatpush.msra.mxu0 %v576_v2  ;;  %v570_v5 = vld [vmem:[#allocation2 + $0x138] sm:$0xff]  ;;  %v568_v6 = vld [vmem:[#allocation2 + $0x128] sm:$0xff]  ;;  %v567_v7 = vld [vmem:[#allocation2 + $0x120] sm:$0xff]  ;;  %s2112_s17 = smov (!%p516_p6, %s1793_s17), 1 }
  0x1f   : > { %608 = vmatpush.msra.mxu1 %v574_v1  ;;  %v565_v8 = vld [vmem:[#allocation2 + $0x110] sm:$0xff]  ;;  %v564_v9 = vld [vmem:[#allocation2 + $0x108] sm:$0xff]  ;;  %v562_v10 = vld [vmem:[#allocation2 + $0xf8] sm:$0xff]  ;;  %s1501_s2 = sshll.u32 %s2112_s17, 3  ;;  %s522_s25 = scalar_lea.vmem %s2086_s1, %s2112_s17 }
  0x20   : > { %588 = vmatpush.msra.mxu0 %v573_v3  ;;  %v561_v11 = vld [vmem:[#allocation2 + $0xf0] sm:$0xff]  ;;  %v559_v12 = vld [vmem:[#allocation2 + $0xe0] sm:$0xff]  ;;  %v558_v13 = vld [vmem:[#allocation2 + $0xd8] sm:$0xff]  ;;  %s519_s29 = scalar_lea.vmem %s2085_s0, %s1501_s2 }
  0x21   : > { %609 = vmatpush.msra.mxu1 %v571_v4  ;;  %v578_v14 = vld [vmem:[#allocation2 + $0x178] sm:$0xff]  ;;  %v575_v15 = vld [vmem:[#allocation2 + $0x160] sm:$0xff]  ;;  %v556_v16 = vld [vmem:[#allocation2 + $0xc8] sm:$0xff] }
  0x22   : > { %589 = vmatpush.msra.mxu0 %v570_v5  ;;  %v555_v17 = vld [vmem:[#allocation2 + $0xc0] sm:$0xff]  ;;  %627 = vmatpush.msra.mxu2 %v578_v14  ;;  %v572_v18 = vld [vmem:[#allocation2 + $0x148] sm:$0xff]  ;;  %v553_v19 = vld [vmem:[#allocation2 + $0xb0] sm:$0xff] }
  0x23   : > { %610 = vmatpush.msra.mxu1 %v568_v6  ;;  %v552_v20 = vld [vmem:[#allocation2 + $0xa8] sm:$0xff]  ;;  %v550_v21 = vld [vmem:[#allocation2 + $0x98] sm:$0xff]  ;;  %v569_v22 = vld [vmem:[#allocation2 + $0x130] sm:$0xff]  ;;  %s526_s24 = scalar_lea.vmem %s2109_s23, %s1501_s2 }
  0x24   : > { %590 = vmatpush.msra.mxu0 %v567_v7  ;;  %628 = vmatpush.msra.mxu2 %v575_v15  ;;  %v547_v23 = vld [vmem:[#allocation2 + $0x80] sm:$0xff]  ;;  %v549_v24 = vld [vmem:[#allocation2 + $0x90] sm:$0xff]  ;;  %v546_v25 = vld [vmem:[#allocation2 + $0x78] sm:$0xff] }
  0x25   : > { %611 = vmatpush.msra.mxu1 %v565_v8  ;;  %v566_v26 = vld [vmem:[#allocation2 + $0x118] sm:$0xff]  ;;  %v563_v27 = vld [vmem:[#allocation2 + $0x100] sm:$0xff]  ;;  %v544_v28 = vld [vmem:[#allocation2 + $0x68] sm:$0xff] }
  0x26   : > { %591 = vmatpush.msra.mxu0 %v564_v9  ;;  %629 = vmatpush.msra.mxu2 %v572_v18  ;;  %v543_v29 = vld [vmem:[#allocation2 + $0x60] sm:$0xff]  ;;  %v560_v30 = vld [vmem:[#allocation2 + $0xe8] sm:$0xff]  ;;  %v541_v31 = vld [vmem:[#allocation2 + $0x50] sm:$0xff] }
  0x27   : > { %612 = vmatpush.msra.mxu1 %v562_v10  ;;  %v540_v32 = vld [vmem:[#allocation2 + $0x48] sm:$0xff]  ;;  %v557_v33 = vld [vmem:[#allocation2 + $0xd0] sm:$0xff]  ;;  %v538_v34 = vld [vmem:[#allocation2 + $0x38] sm:$0xff] }
  0x28   : > { %592 = vmatpush.msra.mxu0 %v561_v11  ;;  %630 = vmatpush.msra.mxu2 %v569_v22  ;;  %v537_v35 = vld [vmem:[#allocation2 + $0x30] sm:$0xff]  ;;  %v554_v36 = vld [vmem:[#allocation2 + $0xb8] sm:$0xff]  ;;  %v535_v37 = vld [vmem:[#allocation2 + $0x20] sm:$0xff] }
  0x29   : > { %613 = vmatpush.msra.mxu1 %v559_v12  ;;  %v534_v38 = vld [vmem:[#allocation2 + $0x18] sm:$0xff]  ;;  %v551_v39 = vld [vmem:[#allocation2 + $0xa0] sm:$0xff]  ;;  %v532_v40 = vld [vmem:[#allocation2 + $0x8] sm:$0xff] }
  0x2a   : > { %593 = vmatpush.msra.mxu0 %v558_v13  ;;  %631 = vmatpush.msra.mxu2 %v566_v26  ;;  %v531_v41 = vld [vmem:[#allocation2] sm:$0xff]  ;;  %v548_v43 = vld [vmem:[#allocation2 + $0x88] sm:$0xff]  ;;  %v545_v44 = vld [vmem:[#allocation2 + $0x70] sm:$0xff] }
  0x2b   : > { %614 = vmatpush.msra.mxu1 %v556_v16  ;;  %v1842_v42 = vld [vmem:[%s519_s29] sm:$0xff]  ;;  %v542_v45 = vld [vmem:[#allocation2 + $0x58] sm:$0xff]  ;;  %v536_v47 = vld [vmem:[#allocation2 + $0x28] sm:$0xff] }
  0x2c   : > { %594 = vmatpush.msra.mxu0 %v555_v17  ;;  %632 = vmatpush.msra.mxu2 %v563_v27  ;;  %v539_v46 = vld [vmem:[#allocation2 + $0x40] sm:$0xff]  ;;  %v533_v48 = vld [vmem:[#allocation2 + $0x10] sm:$0xff]  ;;  %v654_v9 = vld [vmem:[%s2089_s4 + $0x38] sm:$0xff] }
  0x2d   : > { %615 = vmatpush.msra.mxu1 %v553_v19  ;;  %v579_v49 = vld [vmem:[%s2088_s3] sm:$0x7]  ;;  %v653_v10 = vld [vmem:[%s2089_s4 + $0x30] sm:$0xff]  ;;  %v652_v11 = vld [vmem:[%s2089_s4 + $0x28] sm:$0xff] }
  0x2e   : > { %595 = vmatpush.msra.mxu0 %v552_v20  ;;  %633 = vmatpush.msra.mxu2 %v560_v30  ;;  %v582_v50 = vperm.slane %v579_v49, 1  ;;  %v581_v51 = vperm.slane %v579_v49, 0  ;;  %v583_v56 = vperm.slane %v579_v49, 2  ;;  %v528_v60 = vld [vmem:[%s522_s25] sm:$0x1]  ;;  %v650_v13 = vld [vmem:[%s2089_s4 + $0x18] sm:$0xff] }
  0x2f   : > { %616 = vmatpush.msra.mxu1 %v550_v21  ;;  %v529_v61 = vsub.f32 1.0, %v528_v60  ;;  %v651_v12 = vld [vmem:[%s2089_s4 + $0x20] sm:$0xff]  ;;  %v649_v14 = vld [vmem:[%s2089_s4 + $0x10] sm:$0xff]  ;;  %v648_v15 = vld [vmem:[%s2089_s4 + $0x8] sm:$0xff] }
  0x30   : > { %596 = vmatpush.msra.mxu0 %v549_v24  ;;  %634 = vmatpush.msra.mxu2 %v557_v33  ;;  %v647_v21 = vld [vmem:[%s2089_s4] sm:$0xff]  ;;  %v661_v33 = vld [vmem:[%s2089_s4 + $0x70] sm:$0xff] }
  0x31   : > { %617 = vmatpush.msra.mxu1 %v547_v23  ;;  %v530_v62 = vmul.f32 -10000.0, %v529_v61 }
  0x32   : > { %597 = vmatpush.msra.mxu0 %v546_v25  ;;  %635 = vmatpush.msra.mxu2 %v554_v36  ;;  %v658_v36 = vld [vmem:[%s2089_s4 + $0x58] sm:$0xff] }
  0x33   : > { %618 = vmatpush.msra.mxu1 %v544_v28  ;;  %v692_v63 = vperm.slane %v530_v62, 0 }
  0x34   : > { %598 = vmatpush.msra.mxu0 %v543_v29  ;;  %636 = vmatpush.msra.mxu2 %v551_v39 }
  0x35   : > { %619 = vmatpush.msra.mxu1 %v541_v31 }
  0x36   : > { %599 = vmatpush.msra.mxu0 %v540_v32  ;;  %637 = vmatpush.msra.mxu2 %v548_v43  ;;  %v662_v32 = vld [vmem:[%s2089_s4 + $0x78] sm:$0xff]  ;;  %v655_v43 = vld [vmem:[%s2089_s4 + $0x40] sm:$0xff] }
  0x37   : > { %620 = vmatpush.msra.mxu1 %v538_v34  ;;  %v660_v34 = vld [vmem:[%s2089_s4 + $0x68] sm:$0xff] }
  0x38   : > { %600 = vmatpush.msra.mxu0 %v537_v35  ;;  %638 = vmatpush.msra.mxu2 %v545_v44  ;;  %v659_v35 = vld [vmem:[%s2089_s4 + $0x60] sm:$0xff] }
  0x39   : > { %621 = vmatpush.msra.mxu1 %v535_v37  ;;  %v657_v37 = vld [vmem:[%s2089_s4 + $0x50] sm:$0xff] }
  0x3a   : > { %601 = vmatpush.msra.mxu0 %v534_v38  ;;  %639 = vmatpush.msra.mxu2 %v542_v45  ;;  %v656_v38 = vld [vmem:[%s2089_s4 + $0x48] sm:$0xff]  ;;  %v1564_v45 = vld [vmem:[%s2090_s5] ss:$0 sm:$0xff] }
  0x3b   : > { %622 = vmatpush.msra.mxu1 %v532_v40 }
  0x3c   : > { %602 = vmatpush.msra.mxu0 %v531_v41  ;;  %623 = vmatmul.f32.vlgmr.msra.gmra.mxu1 %v1842_v42 }
  0x3d   : > { %603 = vmatmul.f32.vlgmr.msra.gmra.mxu0 %v1842_v42  ;;  %640 = vmatpush.msra.mxu2 %v539_v46 }
  0x3e   : > { %832 = vmatpush.msrb.mxu0 %v654_v9  ;;  %v935_v9 = vld [vmem:[#allocation4 + $0x180] sm:$0xff] }
  0x3f   : > { %641 = vmatpush.msra.mxu2 %v536_v47 }
  0x40   : > { %833 = vmatpush.msrb.mxu0 %v653_v10  ;;  %v936_v10 = vld [vmem:[#allocation4 + $0x188] sm:$0xff] }
  0x41   : > { %642 = vmatpush.msra.mxu2 %v533_v48 }
  0x42   : > { %643 = vmatmul.f32.vlgmr.msra.gmra.mxu2 %v1842_v42  ;;  %834 = vmatpush.msrb.mxu0 %v652_v11  ;;  %v937_v11 = vld [vmem:[#allocation4 + $0x190] sm:$0xff] }
  0x44   : > { %835 = vmatpush.msrb.mxu0 %v651_v12  ;;  %v938_v12 = vld [vmem:[#allocation4 + $0x198] sm:$0xff] }
  0x46   : > { %836 = vmatpush.msrb.mxu0 %v650_v13  ;;  %v931_v13 = vld [vmem:[#allocation4 + $0x160] sm:$0xff] }
  0x48   : > { %837 = vmatpush.msrb.mxu0 %v649_v14  ;;  %v932_v14 = vld [vmem:[#allocation4 + $0x168] sm:$0xff] }
  0x4a   : > { %838 = vmatpush.msrb.mxu0 %v648_v15  ;;  %v933_v15 = vld [vmem:[#allocation4 + $0x170] sm:$0xff] }
  0x4c   : > { %839 = vmatpush.msrb.mxu0 %v647_v21  ;;  %v923_v21 = vld [vmem:[#allocation4 + $0x120] sm:$0xff] }
  0xb9   : > { %v624_v52 = vpop.f32.mrf.mxu1 }
  0xba   : > { %v604_v53 = vpop.f32.mrf.mxu0  ;;  %v625_v54 = vadd.f32 %v624_v52, %v582_v50  ;;  %v947_v52 = vld [vmem:[#allocation4 + $0x1e0] sm:$0xff] }
  0xbb   : > { %v605_v55 = vadd.f32 %v604_v53, %v581_v51  ;;  %v1708_v51 = vmov 128.0   ;;  %v948_v53 = vld [vmem:[#allocation4 + $0x1e8] sm:$0xff]  ;;  %961 = vmatpush.msrb.mxu1 %v947_v52  ;;  %v897_v52 = vld [vmem:[#allocation4 + $0x50] sm:$0xff] }
  0xbc   : > { %732 = vrot.lane.b32.xlu1 %v625_v54, %s1707_s20  ;;  %1503 = vmatpush.xpose.msk.msra.mxu3 %vm663_vm0, %v625_v54  ;;  %v949_v54 = vld [vmem:[#allocation4 + $0x1f0] sm:$0xff] }
  0xbd   : > { %981 = vmatpush.msrb.mxu2 %v948_v53  ;;  %v898_v53 = vld [vmem:[#allocation4 + $0x58] sm:$0xff] }
  0xbf   : > { %1504 = vmatmul.msk.f32.vlgmr.msra.gmra.mxu3 %vm663_vm0, %v605_v55 }
  0xc4   : > { %730 = vrot.lane.b32.xlu1 %v605_v55, %s1707_s20  ;;  %v950_v55 = vld [vmem:[#allocation4 + $0x1f8] sm:$0xff] }
  0xc5   : > { %v644_v57 = vpop.f32.mrf.mxu2  ;;  %1021 = vmatpush.msra.mxu0 %v950_v55  ;;  %v892_v55 = vld [vmem:[#allocation4 + $0x28] sm:$0xff] }
  0xc6   : > { %v645_v58 = vadd.f32 %v644_v57, %v583_v56  ;;  %v943_v56 = vld [vmem:[#allocation4 + $0x1c0] sm:$0xff]  ;;  %v944_v57 = vld [vmem:[#allocation4 + $0x1c8] sm:$0xff] }
  0xc7   : > { %962 = vmatpush.msrb.mxu1 %v943_v56  ;;  %982 = vmatpush.msrb.mxu2 %v944_v57  ;;  %v893_v56 = vld [vmem:[#allocation4 + $0x30] sm:$0xff]  ;;  %v894_v57 = vld [vmem:[#allocation4 + $0x38] sm:$0xff] }
  0xc8   : > { %725 = vmatpush.msrb.mxu3 %v645_v58 }
 0x12e   : > { %v733_v59 = vpop.permute.xlu1 %732 }
 0x12f   : > { %1506 = vmatpush.xpose.msk.msra.mxu3 %vm663_vm0, %v733_v59  ;;  %v946_v59 = vld [vmem:[#allocation4 + $0x1d8] sm:$0xff] }
 0x130   : > { %1022 = vmatpush.msra.mxu0 %v946_v59  ;;  %v888_v59 = vld [vmem:[#allocation4 + $0x8] sm:$0xff] }
 0x136   : > { %v731_v19 = vpop.permute.xlu1 %730 }
 0x142   : > { %v687_v0 = vpop.f32.mrf.mxu3 }
 0x143   : > { %v690_v1 = vmul.f32 0.125, %v687_v0 }
 0x145   : > { %v694_v2 = vadd.f32 %v692_v63, %v690_v1 }
 0x147   : > { %v696_v3 = vsel %vm695_vm1, %v694_v2, -inf }
 0x148   : > { %697 = vmax.xlane.f32.xlu0 %v696_v3 }
 0x1bb   : > { %v698_v4 = vpop.xlane.xlu0 %697 }
 0x1bc   : > { %v699_v5 = vsub.f32 %v694_v2, %v698_v4 }
 0x1be   : > { %v700_v6 = vmul.f32 1.442695, %v699_v5  ;;  %v939_v5 = vld [vmem:[#allocation4 + $0x1a0] sm:$0xff] }
 0x1bf   : > { %963 = vmatpush.msrb.mxu1 %v939_v5 }
 0x1c0   : > { %1570 = vpow2.f32 %v700_v6  ;;  %v940_v6 = vld [vmem:[#allocation4 + $0x1a8] sm:$0xff] }
 0x1c1   : > { %983 = vmatpush.msrb.mxu2 %v940_v6  ;;  %964 = vmatpush.msrb.mxu1 %v935_v9 }
 0x1c3   : > { %984 = vmatpush.msrb.mxu2 %v936_v10  ;;  %965 = vmatpush.msrb.mxu1 %v931_v13 }
 0x1c5   : > { %985 = vmatpush.msrb.mxu2 %v932_v14  ;;  %v951_v14 = vld [vmem:[%s2094_s9] sm:$0xf] }
 0x1c6   : > { %v1571_v7 = vpop.eup %1570 }
 0x1c7   : > { %v702_v8 = vsel %vm695_vm1, %v1571_v7, 0.0 }
 0x1c8   : > { %703 = vadd.xlane.f32.xlu0 %v702_v8  ;;  %v942_v8 = vld [vmem:[#allocation4 + $0x1b8] sm:$0xff] }
 0x1c9   : > { %1023 = vmatpush.msra.mxu0 %v942_v8  ;;  %v1565_v8 = vld [vmem:[%s2091_s6] ss:$0 sm:$0xff] }
 0x1cb   : > { %1024 = vmatpush.msra.mxu0 %v938_v12 }
 0x1dc   : > { %772 = vrot.lane.b32.xlu0 %v645_v58, %s1707_s20  ;;  %v945_v58 = vld [vmem:[#allocation4 + $0x1d0] sm:$0xff] }
 0x23b   : > { %v704_v16 = vpop.xlane.xlu0 %703 }
 0x23c   : > { %1572 = vrcp.f32 %v704_v16  ;;  %v934_v16 = vld [vmem:[#allocation4 + $0x178] sm:$0xff] }
 0x23d   : > { %1025 = vmatpush.msra.mxu0 %v934_v16 }
 0x242   : > { %v1573_v17 = vpop.eup %1572 }
 0x243   : > { %v706_v18 = vmul.f32 %v1573_v17, %v1571_v7  ;;  %v941_v7 = vld [vmem:[#allocation4 + $0x1b0] sm:$0xff]  ;;  %v927_v17 = vld [vmem:[#allocation4 + $0x140] sm:$0xff] }
 0x244   : > { %966 = vmatpush.msrb.mxu1 %v927_v17 }
 0x245   : > { %1505 = vmatmul.msk.f32.vlgmr.msrb.gmra.mxu3 %vm695_vm1, %v706_v18  ;;  %v928_v18 = vld [vmem:[#allocation4 + $0x148] sm:$0xff] }
 0x246   : > { %986 = vmatpush.msrb.mxu2 %v928_v18  ;;  %967 = vmatpush.msrb.mxu1 %v923_v21  ;;  %v954_v21 = vperm.slane %v951_v14, 1 }
 0x24d   : > { %1507 = vmatmul.msk.f32.vlgmr.msra.gmra.mxu3 %vm663_vm0, %v731_v19  ;;  %v929_v19 = vld [vmem:[#allocation4 + $0x150] sm:$0xff] }
 0x24e   : > { %v773_v20 = vpop.permute.xlu0 %772 }
 0x24f   : > { %793 = vmatpush.msrb.mxu3 %v773_v20  ;;  %v930_v20 = vld [vmem:[#allocation4 + $0x158] sm:$0xff] }
 0x250   : > { %1026 = vmatpush.msra.mxu0 %v930_v20 }
 0x251   : > { %809 = vmatpush.msra.mxu3 %v662_v32  ;;  %v918_v32 = vld [vmem:[#allocation4 + $0xf8] sm:$0xff] }
 0x253   : > { %810 = vmatpush.msra.mxu3 %v661_v33  ;;  %v911_v33 = vld [vmem:[#allocation4 + $0xc0] sm:$0xff] }
 0x255   : > { %811 = vmatpush.msra.mxu3 %v660_v34  ;;  %v912_v34 = vld [vmem:[#allocation4 + $0xc8] sm:$0xff] }
 0x257   : > { %812 = vmatpush.msra.mxu3 %v659_v35  ;;  %v913_v35 = vld [vmem:[#allocation4 + $0xd0] sm:$0xff] }
 0x259   : > { %813 = vmatpush.msra.mxu3 %v658_v36  ;;  %v914_v36 = vld [vmem:[#allocation4 + $0xd8] sm:$0xff] }
 0x25b   : > { %814 = vmatpush.msra.mxu3 %v657_v37  ;;  %v907_v37 = vld [vmem:[#allocation4 + $0xa0] sm:$0xff] }
 0x25d   : > { %815 = vmatpush.msra.mxu3 %v656_v38  ;;  %v908_v38 = vld [vmem:[#allocation4 + $0xa8] sm:$0xff] }
 0x25f   : > { %816 = vmatpush.msra.mxu3 %v655_v43  ;;  %v904_v43 = vld [vmem:[#allocation4 + $0x88] sm:$0xff] }
 0x2c8   : > { %v727_v22 = vpop.f32.mrf.mxu3 }
 0x2c9   : > { %1510 = vmatmul.msk.f32.vlgmr.msrb.gmra.mxu0 %vm663_vm0, %v727_v22  ;;  %v924_v22 = vld [vmem:[#allocation4 + $0x128] sm:$0xff] }
 0x2ca   : > { %987 = vmatpush.msrb.mxu2 %v924_v22  ;;  %v1232_v22 = vld [vmem:[#allocation6 + $0x78] sm:$0xff] }
 0x2d0   : > { %v755_v23 = vpop.f32.mrf.mxu3 }
 0x2d1   : > { %v758_v24 = vmul.f32 0.125, %v755_v23  ;;  %v925_v23 = vld [vmem:[#allocation4 + $0x130] sm:$0xff] }
 0x2d3   : > { %v759_v25 = vadd.f32 %v758_v24, %v692_v63  ;;  %v926_v24 = vld [vmem:[#allocation4 + $0x138] sm:$0xff] }
 0x2d4   : > { %1027 = vmatpush.msra.mxu0 %v926_v24 }
 0x2d5   : > { %v760_v26 = vsel %vm695_vm1, %v759_v25, -inf }
 0x2d6   : > { %761 = vmax.xlane.f32.xlu2 %v760_v26  ;;  %v920_v26 = vld [vmem:[#allocation4 + $0x108] sm:$0xff] }
 0x2d7   : > { %988 = vmatpush.msrb.mxu2 %v920_v26 }
 0x346   : > { %v841_v46 = vpop.f32.mrf.mxu0 }
 0x349   : > { %v762_v27 = vpop.xlane.xlu2 %761 }
 0x34a   : > { %v763_v28 = vsub.f32 %v759_v25, %v762_v27  ;;  %v919_v25 = vld [vmem:[#allocation4 + $0x100] sm:$0xff]  ;;  %v921_v27 = vld [vmem:[#allocation4 + $0x110] sm:$0xff] }
 0x34b   : > { %968 = vmatpush.msrb.mxu1 %v919_v25  ;;  %v955_v25 = vperm.slane %v951_v14, 2 }
 0x34c   : > { %v764_v29 = vmul.f32 1.442695, %v763_v28  ;;  %v922_v28 = vld [vmem:[#allocation4 + $0x118] sm:$0xff] }
 0x34d   : > { %1028 = vmatpush.msra.mxu0 %v922_v28  ;;  %v1279_v28 = vld [vmem:[#allocation6 + $0x1f0] sm:$0xff] }
 0x34e   : > { %1574 = vpow2.f32 %v764_v29  ;;  %v915_v29 = vld [vmem:[#allocation4 + $0xe0] sm:$0xff] }
 0x34f   : > { %969 = vmatpush.msrb.mxu1 %v915_v29  ;;  %1029 = vmatpush.msra.mxu0 %v918_v32 }
 0x351   : > { %970 = vmatpush.msrb.mxu1 %v911_v33  ;;  %1030 = vmatpush.msra.mxu0 %v914_v36 }
 0x353   : > { %971 = vmatpush.msrb.mxu1 %v907_v37 }
 0x354   : > { %v1575_v30 = vpop.eup %1574 }
 0x355   : > { %v766_v31 = vsel %vm695_vm1, %v1575_v30, 0.0 }
 0x356   : > { %767 = vadd.xlane.f32.xlu2 %v766_v31  ;;  %v917_v31 = vld [vmem:[#allocation4 + $0xf0] sm:$0xff] }
 0x3c9   : > { %v768_v39 = vpop.xlane.xlu2 %767 }
 0x3ca   : > { %1576 = vrcp.f32 %v768_v39  ;;  %v909_v39 = vld [vmem:[#allocation4 + $0xb0] sm:$0xff] }
 0x3cb   : > { %1578 = vrcp.f32 %v1708_v51  ;;  %v896_v51 = vld [vmem:[#allocation4 + $0x48] sm:$0xff] }
 0x3d0   : > { %v1577_v40 = vpop.eup %1576 }
 0x3d1   : > { %v770_v41 = vmul.f32 %v1577_v40, %v1575_v30  ;;  %v1579_v60 = vpop.eup %1578  ;;  %v916_v30 = vld [vmem:[#allocation4 + $0xe8] sm:$0xff]  ;;  %v910_v40 = vld [vmem:[#allocation4 + $0xb8] sm:$0xff] }
 0x3d2   : > { %vm859_vm2 = vweird.f32 %v1579_v60  ;;  %989 = vmatpush.msrb.mxu2 %v916_v30  ;;  %1031 = vmatpush.msra.mxu0 %v910_v40  ;;  %v1229_v40 = vld [vmem:[#allocation6 + $0x60] sm:$0xff] }
 0x3d3   : > { %1508 = vmatmul.msk.f32.vlgmr.msrb.gmra.mxu3 %vm695_vm1, %v770_v41  ;;  %v903_v41 = vld [vmem:[#allocation4 + $0x80] sm:$0xff] }
 0x3d4   : > { %1001 = vmatpush.msrb.mxu3 %v949_v54  ;;  %990 = vmatpush.msrb.mxu2 %v912_v34  ;;  %v891_v54 = vld [vmem:[#allocation4 + $0x20] sm:$0xff]  ;;  %v1230_v34 = vld [vmem:[#allocation6 + $0x68] sm:$0xff] }
 0x3d5   : > { %972 = vmatpush.msrb.mxu1 %v903_v41 }
 0x3d6   : > { %1002 = vmatpush.msrb.mxu3 %v945_v58  ;;  %991 = vmatpush.msrb.mxu2 %v908_v38  ;;  %v887_v58 = vld [vmem:[#allocation4] sm:$0xff] }
 0x3d8   : > { %1003 = vmatpush.msrb.mxu3 %v941_v7  ;;  %992 = vmatpush.msrb.mxu2 %v904_v43 }
 0x3da   : > { %1004 = vmatpush.msrb.mxu3 %v937_v11  ;;  %v1566_v11 = vld [vmem:[%s2092_s7] ss:$0 sm:$0xff] }
 0x3dc   : > { %1005 = vmatpush.msrb.mxu3 %v933_v15  ;;  %v956_v15 = vperm.slane %v951_v14, 3 }
 0x3de   : > { %1006 = vmatpush.msrb.mxu3 %v929_v19 }
 0x3e0   : > { %1007 = vmatpush.msrb.mxu3 %v925_v23  ;;  %v1280_v23 = vld [vmem:[#allocation6 + $0x1f8] sm:$0xff] }
 0x3e2   : > { %1008 = vmatpush.msrb.mxu3 %v921_v27  ;;  %v1231_v27 = vld [vmem:[#allocation6 + $0x70] sm:$0xff] }
 0x3e4   : > { %1009 = vmatpush.msrb.mxu3 %v917_v31 }
 0x3e6   : > { %1010 = vmatpush.msrb.mxu3 %v913_v35  ;;  %v1278_v35 = vld [vmem:[#allocation6 + $0x1e8] sm:$0xff] }
 0x3e8   : > { %1011 = vmatpush.msrb.mxu3 %v909_v39 }
 0x456   : > { %v795_v44 = vpop.f32.mrf.mxu3 }
 0x457   : > { %1509 = vmatmul.msk.f32.vlgmr.msra.gmra.mxu3 %vm663_vm0, %v795_v44  ;;  %v905_v44 = vld [vmem:[#allocation4 + $0x90] sm:$0xff] }
 0x458   : > { %1012 = vmatpush.msrb.mxu3 %v905_v44 }
 0x4da   : > { %v818_v47 = vpop.f32.mrf.mxu3 }
 0x4db   : > { %v842_v48 = vadd.f32 %v841_v46, %v818_v47  ;;  %v899_v46 = vld [vmem:[#allocation4 + $0x60] sm:$0xff]  ;;  %v900_v47 = vld [vmem:[#allocation4 + $0x68] sm:$0xff] }
 0x4dc   : > { %973 = vmatpush.msrb.mxu1 %v899_v46  ;;  %993 = vmatpush.msrb.mxu2 %v900_v47  ;;  %v1248_v47 = vld [vmem:[#allocation6 + $0xf8] sm:$0xff] }
 0x4dd   : > { %v848_v49 = vadd.f32 %v1564_v45, %v842_v48  ;;  %v906_v45 = vld [vmem:[#allocation4 + $0x98] sm:$0xff]  ;;  %v901_v48 = vld [vmem:[#allocation4 + $0x70] sm:$0xff] }
 0x4de   : > { %1032 = vmatpush.msra.mxu0 %v906_v45  ;;  %1013 = vmatpush.msrb.mxu3 %v901_v48 }
 0x4df   : > { %v849_v50 = vadd.f32 %v848_v49, %v1842_v42  ;;  %v855_v42 = vmul.f32 128.0, %v1579_v60  ;;  %v902_v49 = vld [vmem:[#allocation4 + $0x78] sm:$0xff]  ;;  %994 = vmatpush.msrb.mxu2 %v896_v51 }
 0x4e0   : > { %1033 = vmatpush.msra.mxu0 %v902_v49  ;;  %1014 = vmatpush.msrb.mxu3 %v897_v52 }
 0x4e1   : > { %852 = vadd.xlane.f32.xlu1 %v849_v50  ;;  %v856_v61 = vsub.f32 1.0, %v855_v42  ;;  %995 = vmatpush.msrb.mxu2 %v892_v55  ;;  %v890_v42 = vld [vmem:[#allocation4 + $0x18] sm:$0xff]  ;;  %v1277_v55 = vld [vmem:[#allocation6 + $0x1e0] sm:$0xff] }
 0x4e2   : > { %1034 = vmatpush.msra.mxu0 %v898_v53  ;;  %1015 = vmatpush.msrb.mxu3 %v893_v56  ;;  %v1228_v56 = vld [vmem:[#allocation6 + $0x58] sm:$0xff] }
 0x4e3   : > { %v857_v62 = vmul.f32 %v1579_v60, %v856_v61  ;;  %996 = vmatpush.msrb.mxu2 %v888_v59 }
 0x4e4   : > { %1035 = vmatpush.msra.mxu0 %v894_v57 }
 0x4e5   : > { %v858_v63 = vadd.f32 %v1579_v60, %v857_v62  ;;  %1305 = vmatpush.msra.mxu2 %v1248_v47  ;;  %v1273_v47 = vld [vmem:[#allocation6 + $0x1c0] sm:$0xff] }
 0x4e6   : > { %1036 = vmatpush.msra.mxu0 %v890_v42  ;;  %v1247_v42 = vld [vmem:[#allocation6 + $0xf0] sm:$0xff] }
 0x4e7   : > { %v1918_v0 = vsel %vm859_vm2, %v1579_v60, %v858_v63  ;;  %v889_v60 = vld [vmem:[#allocation4 + $0x10] sm:$0xff]  ;;  %1306 = vmatpush.msra.mxu2 %v1247_v42 }
 0x4e8   : > { %1016 = vmatpush.msrb.mxu3 %v889_v60  ;;  %1345 = vmatpush.msrb.mxu0 %v1280_v23  ;;  %v1274_v23 = vld [vmem:[#allocation6 + $0x1c8] sm:$0xff] }
 0x4ea   : > { %1346 = vmatpush.msrb.mxu0 %v1279_v28 }
 0x4ec   : > { %1347 = vmatpush.msrb.mxu0 %v1278_v35 }
 0x4ee   : > { %1348 = vmatpush.msrb.mxu0 %v1277_v55  ;;  %v1243_v55 = vld [vmem:[#allocation6 + $0xd0] sm:$0xff] }
 0x554   : > { %v853_v1 = vpop.xlane.xlu1 %852 }
 0x555   : > { %v861_v2 = vmul.f32 %v1918_v0, %v853_v1 }
 0x557   : > { %v1921_v3 = vsub.f32 %v849_v50, %v861_v2  ;;  %v895_v50 = vld [vmem:[#allocation4 + $0x40] sm:$0xff] }
 0x558   : > { %974 = vmatpush.msrb.mxu1 %v895_v50 }
 0x559   : > { %v863_v4 = vmul.f32 %v1921_v3, %v1921_v3 }
 0x55a   : > { %975 = vmatpush.msrb.mxu1 %v891_v54  ;;  %v1264_v54 = vld [vmem:[#allocation6 + $0x178] sm:$0xff] }
 0x55b   : > { %864 = vadd.xlane.f32.xlu2 %v863_v4  ;;  %1325 = vmatpush.msra.mxu3 %v1264_v54 }
 0x55c   : > { %976 = vmatpush.msrb.mxu1 %v887_v58 }
 0x55e   : > { %1285 = vmatpush.msra.mxu1 %v1232_v22  ;;  %v1261_v22 = vld [vmem:[#allocation6 + $0x160] sm:$0xff] }
 0x560   : > { %1286 = vmatpush.msra.mxu1 %v1231_v27 }
 0x562   : > { %1287 = vmatpush.msra.mxu1 %v1230_v34 }
 0x564   : > { %1288 = vmatpush.msra.mxu1 %v1229_v40  ;;  %v1225_v40 = vld [vmem:[#allocation6 + $0x40] sm:$0xff] }
 0x566   : > { %1289 = vmatpush.msra.mxu1 %v1228_v56  ;;  %v1259_v56 = vld [vmem:[#allocation6 + $0x150] sm:$0xff] }
 0x5ce   : > { %v865_v61 = vpop.xlane.xlu2 %864 }
 0x5cf   : > { %v866_v62 = vmul.f32 %v865_v61, %v1918_v0  ;;  %v1263_v61 = vld [vmem:[#allocation6 + $0x170] sm:$0xff] }
 0x5d0   : > { %1326 = vmatpush.msra.mxu3 %v1263_v61  ;;  %v1272_v61 = vld [vmem:[#allocation6 + $0x1b8] sm:$0xff] }
 0x5d1   : > { %v867_v63 = vadd.f32 1e-12, %v866_v62  ;;  %v1276_v62 = vld [vmem:[#allocation6 + $0x1d8] sm:$0xff] }
 0x5d2   : > { %1349 = vmatpush.msrb.mxu0 %v1276_v62  ;;  %v1223_v62 = vld [vmem:[#allocation6 + $0x30] sm:$0xff] }
 0x5d3   : > { %1580 = vrsqrt.f32 %v867_v63  ;;  %vm874_vm4 = vweird.f32 %v867_v63 }
 0x5d9   : > { %v1581_v1 = vpop.eup %1580 }
 0x5da   : > { %v869_v2 = vmul.f32 %v1581_v1, %v867_v63  ;;  %vm875_vm3 = vweird.f32 %v1581_v1 }
 0x5db   : > { %vm876_vm5 = vmor %vm874_vm4, %vm875_vm3 }
 0x5dc   : > { %v870_v4 = vmul.f32 %v1581_v1, %v869_v2  ;;  %v1227_v2 = vld [vmem:[#allocation6 + $0x50] sm:$0xff] }
 0x5dd   : > { %1290 = vmatpush.msra.mxu1 %v1227_v2  ;;  %v1258_v2 = vld [vmem:[#allocation6 + $0x148] sm:$0xff] }
 0x5de   : > { %v871_v5 = vmul.f32 0.5, %v870_v4  ;;  %v1246_v4 = vld [vmem:[#allocation6 + $0xe8] sm:$0xff] }
 0x5df   : > { %1307 = vmatpush.msra.mxu2 %v1246_v4  ;;  %v1271_v4 = vld [vmem:[#allocation6 + $0x1b0] sm:$0xff] }
 0x5e0   : > { %v872_v6 = vsub.f32 1.5, %v871_v5 }
 0x5e2   : > { %v873_v7 = vmul.f32 %v1581_v1, %v872_v6 }
 0x5e4   : > { %v877_v9 = vsel %vm876_vm5, %v1581_v1, %v873_v7 }
 0x5e5   : > { %v878_v10 = vmul.f32 %v877_v9, %v1921_v3  ;;  %v953_v3 = vperm.slane %v951_v14, 0  ;;  %v1275_v14 = vld [vmem:[#allocation6 + $0x1d0] sm:$0xff] }
 0x5e6   : > { %1350 = vmatpush.msrb.mxu0 %v1275_v14  ;;  %v1241_v14 = vld [vmem:[#allocation6 + $0xc0] sm:$0xff] }
 0x5e7   : > { %v882_v12 = vmul.f32 %v1565_v8, %v878_v10 }
 0x5e8   : > { %1351 = vmatpush.msrb.mxu0 %v1274_v23  ;;  %v1256_v23 = vld [vmem:[#allocation6 + $0x138] sm:$0xff] }
 0x5e9   : > { %v1933_v13 = vadd.f32 %v1566_v11, %v882_v12  ;;  %v1262_v12 = vld [vmem:[#allocation6 + $0x168] sm:$0xff] }
 0x5ea   : > { %1327 = vmatpush.msra.mxu3 %v1262_v12  ;;  %1352 = vmatpush.msrb.mxu0 %v1273_v47  ;;  %v1218_v47 = vld [vmem:[#allocation6 + $0x8] sm:$0xff] }
 0x5eb   : > { %977 = vmatmul.f32.vlgmr.msrb.gmra.mxu1 %v1933_v13  ;;  %997 = vmatmul.f32.vlgmr.msrb.gmra.mxu2 %v1933_v13 }
 0x5ec   : > { %1017 = vmatmul.f32.vlgmr.msrb.gmra.mxu3 %v1933_v13  ;;  %1037 = vmatmul.f32.vlgmr.msra.gmra.mxu0 %v1933_v13 }
 0x5ed   : > { %1328 = vmatpush.msra.mxu3 %v1261_v22  ;;  %1353 = vmatpush.msrb.mxu0 %v1272_v61  ;;  %v1240_v22 = vld [vmem:[#allocation6 + $0xb8] sm:$0xff] }
 0x5ef   : > { %1354 = vmatpush.msrb.mxu0 %v1271_v4 }
 0x668   : > { %v978_v16 = vpop.f32.mrf.mxu1 }
 0x669   : > { %v1942_v17 = vadd.f32 %v978_v16, %v953_v3  ;;  %v1038_v18 = vpop.f32.mrf.mxu0  ;;  %v1226_v3 = vld [vmem:[#allocation6 + $0x48] sm:$0xff] }
 0x66a   : > { %v1944_v19 = vadd.f32 %v1038_v18, %v956_v15  ;;  %1291 = vmatpush.msra.mxu1 %v1226_v3  ;;  %v1257_v3 = vld [vmem:[#allocation6 + $0x140] sm:$0xff] }
 0x66b   : > { %v1947_v20 = vmul.f32 0.70710677, %v1942_v17 }
 0x66c   : > { %v1950_v24 = vmul.f32 0.70710677, %v1944_v19  ;;  %1292 = vmatpush.msra.mxu1 %v1225_v40  ;;  %v1238_v40 = vld [vmem:[#allocation6 + $0xa8] sm:$0xff] }
 0x66d   : > { %v1049_v26 = vmul.f32 %v1947_v20, %v1947_v20 }
 0x66e   : > { %v1169_v29 = vmul.f32 %v1950_v24, %v1950_v24  ;;  %v998_v30 = vpop.f32.mrf.mxu2 }
 0x66f   : > { %v1956_v31 = vmin.f32 %v1049_v26, 16.0  ;;  %v1958_v32 = vadd.f32 %v998_v30, %v954_v21  ;;  %v1018_v33 = vpop.f32.mrf.mxu3  ;;  %v1245_v21 = vld [vmem:[#allocation6 + $0xe0] sm:$0xff] }
 0x670   : > { %v1960_v36 = vmin.f32 %v1169_v29, 16.0  ;;  %v1962_v37 = vadd.f32 %v1018_v33, %v955_v25  ;;  %1308 = vmatpush.msra.mxu2 %v1245_v21  ;;  %v1221_v21 = vld [vmem:[#allocation6 + $0x20] sm:$0xff] }
 0x671   : > { %v1051_v38 = vmul.f32 2.1237322e-06, %v1956_v31  ;;  %v1062_v39 = vmul.f32 3.8918573e-05, %v1956_v31  ;;  %v1969_v44 = vmul.f32 0.70710677, %v1958_v32 }
 0x672   : > { %v1171_v41 = vmul.f32 2.1237322e-06, %v1960_v36  ;;  %v1182_v43 = vmul.f32 3.8918573e-05, %v1960_v36  ;;  %v1974_v51 = vmul.f32 0.70710677, %v1962_v37 }
 0x673   : > { %v1052_v45 = vadd.f32 0.00028619796, %v1051_v38  ;;  %v1063_v46 = vadd.f32 0.001143296, %v1062_v39  ;;  %v1089_v50 = vmul.f32 %v1969_v44, %v1969_v44 }
 0x674   : > { %v1172_v48 = vadd.f32 0.00028619796, %v1171_v41  ;;  %v1183_v49 = vadd.f32 0.001143296, %v1182_v43  ;;  %v1129_v60 = vmul.f32 %v1974_v51, %v1974_v51  ;;  %v1244_v41 = vld [vmem:[#allocation6 + $0xd8] sm:$0xff] }
 0x675   : > { %v1053_v52 = vmul.f32 %v1052_v45, %v1956_v31  ;;  %v1064_v53 = vmul.f32 %v1063_v46, %v1956_v31  ;;  %v1980_v59 = vmin.f32 %v1089_v50, 16.0  ;;  %v1260_v43 = vld [vmem:[#allocation6 + $0x158] sm:$0xff]  ;;  %1309 = vmatpush.msra.mxu2 %v1244_v41 }
 0x676   : > { %v1173_v57 = vmul.f32 %v1172_v48, %v1960_v36  ;;  %v1184_v58 = vmul.f32 %v1183_v49, %v1960_v36  ;;  %v1988_v11 = vmin.f32 %v1129_v60, 16.0  ;;  %v1224_v48 = vld [vmem:[#allocation6 + $0x38] sm:$0xff]  ;;  %1329 = vmatpush.msra.mxu3 %v1260_v43 }
 0x677   : > { %v1054_v63 = vadd.f32 0.0036580483, %v1053_v52  ;;  %v1065_v1 = vadd.f32 0.014752088, %v1064_v53  ;;  %v1091_v7 = vmul.f32 2.1237322e-06, %v1980_v59  ;;  %1293 = vmatpush.msra.mxu1 %v1224_v48  ;;  %1310 = vmatpush.msra.mxu2 %v1243_v55 }
 0x678   : > { %v1174_v5 = vadd.f32 0.0036580483, %v1173_v57  ;;  %v1185_v6 = vadd.f32 0.014752088, %v1184_v58  ;;  %v1102_v10 = vmul.f32 3.8918573e-05, %v1980_v59  ;;  %1330 = vmatpush.msra.mxu3 %v1259_v56 }
 0x679   : > { %v1055_v8 = vmul.f32 %v1054_v63, %v1956_v31  ;;  %v1066_v9 = vmul.f32 %v1065_v1, %v1956_v31  ;;  %v1092_v18 = vadd.f32 0.00028619796, %v1091_v7  ;;  %v1131_v33 = vmul.f32 2.1237322e-06, %v1988_v11  ;;  %v1242_v63 = vld [vmem:[#allocation6 + $0xc8] sm:$0xff]  ;;  %1294 = vmatpush.msra.mxu1 %v1223_v62  ;;  %v1217_v55 = vld [vmem:[#allocation6] sm:$0xff] }
 0x67a   : > { %v1175_v15 = vmul.f32 %v1174_v5, %v1960_v36  ;;  %v1186_v16 = vmul.f32 %v1185_v6, %v1960_v36  ;;  %v1103_v27 = vadd.f32 0.001143296, %v1102_v10  ;;  %v1142_v39 = vmul.f32 3.8918573e-05, %v1988_v11  ;;  %1311 = vmatpush.msra.mxu2 %v1242_v63  ;;  %1331 = vmatpush.msra.mxu3 %v1258_v2  ;;  %v1222_v7 = vld [vmem:[#allocation6 + $0x28] sm:$0xff]  ;;  %v1236_v56 = vld [vmem:[#allocation6 + $0x98] sm:$0xff] }
 0x67b   : > { %v1056_v25 = vadd.f32 0.05243302, %v1055_v8  ;;  %v1067_v26 = vadd.f32 0.112945676, %v1066_v9  ;;  %v1093_v30 = vmul.f32 %v1092_v18, %v1980_v59  ;;  %v1132_v52 = vadd.f32 0.00028619796, %v1131_v33  ;;  %1295 = vmatpush.msra.mxu1 %v1222_v7 }
 0x67c   : > { %v1176_v28 = vadd.f32 0.05243302, %v1175_v15  ;;  %v1187_v29 = vadd.f32 0.112945676, %v1186_v16  ;;  %v1104_v38 = vmul.f32 %v1103_v27, %v1980_v59  ;;  %v1143_v42 = vadd.f32 0.001143296, %v1142_v39  ;;  %1312 = vmatpush.msra.mxu2 %v1241_v14  ;;  %1332 = vmatpush.msra.mxu3 %v1257_v3 }
 0x67d   : > { %v1057_v34 = vmul.f32 %v1056_v25, %v1956_v31  ;;  %v1068_v35 = vmul.f32 %v1067_v26, %v1956_v31  ;;  %v1094_v46 = vadd.f32 0.0036580483, %v1093_v30  ;;  %v1133_v10 = vmul.f32 %v1132_v52, %v1988_v11  ;;  %v1270_v15 = vld [vmem:[#allocation6 + $0x1a8] sm:$0xff]  ;;  %1296 = vmatpush.msra.mxu1 %v1221_v21  ;;  %v1269_v25 = vld [vmem:[#allocation6 + $0x1a0] sm:$0xff]  ;;  %v1220_v26 = vld [vmem:[#allocation6 + $0x18] sm:$0xff] }
 0x67e   : > { %v1188_v45 = vmul.f32 %v1187_v29, %v1960_v36  ;;  %v1105_v50 = vadd.f32 0.014752088, %v1104_v38  ;;  %v1177_v58 = vmul.f32 %v1176_v28, %v1960_v36  ;;  %v1144_v12 = vmul.f32 %v1143_v42, %v1988_v11  ;;  %1355 = vmatpush.msrb.mxu0 %v1270_v15  ;;  %v1239_v27 = vld [vmem:[#allocation6 + $0xb0] sm:$0xff]  ;;  %1313 = vmatpush.msra.mxu2 %v1240_v22  ;;  %v1268_v38 = vld [vmem:[#allocation6 + $0x198] sm:$0xff]  ;;  %v1265_v62 = vld [vmem:[#allocation6 + $0x180] sm:$0xff] }
 0x67f   : > { %v1069_v49 = vadd.f32 0.4994258, %v1068_v35  ;;  %v1058_v53 = vadd.f32 0.18741608, %v1057_v34  ;;  %v1095_v6 = vmul.f32 %v1094_v46, %v1980_v59  ;;  %1333 = vmatpush.msra.mxu3 %v1256_v23  ;;  %v1134_v29 = vadd.f32 0.0036580483, %v1133_v10  ;;  %1297 = vmatpush.msra.mxu1 %v1220_v26 }
 0x680   : > { %v1189_v54 = vadd.f32 0.4994258, %v1188_v45  ;;  %v1106_v60 = vmul.f32 %v1105_v50, %v1980_v59  ;;  %v1178_v18 = vadd.f32 0.18741608, %v1177_v58  ;;  %v1145_v30 = vadd.f32 0.014752088, %v1144_v12  ;;  %1356 = vmatpush.msrb.mxu0 %v1269_v25  ;;  %1314 = vmatpush.msra.mxu2 %v1239_v27 }
 0x681   : > { %v1070_v57 = vmul.f32 %v1069_v49, %v1956_v31  ;;  %v1059_v16 = vmul.f32 %v1058_v53, %v1956_v31  ;;  %v1096_v28 = vadd.f32 0.05243302, %v1095_v6  ;;  %v1255_v33 = vld [vmem:[#allocation6 + $0x130] sm:$0xff]  ;;  %v1254_v45 = vld [vmem:[#allocation6 + $0x128] sm:$0xff]  ;;  %v1237_v49 = vld [vmem:[#allocation6 + $0xa0] sm:$0xff]  ;;  %v1135_v4 = vmul.f32 %v1134_v29, %v1988_v11 }
 0x682   : > { %v1190_v1 = vmul.f32 %v1189_v54, %v1960_v36  ;;  %v1107_v9 = vadd.f32 0.112945676, %v1106_v60  ;;  %v1179_v35 = vmul.f32 %v1178_v18, %v1960_v36  ;;  %1334 = vmatpush.msra.mxu3 %v1255_v33  ;;  %v1219_v39 = vld [vmem:[#allocation6 + $0x10] sm:$0xff]  ;;  %v1146_v43 = vmul.f32 %v1145_v30, %v1988_v11  ;;  %1357 = vmatpush.msrb.mxu0 %v1268_v38  ;;  %v1253_v50 = vld [vmem:[#allocation6 + $0x120] sm:$0xff]  ;;  %v1266_v36 = vld [vmem:[#allocation6 + $0x188] sm:$0xff] }
 0x683   : > { %v2003_v5 = vadd.f32 1.0, %v1070_v57  ;;  %v1060_v34 = vadd.f32 1.1283791, %v1059_v16  ;;  %1298 = vmatpush.msra.mxu1 %v1219_v39  ;;  %v1267_v46 = vld [vmem:[#allocation6 + $0x190] sm:$0xff]  ;;  %1315 = vmatpush.msra.mxu2 %v1238_v40  ;;  %v1252_v57 = vld [vmem:[#allocation6 + $0x118] sm:$0xff]  ;;  %v1097_v42 = vmul.f32 %v1096_v28, %v1980_v59  ;;  %v1234_v15 = vld [vmem:[#allocation6 + $0x88] sm:$0xff] }
 0x684   : > { %v2006_v8 = vadd.f32 1.0, %v1190_v1  ;;  %v1108_v31 = vmul.f32 %v1107_v9, %v1980_v59  ;;  %1335 = vmatpush.msra.mxu3 %v1254_v45  ;;  %1358 = vmatpush.msrb.mxu0 %v1267_v46  ;;  %v1180_v58 = vadd.f32 1.1283791, %v1179_v35  ;;  %v1147_v61 = vadd.f32 0.112945676, %v1146_v43  ;;  %v1235_v6 = vld [vmem:[#allocation6 + $0x90] sm:$0xff] }
 0x685   : > { %1582 = vrcp.f32 %v2003_v5  ;;  %1299 = vmatpush.msra.mxu1 %v1218_v47  ;;  %1316 = vmatpush.msra.mxu2 %v1237_v49  ;;  %v1061_v63 = vmul.f32 %v1060_v34, %v1947_v20  ;;  %v1251_v7 = vld [vmem:[#allocation6 + $0x110] sm:$0xff]  ;;  %v1081_v9 = vand.u32 2147483647, %v2003_v5  ;;  %v1083_v10 = vand.u32 2147483648, %v2003_v5  ;;  %v1250_v16 = vld [vmem:[#allocation6 + $0x108] sm:$0xff]  ;;  %v1233_v27 = vld [vmem:[#allocation6 + $0x80] sm:$0xff] }
 0x686   : > { %1584 = vrcp.f32 %v2006_v8  ;;  %v1109_v41 = vadd.f32 0.4994258, %v1108_v31  ;;  %1336 = vmatpush.msra.mxu3 %v1253_v50  ;;  %1359 = vmatpush.msrb.mxu0 %v1266_v36  ;;  %v1148_v14 = vmul.f32 %v1147_v61, %v1988_v11  ;;  %v1203_v3 = vand.u32 2147483648, %v2006_v8  ;;  %v1249_v28 = vld [vmem:[#allocation6 + $0x100] sm:$0xff] }
 0x687   : > { %1300 = vmatpush.msra.mxu1 %v1217_v55  ;;  %1317 = vmatpush.msra.mxu2 %v1236_v56  ;;  %v1201_v21 = vand.u32 2147483647, %v2006_v8  ;;  %vm1077_vm8 = vweird.f32 %v2003_v5  ;;  %v1098_v25 = vadd.f32 0.18741608, %v1097_v42  ;;  %v1136_v26 = vadd.f32 0.05243302, %v1135_v4 }
 0x688   : > { %v1110_v54 = vmul.f32 %v1109_v41, %v1980_v59  ;;  %1337 = vmatpush.msra.mxu3 %v1252_v57  ;;  %1360 = vmatpush.msrb.mxu0 %v1265_v62  ;;  %v1149_v22 = vadd.f32 0.4994258, %v1148_v14  ;;  %v1084_v31 = vor.u32 1.1754944e-38, %v1083_v10  ;;  %vm1197_vm10 = vweird.f32 %v2006_v8 }
 0x689   : > { %1318 = vmatpush.msra.mxu2 %v1235_v6  ;;  %vm1082_vm11 = vcmp.eq.f32.partialorder %v1081_v9, 8.507059e+37  ;;  %v1204_v34 = vor.u32 1.1754944e-38, %v1203_v3  ;;  %vm1202_vm13 = vcmp.eq.f32.partialorder %v1201_v21, 8.507059e+37  ;;  %v1099_v43 = vmul.f32 %v1098_v25, %v1980_v59 }
 0x68a   : > { %v2027_v2 = vadd.f32 1.0, %v1110_v54  ;;  %1338 = vmatpush.msra.mxu3 %v1251_v7  ;;  %v1150_v30 = vmul.f32 %v1149_v22, %v1988_v11  ;;  %v1137_v45 = vmul.f32 %v1136_v26, %v1988_v11  ;;  %v1044_v49 = vmul.f32 0.5, %v1944_v19 }
 0x68b   : > { %v2016_v48 = vpop.eup %1582  ;;  %1319 = vmatpush.msra.mxu2 %v1234_v15  ;;  %v1043_v25 = vmul.f32 0.5, %v1962_v37 }
 0x68c   : > { %v2018_v52 = vpop.eup %1584  ;;  %v1073_v53 = vmul.f32 %v2016_v48, %v2003_v5  ;;  %vm1078_vm6 = vweird.f32 %v2016_v48  ;;  %1586 = vrcp.f32 %v2027_v2  ;;  %1339 = vmatpush.msra.mxu3 %v1250_v16  ;;  %v1181_v5 = vmul.f32 %v1180_v58, %v1950_v24 }
 0x68d   : > { %v1193_v60 = vmul.f32 %v2018_v52, %v2006_v8  ;;  %vm1198_vm7 = vweird.f32 %v2018_v52  ;;  %vm1079_vm9 = vmor %vm1077_vm8, %vm1078_vm6  ;;  %v1151_v39 = vadd.f32 1.0, %v1150_v30  ;;  %1320 = vmatpush.msra.mxu2 %v1233_v27  ;;  %v1123_v54 = vand.u32 2147483648, %v2027_v2 }
 0x68e   : > { %v1074_v1 = vsub.f32 1.0, %v1073_v53  ;;  %vm1199_vm12 = vmor %vm1197_vm10, %vm1198_vm7  ;;  %1340 = vmatpush.msra.mxu3 %v1249_v28  ;;  %v1100_v53 = vadd.f32 1.1283791, %v1099_v43  ;;  %v1138_v55 = vadd.f32 0.18741608, %v1137_v45  ;;  %vm1117_vm15 = vweird.f32 %v2027_v2 }
 0x68f   : > { %v1194_v12 = vsub.f32 1.0, %v1193_v60  ;;  %1588 = vrcp.f32 %v1151_v39  ;;  %v1121_v57 = vand.u32 2147483647, %v2027_v2  ;;  %v1163_v9 = vand.u32 2147483648, %v1151_v39 }
 0x690   : > { %v1075_v20 = vmul.f32 %v2016_v48, %v1074_v1  ;;  %v1139_v19 = vmul.f32 %v1138_v55, %v1988_v11  ;;  %v1161_v14 = vand.u32 2147483647, %v1151_v39  ;;  %vm1157_vm3 = vweird.f32 %v1151_v39 }
 0x691   : > { %v1195_v18 = vmul.f32 %v2018_v52, %v1194_v12  ;;  %vm1122_vm1 = vcmp.eq.f32.partialorder %v1121_v57, 8.507059e+37  ;;  %v1042_v11 = vmul.f32 0.5, %v1958_v32  ;;  %v1164_v15 = vor.u32 1.1754944e-38, %v1163_v9  ;;  %v1567_v32 = vld [vmem:[%s2096_s11] ss:$0 sm:$0xff] }
 0x692   : > { %v1076_v23 = vadd.f32 %v2016_v48, %v1075_v20  ;;  %v1587_v8 = vpop.eup %1586  ;;  %v1140_v10 = vadd.f32 1.1283791, %v1139_v19  ;;  %vm1162_vm5 = vcmp.eq.f32.partialorder %v1161_v14, 8.507059e+37 }
 0x693   : > { %v1196_v29 = vadd.f32 %v2018_v52, %v1195_v18  ;;  %v1113_v24 = vmul.f32 %v1587_v8, %v2027_v2  ;;  %vm1118_vm14 = vweird.f32 %v1587_v8 }
 0x694   : > { %v1080_v33 = vsel %vm1079_vm9, %v2016_v48, %v1076_v23  ;;  %v1041_v48 = vmul.f32 0.5, %v1942_v17  ;;  %vm1119_vm0 = vmor %vm1117_vm15, %vm1118_vm14  ;;  %v1124_v17 = vor.u32 1.1754944e-38, %v1123_v54 }
 0x695   : > { %v1085_v35 = vsel %vm1082_vm11, %v1084_v31, %v1080_v33  ;;  %v1200_v38 = vsel %vm1199_vm12, %v2018_v52, %v1196_v29  ;;  %v1114_v36 = vsub.f32 1.0, %v1113_v24  ;;  %v1589_v60 = vpop.eup %1588 }
 0x696   : > { %v1086_v40 = vmul.f32 %v1085_v35, %v1061_v63  ;;  %v1205_v41 = vsel %vm1202_vm13, %v1204_v34, %v1200_v38  ;;  %v1153_v62 = vmul.f32 %v1589_v60, %v1151_v39  ;;  %v1101_v63 = vmul.f32 %v1100_v53, %v1969_v44 }
 0x697   : > { %v1206_v46 = vmul.f32 %v1205_v41, %v1181_v5  ;;  %v1115_v59 = vmul.f32 %v1587_v8, %v1114_v36  ;;  %vm1158_vm2 = vweird.f32 %v1589_v60  ;;  %v1141_v44 = vmul.f32 %v1140_v10, %v1974_v51 }
 0x698   : > { %v1511_v47 = vclamps-f32 %v1086_v40, 1.0  ;;  %v1154_v6 = vsub.f32 1.0, %v1153_v62  ;;  %vm1159_vm4 = vmor %vm1157_vm3, %vm1158_vm2 }
 0x699   : > { %v1514_v50 = vclamps-f32 %v1206_v46, 1.0  ;;  %v1116_v61 = vadd.f32 %v1587_v8, %v1115_v59 }
 0x69a   : > { %v1209_v52 = vadd.f32 1.0, %v1511_v47  ;;  %v1155_v12 = vmul.f32 %v1589_v60, %v1154_v6 }
 0x69b   : > { %v1212_v56 = vadd.f32 1.0, %v1514_v50  ;;  %v1120_v1 = vsel %vm1119_vm0, %v1587_v8, %v1116_v61 }
 0x69c   : > { %v1213_v58 = vmul.f32 %v1209_v52, %v1041_v48  ;;  %v1125_v4 = vsel %vm1122_vm1, %v1124_v17, %v1120_v1  ;;  %v1156_v20 = vadd.f32 %v1589_v60, %v1155_v12 }
 0x69d   : > { %v1216_v42 = vmul.f32 %v1212_v56, %v1044_v49  ;;  %v1126_v7 = vmul.f32 %v1125_v4, %v1101_v63  ;;  %v1568_v49 = vld [vmem:[%s2097_s12] ss:$0 sm:$0xff] }
 0x69e   : > { %1301 = vmatmul.f32.vlgmr.msra.gmra.mxu1 %v1213_v58  ;;  %v1160_v16 = vsel %vm1159_vm4, %v1589_v60, %v1156_v20 }
 0x69f   : > { %1361 = vmatmul.f32.vlgmr.msrb.gmra.mxu0 %v1216_v42  ;;  %v1512_v2 = vclamps-f32 %v1126_v7, 1.0  ;;  %v1165_v21 = vsel %vm1162_vm5, %v1164_v15, %v1160_v16 }
 0x6a0   : > { %v1166_v22 = vmul.f32 %v1165_v21, %v1141_v44 }
 0x6a1   : > { %v1210_v3 = vadd.f32 1.0, %v1512_v2 }
 0x6a2   : > { %v1513_v23 = vclamps-f32 %v1166_v22, 1.0 }
 0x6a3   : > { %v1214_v18 = vmul.f32 %v1210_v3, %v1042_v11 }
 0x6a4   : > { %v1211_v26 = vadd.f32 1.0, %v1513_v23 }
 0x6a5   : > { %1321 = vmatmul.f32.vlgmr.msra.gmra.mxu2 %v1214_v18 }
 0x6a6   : > { %v1215_v27 = vmul.f32 %v1211_v26, %v1043_v25 }
 0x6a8   : > { %1341 = vmatmul.f32.vlgmr.msra.gmra.mxu3 %v1215_v27 }
 0x71b   : > { %v1302_v28 = vpop.f32.mrf.mxu1 }
 0x71c   : > { %v1303_v29 = vadd.f32 %v1567_v32, %v1302_v28  ;;  %v1362_v5 = vpop.f32.mrf.mxu0 }
 0x728   : > { %v1322_v31 = vpop.f32.mrf.mxu2 }
 0x729   : > { %v1323_v51 = vadd.f32 %v1322_v31, %v1303_v29 }
 0x72b   : > { %v1342_v30 = vpop.f32.mrf.mxu3 }
 0x72c   : > { %v1343_v33 = vadd.f32 %v1342_v30, %v1323_v51 }
 0x72e   : > { %v1363_v34 = vadd.f32 %v1362_v5, %v1343_v33 }
 0x730   : > { %v1365_v35 = vadd.f32 %v1363_v34, %v1933_v13 }
 0x732   : > { %1368 = vadd.xlane.f32.xlu2 %v1365_v35 }
 0x7a5   : > { %v1369_v38 = vpop.xlane.xlu2 %1368 }
 0x7a6   : > { %v1370_v37 = vmul.f32 %v1369_v38, %v1918_v0 }
 0x7a8   : > { %v1371_v39 = vsub.f32 %v1365_v35, %v1370_v37 }
 0x7aa   : > { %v1372_v8 = vmul.f32 %v1371_v39, %v1371_v39 }
 0x7ac   : > { %1373 = vadd.xlane.f32.xlu2 %v1372_v8 }
 0x81f   : > { %v1374_v40 = vpop.xlane.xlu2 %1373 }
 0x820   : > { %v1375_v41 = vmul.f32 %v1374_v40, %v1918_v0  ;;  %v1569_v0 = vld [vmem:[%s2098_s13] ss:$0 sm:$0xff] }
 0x822   : > { %v1376_v43 = vadd.f32 1e-12, %v1375_v41 }
 0x824   : > { %1590 = vrsqrt.f32 %v1376_v43  ;;  %vm1383_vm7 = vweird.f32 %v1376_v43 }
 0x82a   : > { %v1591_v45 = vpop.eup %1590 }
 0x82b   : > { %v1378_v46 = vmul.f32 %v1591_v45, %v1376_v43  ;;  %vm1384_vm6 = vweird.f32 %v1591_v45 }
 0x82c   : > { %vm1385_vm8 = vmor %vm1383_vm7, %vm1384_vm6 }
 0x82d   : > { %v1379_v24 = vmul.f32 %v1591_v45, %v1378_v46 }
 0x82f   : > { %v1380_v47 = vmul.f32 0.5, %v1379_v24 }
 0x831   : > { %v1381_v48 = vsub.f32 1.5, %v1380_v47 }
 0x833   : > { %v1382_v13 = vmul.f32 %v1591_v45, %v1381_v48 }
 0x835   : > { %v1386_v50 = vsel %vm1385_vm8, %v1591_v45, %v1382_v13 }
 0x836   : > { %v1387_v36 = vmul.f32 %v1386_v50, %v1371_v39 }
 0x838   : > { %v1391_v52 = vmul.f32 %v1568_v49, %v1387_v36 }
 0x83a   : > { %v1395_v53 = vadd.f32 %v1569_v0, %v1391_v52 }
 0x83c   : > { %1396 = vst [vmem:[%s526_s24] sm:$0xff] %v1395_v53 }
 0x83d PF: > { %s2110_s25 = sld [smem:[#allocation9_spill]] }
 0x843   : > { %s26_s29 = sadd.s32 1, %s2110_s25  }
 0x844   : > { %p23_p7 = scmp.ge.s32.totalorder %s26_s29, 4  }
 0x846   :  { %25 = sbr.rel (!%p23_p7) target bundleno = 6 (0x6), region = 122 }
 0x84b   :  { %1416 = vsyncpa [#allocation3], 1 }
 0x84c   :  { %1418 = vsyncpa [#allocation3 + $0x1], 1 }
 0x84d   :  { %1419 = vsyncpa [#allocation5], 1 }

</bundles_post_ra>
